<compile_context>
chip_gen: v6e
topology: v6e:2x2x1
jax: 0.10.0
libtpu: 0.0.40
codegen_flags: <defaults>
</compile_context>

<pallas_src>
import functools

import jax
import jax.numpy as jnp
from jax.experimental import pallas as pl
from jax.experimental.pallas import tpu as pltpu


def relu_conv1x1_kernel(w_ref, x_ref, o_ref, xr_ref):
    # w_ref : (tile_co, Cin) bf16 weight row tile (streamed per grid step).
    # x_ref : (Cin, M) f32 activations, resident across the whole grid (constant index_map).
    # o_ref : (tile_co, M) f32 output tile.
    # xr_ref: (Cin, M) bf16 VMEM scratch holding relu(x) (computed once per core).
    @pl.when(pl.program_id(1) == 0)
    def _():
        # ReLU in f32 on the VPU (v5e has no bf16 VPU), cast to bf16 only for the MXU.
        xr_ref[...] = jnp.maximum(x_ref[...], 0.0).astype(jnp.bfloat16)

    o_ref[...] = jnp.dot(
        w_ref[...], xr_ref[...], preferred_element_type=jnp.float32
    ).astype(o_ref.dtype)


def prepare_weight(weight_oihw):
    """(Cout, Cin, 1, 1) f32 -> (Cout, Cin) bf16.  Done ONCE, not per call."""
    cout, cin = weight_oihw.shape[:2]
    return weight_oihw.reshape(cout, cin).astype(jnp.bfloat16)


def _num_cores():
    # v7x has 2 TensorCores/chip; v5e/v6e have 1.  Fall back to 1 if detection fails.
    try:
        kind = jax.devices()[0].device_kind.lower()
    except Exception:
        kind = ""
    return 2 if ("v7" in kind or "7x" in kind) else 1


@functools.partial(jax.jit, static_argnames=("num_cores", "k_tiles"))
def relu_conv1x1(x_nchw, w_mat, *, num_cores=1, k_tiles=4):
    """x_nchw: (N, Cin, H, W) float32; w_mat: (Cout, Cin) bf16 from prepare_weight."""
    N, Cin, H, W = x_nchw.shape
    Cout = w_mat.shape[0]
    assert w_mat.shape == (Cout, Cin)
    M = N * H * W

    # Choose a Cout tiling that divides evenly; fall back gracefully otherwise.
    if Cout % num_cores != 0:
        num_cores = 1
    if Cout % (num_cores * k_tiles) != 0:
        k_tiles = 1
    tile_co = Cout // (num_cores * k_tiles)

    if N == 1:
        x_mat = x_nchw.reshape(Cin, M)                  # free reshape, no transpose
    else:
        x_mat = jnp.moveaxis(x_nchw, 1, 0).reshape(Cin, M)

    if num_cores > 1:
        dim_sem = (pltpu.CORE_PARALLEL, pltpu.ARBITRARY)   # real 2-TC sharding on v7x
    else:
        dim_sem = (pltpu.ARBITRARY, pltpu.ARBITRARY)

    out = pl.pallas_call(
        relu_conv1x1_kernel,
        out_shape=jax.ShapeDtypeStruct((Cout, M), jnp.float32),
        grid_spec=pltpu.PrefetchScalarGridSpec(
            num_scalar_prefetch=0,
            grid=(num_cores, k_tiles),
            in_specs=[
                # Weight row tile: streamed / double-buffered across the k axis.
                pl.BlockSpec((tile_co, Cin), lambda c, k: (c * k_tiles + k, 0)),
                # Activations: constant block index -> fetched once, stays resident.
                pl.BlockSpec((Cin, M), lambda c, k: (0, 0)),
            ],
            out_specs=pl.BlockSpec((tile_co, M), lambda c, k: (c * k_tiles + k, 0)),
            scratch_shapes=[pltpu.VMEM((Cin, M), jnp.bfloat16)],
        ),
        compiler_params=pltpu.CompilerParams(
            dimension_semantics=dim_sem,
        ),
        cost_estimate=pl.CostEstimate(
            flops=2 * Cout * Cin * M,
            transcendentals=0,
            bytes_accessed=Cout * Cin * 2 + Cin * M * 4 + Cout * M * 4,
        ),
    )(w_mat, x_mat)

    if N == 1:
        return out.reshape(1, Cout, H, W)
    return jnp.moveaxis(out.reshape(Cout, N, H, W), 0, 1)


if __name__ == "__main__":
    key = jax.random.PRNGKey(0)
    k_x, k_w = jax.random.split(key)

    # Shapes implied by the module: Conv2d(1024, 1024, 1x1, bias=False), input [1, 1024, 14, 14].
    N, Cin, H, W = 1, 1024, 14, 14
    Cout = 1024

    x = jax.random.normal(k_x, (N, Cin, H, W), dtype=jnp.float32)
    # Deterministic kaiming-ish init for the conv weight (Cout, Cin, 1, 1).
    w = jax.random.normal(k_w, (Cout, Cin, 1, 1), dtype=jnp.float32) * (1.0 / jnp.sqrt(Cin))

    w_mat = prepare_weight(w)          # one-time weight flatten + bf16 cast
    nc = _num_cores()

    out = relu_conv1x1(x, w_mat, num_cores=nc, k_tiles=4)
    jax.block_until_ready(out)

    # Correctness check against a plain-JAX reference using the same bf16 rounding.
    x_relu_bf16 = jnp.maximum(x, 0.0).astype(jnp.bfloat16).astype(jnp.float32)
    w_f32 = w_mat.astype(jnp.float32)
    ref = jnp.einsum("nchw,oc->nohw", x_relu_bf16, w_f32)
    assert out.shape == (N, Cout, H, W)
    max_err = float(jnp.max(jnp.abs(out - ref)))
    assert jnp.allclose(out, ref, atol=5e-3, rtol=5e-3), max_err

    print("KERNEL_OK")
</pallas_src>

<mosaic_0001>
module attributes {stable_mosaic.version = 11 : i64} {
  func.func @relu_conv1x1_kernel(%arg0: i32, %arg1: i32, %arg2: memref<256x1024xbf16, #tpu.memory_space<vmem>>, %arg3: memref<1024x196xf32, #tpu.memory_space<vmem>>, %arg4: memref<256x196xf32, #tpu.memory_space<vmem>>, %arg5: memref<1024x196xbf16, #tpu.memory_space<vmem>>) attributes {dimension_semantics = [#tpu.dimension_semantics<arbitrary>, #tpu.dimension_semantics<arbitrary>], iteration_bounds = array<i64: 1, 4>, scalar_prefetch = 0 : i64, scratch_operands = 1 : i64, tpu.core_type = #tpu.core_type<tc>, window_params = [{transform_indices = @transform_0, window_bounds = array<i64: 256, 1024>}, {pipeline_mode = #tpu.pipeline_mode<synchronous>, transform_indices = @transform_1, window_bounds = array<i64: 1024, 196>}, {transform_indices = @transform_2, window_bounds = array<i64: 256, 196>}]} {
    %c0_i32 = arith.constant 0 : i32
    %0 = arith.cmpi eq, %arg1, %c0_i32 : i32
    %1 = arith.extui %0 : i1 to i32
    %c0_i32_0 = arith.constant 0 : i32
    %2 = arith.cmpi ne, %1, %c0_i32_0 : i32
    scf.if %2 {
      %c0_6 = arith.constant 0 : index
      %c0_7 = arith.constant 0 : index
      %7 = vector.load %arg3[%c0_6, %c0_7] : memref<1024x196xf32, #tpu.memory_space<vmem>>, vector<1024x196xf32>
      %cst_8 = arith.constant 0.000000e+00 : f32
      %8 = vector.broadcast %cst_8 : f32 to vector<1024x196xf32>
      %9 = arith.maximumf %7, %8 : vector<1024x196xf32>
      %10 = arith.truncf %9 : vector<1024x196xf32> to vector<1024x196xbf16>
      %c0_9 = arith.constant 0 : index
      %c0_10 = arith.constant 0 : index
      %11 = vector.load %arg5[%c0_9, %c0_10] : memref<1024x196xbf16, #tpu.memory_space<vmem>>, vector<1024x196xbf16>
      tpu.vector_store %arg5[%c0_9, %c0_10], %10 {strides = array<i32>} : memref<1024x196xbf16, #tpu.memory_space<vmem>>, vector<1024x196xbf16>,
    } else {
    }
    %c0 = arith.constant 0 : index
    %c0_1 = arith.constant 0 : index
    %3 = vector.load %arg2[%c0, %c0_1] : memref<256x1024xbf16, #tpu.memory_space<vmem>>, vector<256x1024xbf16>
    %c0_2 = arith.constant 0 : index
    %c0_3 = arith.constant 0 : index
    %4 = vector.load %arg5[%c0_2, %c0_3] : memref<1024x196xbf16, #tpu.memory_space<vmem>>, vector<1024x196xbf16>
    %cst = arith.constant dense<0.000000e+00> : vector<256x196xf32>
    %5 = tpu.matmul %3, %4, %cst {dimension_numbers = #tpu.dot_dimension_numbers<[1], [0], [0], [1], [0, 0, 1, 1], [], []>} : vector<256x1024xbf16>, vector<1024x196xbf16>, vector<256x196xf32> -> vector<256x196xf32>
    %c0_4 = arith.constant 0 : index
    %c0_5 = arith.constant 0 : index
    %6 = vector.load %arg4[%c0_4, %c0_5] : memref<256x196xf32, #tpu.memory_space<vmem>>, vector<256x196xf32>
    tpu.vector_store %arg4[%c0_4, %c0_5], %5 {strides = array<i32>} : memref<256x196xf32, #tpu.memory_space<vmem>>, vector<256x196xf32>,
    return
  }
  func.func @transform_0(%arg0: i32, %arg1: i32) -> (i32, i32) {
    %c4_i32 = arith.constant 4 : i32
    %0 = arith.muli %arg0, %c4_i32 : i32
    %1 = arith.addi %0, %arg1 : i32
    %c0_i32 = arith.constant 0 : i32
    %c0_i32_0 = arith.constant 0 : i32
    return %1, %c0_i32 : i32, i32
  }
  func.func @transform_1(%arg0: i32, %arg1: i32) -> (i32, i32) {
    %c0_i32 = arith.constant 0 : i32
    %c0_i32_0 = arith.constant 0 : i32
    %c0_i32_1 = arith.constant 0 : i32
    return %c0_i32, %c0_i32_0 : i32, i32
  }
  func.func @transform_2(%arg0: i32, %arg1: i32) -> (i32, i32) {
    %c4_i32 = arith.constant 4 : i32
    %0 = arith.muli %arg0, %c4_i32 : i32
    %1 = arith.addi %0, %arg1 : i32
    %c0_i32 = arith.constant 0 : i32
    %c0_i32_0 = arith.constant 0 : i32
    return %1, %c0_i32 : i32, i32
  }
}

</mosaic_0001>

<bundles_post_ra>
// kernel: relu_conv1x1.1
= control target key start
LH: loop header
LB: loop body
LE: loop exit
PB: predicated region body
PF: predicated region fallthrough
CT: control target
= control target key end

     0   :  { %s4832_s9 = smov 0   ;;  %s4834_s10 = smov 0   ;;  %s6325_s0 = inlined_call_operand.vmem [shape: bf16[1024,1024], index: 0, kind: input, shape index: {}]   ;;  %s6326_s1 = inlined_call_operand.vmem [shape: f32[1024,196], index: 1, kind: input, shape index: {}]   ;;  %s6327_s2 = inlined_call_operand.vmem [shape: f32[1024,196], index: 2, kind: output, shape index: {}]  }
   0x1   :  { %s4836_s11 = smov 0  }
   0x2 LB: > { %s21_s12 = sadd.s32 1, %s4811_s10  ;;  %p4053_p0 = scmp.ge.s32.totalorder %s4815_s11, 1  ;;  %s4815_s11 = sphi %s4836_s11, %s12_s11   ;;  %s4811_s10 = sphi %s4834_s10, %s6359_s10   ;;  %s4807_s9 = sphi %s4832_s9, %s6358_s9  }
   0x3   : > { %p22_p1 = scmp.ge.s32.totalorder %s21_s12, 4  ;;  %p138_p2 = scmp.lt.s32.totalorder %s4815_s11, 5 }
   0x5   : > { %s6361_s12 = smov (%p22_p1, %s21_s12), 0  ;;  %p139_p3 = pnand %p4053_p0, %p138_p2 }
   0x7   : > { %142 = sbr.rel (%p139_p3) target bundleno = 648 (0x288), region = 28 }
   0xc   : > { %s4054_s13 = sshll.u32 %s4807_s9, 5  ;;  %p4060_p5 = scmp.ne.s32.totalorder %s4807_s9, 0 }
   0xd   : > { %p169_p4 = scmp.lt.s32.totalorder %s4054_s13, 127 }
   0xe   : > { %191 = sbr.rel (%p4060_p5) target bundleno = 131 (0x83), region = 32 }
   0xf   : > { %s6363_s13 = smov (!%p169_p4, %s4054_s13), 127 }
  0x10   : > { %s4447_s14 = sshll.u32 %s6363_s13, 5  ;;  %s4448_s15 = sshll.u32 %s6363_s13, 4 }
  0x11   : > { %s4853_s18 = scalar_lea.vmem %s6325_s0, %s4447_s14  ;;  %s4858_s21 = scalar_lea.vmem %s6327_s2, %s4448_s15 }
  0x13   : > { %v192_v0 = vld [vmem:[%s6326_s1] sm:$0xff]  ;;  %v193_v1 = vld [vmem:[%s6326_s1 + $0x8] sm:$0xff]  ;;  %vm1472_vm0 = vcmask 1043456   ;;  %vm1473_vm1 = vcmask 556036   ;;  %v194_v2 = vld [vmem:[%s6326_s1 + $0x10] sm:$0xff] }
  0x14   : > { %v448_v3 = vmax.f32 %v192_v0, 0.0  ;;  %v449_v4 = vmax.f32 %v193_v1, 0.0  ;;  %vm4869_vm2 = vmor %vm1473_vm1, %vm1472_vm0  ;;  %v195_v6 = vld [vmem:[%s6326_s1 + $0x18] sm:$0xff]  ;;  %v450_v7 = vmax.f32 %v194_v2, 0.0  ;;  %v196_v8 = vld [vmem:[%s6326_s1 + $0x20] sm:$0xff] }
  0x15   : > { %v451_v9 = vmax.f32 %v195_v6, 0.0  ;;  %v197_v10 = vld [vmem:[%s6326_s1 + $0x28] sm:$0xff]  ;;  %v452_v11 = vmax.f32 %v196_v8, 0.0  ;;  %v198_v12 = vld [vmem:[%s6326_s1 + $0x30] sm:$0xff]  ;;  %v199_v13 = vld [vmem:[%s6326_s1 + $0x38] sm:$0xff] }
  0x16   : > { %v4449_v14 = vpack.c.bf16 %v449_v4, %v448_v3  ;;  %v453_v15 = vmax.f32 %v197_v10, 0.0  ;;  %v454_v16 = vmax.f32 %v198_v12, 0.0  ;;  %v455_v17 = vmax.f32 %v199_v13, 0.0  ;;  %v200_v18 = vld [vmem:[%s6326_s1 + $0x40] sm:$0xff]  ;;  %v201_v19 = vld [vmem:[%s6326_s1 + $0x48] sm:$0xff]  ;;  %v202_v20 = vld [vmem:[%s6326_s1 + $0x50] sm:$0xff] }
  0x17   : > { %v4450_v21 = vpack.c.bf16 %v451_v9, %v450_v7  ;;  %v456_v22 = vmax.f32 %v200_v18, 0.0  ;;  %v457_v23 = vmax.f32 %v201_v19, 0.0  ;;  %v203_v24 = vld [vmem:[%s6326_s1 + $0x58] sm:$0xff]  ;;  %v458_v25 = vmax.f32 %v202_v20, 0.0  ;;  %v204_v26 = vld [vmem:[%s6326_s1 + $0x60] sm:$0xff]  ;;  %v205_v27 = vld [vmem:[%s6326_s1 + $0x68] sm:$0xff] }
  0x18   : > { %1475 = vst.msk [vmem:[#allocation2] sm:$0xff] %vm4869_vm2, %v4449_v14  ;;  %v4451_v28 = vpack.c.bf16 %v453_v15, %v452_v11  ;;  %v4452_v29 = vpack.c.bf16 %v455_v17, %v454_v16  ;;  %v459_v30 = vmax.f32 %v203_v24, 0.0  ;;  %v460_v31 = vmax.f32 %v204_v26, 0.0  ;;  %v206_v32 = vld [vmem:[%s6326_s1 + $0x70] sm:$0xff]  ;;  %v207_v33 = vld [vmem:[%s6326_s1 + $0x78] sm:$0xff]  ;;  %v208_v34 = vld [vmem:[%s6326_s1 + $0x80] sm:$0xff] }
  0x19   : > { %1476 = vst.msk [vmem:[#allocation2 + $0x8] sm:$0xff] %vm4869_vm2, %v4450_v21  ;;  %v4453_v35 = vpack.c.bf16 %v457_v23, %v456_v22  ;;  %v461_v36 = vmax.f32 %v205_v27, 0.0  ;;  %v462_v37 = vmax.f32 %v206_v32, 0.0  ;;  %v463_v38 = vmax.f32 %v207_v33, 0.0  ;;  %v209_v39 = vld [vmem:[%s6326_s1 + $0x88] sm:$0xff]  ;;  %v210_v40 = vld [vmem:[%s6326_s1 + $0x90] sm:$0xff] }
  0x1a   : > { %v211_v41 = vld [vmem:[%s6326_s1 + $0x98] sm:$0xff]  ;;  %1477 = vst.msk [vmem:[#allocation2 + $0x10] sm:$0xff] %vm4869_vm2, %v4451_v28  ;;  %1478 = vst.msk [vmem:[#allocation2 + $0x18] sm:$0xff] %vm4869_vm2, %v4452_v29  ;;  %v4454_v42 = vpack.c.bf16 %v459_v30, %v458_v25  ;;  %v464_v43 = vmax.f32 %v208_v34, 0.0  ;;  %v465_v44 = vmax.f32 %v209_v39, 0.0  ;;  %v466_v45 = vmax.f32 %v210_v40, 0.0 }
  0x1b   : > { %v212_v46 = vld [vmem:[%s6326_s1 + $0xa0] sm:$0xff]  ;;  %v213_v47 = vld [vmem:[%s6326_s1 + $0xa8] sm:$0xff]  ;;  %v214_v48 = vld [vmem:[%s6326_s1 + $0xb0] sm:$0xff]  ;;  %1479 = vst.msk [vmem:[#allocation2 + $0x20] sm:$0xff] %vm4869_vm2, %v4453_v35  ;;  %v4455_v49 = vpack.c.bf16 %v461_v36, %v460_v31  ;;  %v4456_v50 = vpack.c.bf16 %v463_v38, %v462_v37  ;;  %v467_v51 = vmax.f32 %v211_v41, 0.0 }
  0x1c   : > { %v468_v52 = vmax.f32 %v212_v46, 0.0  ;;  %v215_v53 = vld [vmem:[%s6326_s1 + $0xb8] sm:$0xff]  ;;  %v216_v54 = vld [vmem:[%s6326_s1 + $0xc0] sm:$0xff]  ;;  %v217_v55 = vld [vmem:[%s6326_s1 + $0xc8] sm:$0xff]  ;;  %1480 = vst.msk [vmem:[#allocation2 + $0x28] sm:$0xff] %vm4869_vm2, %v4454_v42  ;;  %v4457_v56 = vpack.c.bf16 %v465_v44, %v464_v43  ;;  %v469_v57 = vmax.f32 %v213_v47, 0.0 }
  0x1d   : > { %v470_v58 = vmax.f32 %v214_v48, 0.0  ;;  %v471_v59 = vmax.f32 %v215_v53, 0.0  ;;  %v218_v60 = vld [vmem:[%s6326_s1 + $0xd0] sm:$0xff]  ;;  %v219_v61 = vld [vmem:[%s6326_s1 + $0xd8] sm:$0xff]  ;;  %v220_v62 = vld [vmem:[%s6326_s1 + $0xe0] sm:$0xff]  ;;  %1481 = vst.msk [vmem:[#allocation2 + $0x30] sm:$0xff] %vm4869_vm2, %v4455_v49  ;;  %v4458_v63 = vpack.c.bf16 %v467_v51, %v466_v45 }
  0x1e   : > { %1482 = vst.msk [vmem:[#allocation2 + $0x38] sm:$0xff] %vm4869_vm2, %v4456_v50  ;;  %v472_v0 = vmax.f32 %v216_v54, 0.0  ;;  %v473_v1 = vmax.f32 %v217_v55, 0.0  ;;  %v474_v2 = vmax.f32 %v218_v60, 0.0  ;;  %v221_v3 = vld [vmem:[%s6326_s1 + $0xe8] sm:$0xff]  ;;  %v222_v4 = vld [vmem:[%s6326_s1 + $0xf0] sm:$0xff]  ;;  %v4459_v7 = vpack.c.bf16 %v469_v57, %v468_v52 }
  0x1f   : > { %v223_v6 = vld [vmem:[%s6326_s1 + $0xf8] sm:$0xff]  ;;  %1483 = vst.msk [vmem:[#allocation2 + $0x40] sm:$0xff] %vm4869_vm2, %v4457_v56  ;;  %v4460_v8 = vpack.c.bf16 %v471_v59, %v470_v58  ;;  %v475_v9 = vmax.f32 %v219_v61, 0.0  ;;  %v476_v10 = vmax.f32 %v220_v62, 0.0  ;;  %v224_v11 = vld [vmem:[%s6326_s1 + $0x100] sm:$0xff]  ;;  %v225_v12 = vld [vmem:[%s6326_s1 + $0x108] sm:$0xff] }
  0x20   : > { %v226_v13 = vld [vmem:[%s6326_s1 + $0x110] sm:$0xff]  ;;  %1484 = vst.msk [vmem:[#allocation2 + $0x48] sm:$0xff] %vm4869_vm2, %v4458_v63  ;;  %v4461_v14 = vpack.c.bf16 %v473_v1, %v472_v0  ;;  %v477_v15 = vmax.f32 %v221_v3, 0.0  ;;  %v478_v16 = vmax.f32 %v222_v4, 0.0  ;;  %v479_v17 = vmax.f32 %v223_v6, 0.0  ;;  %v227_v18 = vld [vmem:[%s6326_s1 + $0x118] sm:$0xff] }
  0x21   : > { %v228_v19 = vld [vmem:[%s6326_s1 + $0x120] sm:$0xff]  ;;  %v229_v20 = vld [vmem:[%s6326_s1 + $0x128] sm:$0xff]  ;;  %1485 = vst.msk [vmem:[#allocation2 + $0x50] sm:$0xff] %vm4869_vm2, %v4459_v7  ;;  %1486 = vst.msk [vmem:[#allocation2 + $0x58] sm:$0xff] %vm4869_vm2, %v4460_v8  ;;  %v4462_v21 = vpack.c.bf16 %v475_v9, %v474_v2  ;;  %v480_v22 = vmax.f32 %v224_v11, 0.0  ;;  %v481_v23 = vmax.f32 %v225_v12, 0.0 }
  0x22   : > { %v482_v24 = vmax.f32 %v226_v13, 0.0  ;;  %v230_v25 = vld [vmem:[%s6326_s1 + $0x130] sm:$0xff]  ;;  %v231_v26 = vld [vmem:[%s6326_s1 + $0x138] sm:$0xff]  ;;  %v232_v27 = vld [vmem:[%s6326_s1 + $0x140] sm:$0xff]  ;;  %1487 = vst.msk [vmem:[#allocation2 + $0x60] sm:$0xff] %vm4869_vm2, %v4461_v14  ;;  %v4463_v28 = vpack.c.bf16 %v477_v15, %v476_v10  ;;  %v4464_v29 = vpack.c.bf16 %v479_v17, %v478_v16  ;;  %v483_v30 = vmax.f32 %v227_v18, 0.0 }
  0x23   : > { %v484_v31 = vmax.f32 %v228_v19, 0.0  ;;  %v233_v32 = vld [vmem:[%s6326_s1 + $0x148] sm:$0xff]  ;;  %v234_v33 = vld [vmem:[%s6326_s1 + $0x150] sm:$0xff]  ;;  %v235_v34 = vld [vmem:[%s6326_s1 + $0x158] sm:$0xff]  ;;  %1488 = vst.msk [vmem:[#allocation2 + $0x68] sm:$0xff] %vm4869_vm2, %v4462_v21  ;;  %v4465_v35 = vpack.c.bf16 %v481_v23, %v480_v22  ;;  %v485_v36 = vmax.f32 %v229_v20, 0.0 }
  0x24   : > { %v486_v37 = vmax.f32 %v230_v25, 0.0  ;;  %v487_v38 = vmax.f32 %v231_v26, 0.0  ;;  %v236_v39 = vld [vmem:[%s6326_s1 + $0x160] sm:$0xff]  ;;  %v237_v40 = vld [vmem:[%s6326_s1 + $0x168] sm:$0xff]  ;;  %v238_v41 = vld [vmem:[%s6326_s1 + $0x170] sm:$0xff]  ;;  %1489 = vst.msk [vmem:[#allocation2 + $0x70] sm:$0xff] %vm4869_vm2, %v4463_v28  ;;  %v4466_v42 = vpack.c.bf16 %v483_v30, %v482_v24 }
  0x25   : > { %1490 = vst.msk [vmem:[#allocation2 + $0x78] sm:$0xff] %vm4869_vm2, %v4464_v29  ;;  %v488_v43 = vmax.f32 %v232_v27, 0.0  ;;  %v489_v44 = vmax.f32 %v233_v32, 0.0  ;;  %v490_v45 = vmax.f32 %v234_v33, 0.0  ;;  %v239_v46 = vld [vmem:[%s6326_s1 + $0x178] sm:$0xff]  ;;  %v240_v47 = vld [vmem:[%s6326_s1 + $0x180] sm:$0xff]  ;;  %v4467_v49 = vpack.c.bf16 %v485_v36, %v484_v31 }
  0x26   : > { %v241_v48 = vld [vmem:[%s6326_s1 + $0x188] sm:$0xff]  ;;  %1491 = vst.msk [vmem:[#allocation2 + $0x80] sm:$0xff] %vm4869_vm2, %v4465_v35  ;;  %v4468_v50 = vpack.c.bf16 %v487_v38, %v486_v37  ;;  %v491_v51 = vmax.f32 %v235_v34, 0.0  ;;  %v492_v52 = vmax.f32 %v236_v39, 0.0  ;;  %v242_v53 = vld [vmem:[%s6326_s1 + $0x190] sm:$0xff]  ;;  %v243_v54 = vld [vmem:[%s6326_s1 + $0x198] sm:$0xff] }
  0x27   : > { %v244_v55 = vld [vmem:[%s6326_s1 + $0x1a0] sm:$0xff]  ;;  %1492 = vst.msk [vmem:[#allocation2 + $0x88] sm:$0xff] %vm4869_vm2, %v4466_v42  ;;  %v4469_v56 = vpack.c.bf16 %v489_v44, %v488_v43  ;;  %v493_v57 = vmax.f32 %v237_v40, 0.0  ;;  %v494_v58 = vmax.f32 %v238_v41, 0.0  ;;  %v495_v59 = vmax.f32 %v239_v46, 0.0  ;;  %v245_v60 = vld [vmem:[%s6326_s1 + $0x1a8] sm:$0xff] }
  0x28   : > { %v246_v61 = vld [vmem:[%s6326_s1 + $0x1b0] sm:$0xff]  ;;  %v247_v62 = vld [vmem:[%s6326_s1 + $0x1b8] sm:$0xff]  ;;  %1493 = vst.msk [vmem:[#allocation2 + $0x90] sm:$0xff] %vm4869_vm2, %v4467_v49  ;;  %1494 = vst.msk [vmem:[#allocation2 + $0x98] sm:$0xff] %vm4869_vm2, %v4468_v50  ;;  %v4470_v63 = vpack.c.bf16 %v491_v51, %v490_v45  ;;  %v496_v0 = vmax.f32 %v240_v47, 0.0  ;;  %v497_v1 = vmax.f32 %v241_v48, 0.0 }
  0x29   : > { %v498_v2 = vmax.f32 %v242_v53, 0.0  ;;  %v248_v3 = vld [vmem:[%s6326_s1 + $0x1c0] sm:$0xff]  ;;  %v249_v4 = vld [vmem:[%s6326_s1 + $0x1c8] sm:$0xff]  ;;  %v250_v6 = vld [vmem:[%s6326_s1 + $0x1d0] sm:$0xff]  ;;  %1495 = vst.msk [vmem:[#allocation2 + $0xa0] sm:$0xff] %vm4869_vm2, %v4469_v56  ;;  %v4471_v7 = vpack.c.bf16 %v493_v57, %v492_v52  ;;  %v4472_v8 = vpack.c.bf16 %v495_v59, %v494_v58  ;;  %v499_v9 = vmax.f32 %v243_v54, 0.0 }
  0x2a   : > { %v500_v10 = vmax.f32 %v244_v55, 0.0  ;;  %v251_v11 = vld [vmem:[%s6326_s1 + $0x1d8] sm:$0xff]  ;;  %v252_v12 = vld [vmem:[%s6326_s1 + $0x1e0] sm:$0xff]  ;;  %1496 = vst.msk [vmem:[#allocation2 + $0xa8] sm:$0xff] %vm4869_vm2, %v4470_v63  ;;  %v4473_v13 = vpack.c.bf16 %v497_v1, %v496_v0  ;;  %v501_v14 = vmax.f32 %v245_v60, 0.0  ;;  %v502_v15 = vmax.f32 %v246_v61, 0.0 }
  0x2b   : > { %v503_v16 = vmax.f32 %v247_v62, 0.0  ;;  %v253_v17 = vld [vmem:[%s6326_s1 + $0x1e8] sm:$0xff]  ;;  %v254_v18 = vld [vmem:[%s6326_s1 + $0x1f0] sm:$0xff]  ;;  %v255_v19 = vld [vmem:[%s6326_s1 + $0x1f8] sm:$0xff]  ;;  %1497 = vst.msk [vmem:[#allocation2 + $0xb0] sm:$0xff] %vm4869_vm2, %v4471_v7  ;;  %v4474_v20 = vpack.c.bf16 %v499_v9, %v498_v2  ;;  %v504_v21 = vmax.f32 %v248_v3, 0.0 }
  0x2c   : > { %1498 = vst.msk [vmem:[#allocation2 + $0xb8] sm:$0xff] %vm4869_vm2, %v4472_v8  ;;  %v505_v22 = vmax.f32 %v249_v4, 0.0  ;;  %v506_v23 = vmax.f32 %v250_v6, 0.0  ;;  %v256_v24 = vld [vmem:[%s6326_s1 + $0x200] sm:$0xff]  ;;  %v257_v25 = vld [vmem:[%s6326_s1 + $0x208] sm:$0xff]  ;;  %v258_v26 = vld [vmem:[%s6326_s1 + $0x210] sm:$0xff]  ;;  %v4475_v27 = vpack.c.bf16 %v501_v14, %v500_v10 }
  0x2d   : > { %1499 = vst.msk [vmem:[#allocation2 + $0xc0] sm:$0xff] %vm4869_vm2, %v4473_v13  ;;  %v4476_v28 = vpack.c.bf16 %v503_v16, %v502_v15  ;;  %v507_v29 = vmax.f32 %v251_v11, 0.0  ;;  %v508_v30 = vmax.f32 %v252_v12, 0.0  ;;  %v259_v31 = vld [vmem:[%s6326_s1 + $0x218] sm:$0xff]  ;;  %v260_v32 = vld [vmem:[%s6326_s1 + $0x220] sm:$0xff]  ;;  %1500 = vst.msk [vmem:[#allocation2 + $0xc8] sm:$0xff] %vm4869_vm2, %v4474_v20 }
  0x2e   : > { %v4477_v33 = vpack.c.bf16 %v505_v22, %v504_v21  ;;  %v509_v34 = vmax.f32 %v253_v17, 0.0  ;;  %v510_v35 = vmax.f32 %v254_v18, 0.0  ;;  %v511_v36 = vmax.f32 %v255_v19, 0.0  ;;  %v261_v37 = vld [vmem:[%s6326_s1 + $0x228] sm:$0xff]  ;;  %v262_v38 = vld [vmem:[%s6326_s1 + $0x230] sm:$0xff]  ;;  %v263_v39 = vld [vmem:[%s6326_s1 + $0x238] sm:$0xff] }
  0x2f   : > { %1501 = vst.msk [vmem:[#allocation2 + $0xd0] sm:$0xff] %vm4869_vm2, %v4475_v27  ;;  %1502 = vst.msk [vmem:[#allocation2 + $0xd8] sm:$0xff] %vm4869_vm2, %v4476_v28  ;;  %v4478_v40 = vpack.c.bf16 %v507_v29, %v506_v23  ;;  %v512_v41 = vmax.f32 %v256_v24, 0.0  ;;  %v513_v42 = vmax.f32 %v257_v25, 0.0  ;;  %v514_v43 = vmax.f32 %v258_v26, 0.0  ;;  %v264_v44 = vld [vmem:[%s6326_s1 + $0x240] sm:$0xff] }
  0x30   : > { %v265_v45 = vld [vmem:[%s6326_s1 + $0x248] sm:$0xff]  ;;  %v266_v46 = vld [vmem:[%s6326_s1 + $0x250] sm:$0xff]  ;;  %1503 = vst.msk [vmem:[#allocation2 + $0xe0] sm:$0xff] %vm4869_vm2, %v4477_v33  ;;  %v4479_v47 = vpack.c.bf16 %v509_v34, %v508_v30  ;;  %v4480_v48 = vpack.c.bf16 %v511_v36, %v510_v35  ;;  %v515_v49 = vmax.f32 %v259_v31, 0.0  ;;  %v516_v50 = vmax.f32 %v260_v32, 0.0  ;;  %v267_v51 = vld [vmem:[%s6326_s1 + $0x258] sm:$0xff] }
  0x31   : > { %v268_v52 = vld [vmem:[%s6326_s1 + $0x260] sm:$0xff]  ;;  %1504 = vst.msk [vmem:[#allocation2 + $0xe8] sm:$0xff] %vm4869_vm2, %v4478_v40  ;;  %v4481_v53 = vpack.c.bf16 %v513_v42, %v512_v41  ;;  %v517_v54 = vmax.f32 %v261_v37, 0.0  ;;  %v518_v55 = vmax.f32 %v262_v38, 0.0  ;;  %v519_v56 = vmax.f32 %v263_v39, 0.0  ;;  %v269_v57 = vld [vmem:[%s6326_s1 + $0x268] sm:$0xff] }
  0x32   : > { %v270_v58 = vld [vmem:[%s6326_s1 + $0x270] sm:$0xff]  ;;  %v271_v59 = vld [vmem:[%s6326_s1 + $0x278] sm:$0xff]  ;;  %1505 = vst.msk [vmem:[#allocation2 + $0xf0] sm:$0xff] %vm4869_vm2, %v4479_v47  ;;  %1506 = vst.msk [vmem:[#allocation2 + $0xf8] sm:$0xff] %vm4869_vm2, %v4480_v48  ;;  %v4482_v60 = vpack.c.bf16 %v515_v49, %v514_v43  ;;  %v520_v61 = vmax.f32 %v264_v44, 0.0  ;;  %v521_v62 = vmax.f32 %v265_v45, 0.0 }
  0x33   : > { %v522_v63 = vmax.f32 %v266_v46, 0.0  ;;  %v272_v0 = vld [vmem:[%s6326_s1 + $0x280] sm:$0xff]  ;;  %v273_v1 = vld [vmem:[%s6326_s1 + $0x288] sm:$0xff]  ;;  %v274_v2 = vld [vmem:[%s6326_s1 + $0x290] sm:$0xff]  ;;  %1507 = vst.msk [vmem:[#allocation2 + $0x100] sm:$0xff] %vm4869_vm2, %v4481_v53  ;;  %v4483_v3 = vpack.c.bf16 %v517_v54, %v516_v50  ;;  %v4484_v4 = vpack.c.bf16 %v519_v56, %v518_v55  ;;  %v523_v6 = vmax.f32 %v267_v51, 0.0 }
  0x34   : > { %v524_v7 = vmax.f32 %v268_v52, 0.0  ;;  %v275_v8 = vld [vmem:[%s6326_s1 + $0x298] sm:$0xff]  ;;  %v276_v9 = vld [vmem:[%s6326_s1 + $0x2a0] sm:$0xff]  ;;  %1508 = vst.msk [vmem:[#allocation2 + $0x108] sm:$0xff] %vm4869_vm2, %v4482_v60  ;;  %v4485_v10 = vpack.c.bf16 %v521_v62, %v520_v61  ;;  %v525_v11 = vmax.f32 %v269_v57, 0.0  ;;  %v526_v12 = vmax.f32 %v270_v58, 0.0 }
  0x35   : > { %v527_v13 = vmax.f32 %v271_v59, 0.0  ;;  %v277_v14 = vld [vmem:[%s6326_s1 + $0x2a8] sm:$0xff]  ;;  %v278_v15 = vld [vmem:[%s6326_s1 + $0x2b0] sm:$0xff]  ;;  %v279_v16 = vld [vmem:[%s6326_s1 + $0x2b8] sm:$0xff]  ;;  %1509 = vst.msk [vmem:[#allocation2 + $0x110] sm:$0xff] %vm4869_vm2, %v4483_v3  ;;  %v4486_v17 = vpack.c.bf16 %v523_v6, %v522_v63  ;;  %v528_v18 = vmax.f32 %v272_v0, 0.0 }
  0x36   : > { %1510 = vst.msk [vmem:[#allocation2 + $0x118] sm:$0xff] %vm4869_vm2, %v4484_v4  ;;  %v529_v19 = vmax.f32 %v273_v1, 0.0  ;;  %v530_v20 = vmax.f32 %v274_v2, 0.0  ;;  %v280_v21 = vld [vmem:[%s6326_s1 + $0x2c0] sm:$0xff]  ;;  %v281_v22 = vld [vmem:[%s6326_s1 + $0x2c8] sm:$0xff]  ;;  %v282_v23 = vld [vmem:[%s6326_s1 + $0x2d0] sm:$0xff]  ;;  %v4487_v24 = vpack.c.bf16 %v525_v11, %v524_v7 }
  0x37   : > { %1511 = vst.msk [vmem:[#allocation2 + $0x120] sm:$0xff] %vm4869_vm2, %v4485_v10  ;;  %v4488_v25 = vpack.c.bf16 %v527_v13, %v526_v12  ;;  %v531_v26 = vmax.f32 %v275_v8, 0.0  ;;  %v532_v27 = vmax.f32 %v276_v9, 0.0  ;;  %v283_v28 = vld [vmem:[%s6326_s1 + $0x2d8] sm:$0xff]  ;;  %v284_v29 = vld [vmem:[%s6326_s1 + $0x2e0] sm:$0xff]  ;;  %1512 = vst.msk [vmem:[#allocation2 + $0x128] sm:$0xff] %vm4869_vm2, %v4486_v17 }
  0x38   : > { %v4489_v30 = vpack.c.bf16 %v529_v19, %v528_v18  ;;  %v533_v31 = vmax.f32 %v277_v14, 0.0  ;;  %v534_v32 = vmax.f32 %v278_v15, 0.0  ;;  %v535_v33 = vmax.f32 %v279_v16, 0.0  ;;  %v285_v34 = vld [vmem:[%s6326_s1 + $0x2e8] sm:$0xff]  ;;  %v286_v35 = vld [vmem:[%s6326_s1 + $0x2f0] sm:$0xff]  ;;  %v287_v36 = vld [vmem:[%s6326_s1 + $0x2f8] sm:$0xff] }
  0x39   : > { %1513 = vst.msk [vmem:[#allocation2 + $0x130] sm:$0xff] %vm4869_vm2, %v4487_v24  ;;  %1514 = vst.msk [vmem:[#allocation2 + $0x138] sm:$0xff] %vm4869_vm2, %v4488_v25  ;;  %v4490_v37 = vpack.c.bf16 %v531_v26, %v530_v20  ;;  %v536_v38 = vmax.f32 %v280_v21, 0.0  ;;  %v537_v39 = vmax.f32 %v281_v22, 0.0  ;;  %v538_v40 = vmax.f32 %v282_v23, 0.0  ;;  %v288_v41 = vld [vmem:[%s6326_s1 + $0x300] sm:$0xff] }
  0x3a   : > { %v289_v42 = vld [vmem:[%s6326_s1 + $0x308] sm:$0xff]  ;;  %v290_v43 = vld [vmem:[%s6326_s1 + $0x310] sm:$0xff]  ;;  %1515 = vst.msk [vmem:[#allocation2 + $0x140] sm:$0xff] %vm4869_vm2, %v4489_v30  ;;  %v4491_v44 = vpack.c.bf16 %v533_v31, %v532_v27  ;;  %v4492_v45 = vpack.c.bf16 %v535_v33, %v534_v32  ;;  %v539_v46 = vmax.f32 %v283_v28, 0.0  ;;  %v540_v47 = vmax.f32 %v284_v29, 0.0  ;;  %v291_v48 = vld [vmem:[%s6326_s1 + $0x318] sm:$0xff] }
  0x3b   : > { %v292_v49 = vld [vmem:[%s6326_s1 + $0x320] sm:$0xff]  ;;  %1516 = vst.msk [vmem:[#allocation2 + $0x148] sm:$0xff] %vm4869_vm2, %v4490_v37  ;;  %v4493_v50 = vpack.c.bf16 %v537_v39, %v536_v38  ;;  %v541_v51 = vmax.f32 %v285_v34, 0.0  ;;  %v542_v52 = vmax.f32 %v286_v35, 0.0  ;;  %v543_v53 = vmax.f32 %v287_v36, 0.0  ;;  %v293_v54 = vld [vmem:[%s6326_s1 + $0x328] sm:$0xff] }
  0x3c   : > { %v294_v55 = vld [vmem:[%s6326_s1 + $0x330] sm:$0xff]  ;;  %v295_v56 = vld [vmem:[%s6326_s1 + $0x338] sm:$0xff]  ;;  %1517 = vst.msk [vmem:[#allocation2 + $0x150] sm:$0xff] %vm4869_vm2, %v4491_v44  ;;  %1518 = vst.msk [vmem:[#allocation2 + $0x158] sm:$0xff] %vm4869_vm2, %v4492_v45  ;;  %v4494_v57 = vpack.c.bf16 %v539_v46, %v538_v40  ;;  %v544_v58 = vmax.f32 %v288_v41, 0.0  ;;  %v545_v59 = vmax.f32 %v289_v42, 0.0 }
  0x3d   : > { %v546_v60 = vmax.f32 %v290_v43, 0.0  ;;  %v296_v61 = vld [vmem:[%s6326_s1 + $0x340] sm:$0xff]  ;;  %v297_v62 = vld [vmem:[%s6326_s1 + $0x348] sm:$0xff]  ;;  %v298_v63 = vld [vmem:[%s6326_s1 + $0x350] sm:$0xff]  ;;  %1519 = vst.msk [vmem:[#allocation2 + $0x160] sm:$0xff] %vm4869_vm2, %v4493_v50  ;;  %v4495_v0 = vpack.c.bf16 %v541_v51, %v540_v47  ;;  %v4496_v1 = vpack.c.bf16 %v543_v53, %v542_v52  ;;  %v547_v2 = vmax.f32 %v291_v48, 0.0 }
  0x3e   : > { %v548_v3 = vmax.f32 %v292_v49, 0.0  ;;  %v299_v4 = vld [vmem:[%s6326_s1 + $0x358] sm:$0xff]  ;;  %v300_v6 = vld [vmem:[%s6326_s1 + $0x360] sm:$0xff]  ;;  %1520 = vst.msk [vmem:[#allocation2 + $0x168] sm:$0xff] %vm4869_vm2, %v4494_v57  ;;  %v4497_v7 = vpack.c.bf16 %v545_v59, %v544_v58  ;;  %v549_v8 = vmax.f32 %v293_v54, 0.0  ;;  %v550_v9 = vmax.f32 %v294_v55, 0.0 }
  0x3f   : > { %v551_v10 = vmax.f32 %v295_v56, 0.0  ;;  %v301_v11 = vld [vmem:[%s6326_s1 + $0x368] sm:$0xff]  ;;  %v302_v12 = vld [vmem:[%s6326_s1 + $0x370] sm:$0xff]  ;;  %v303_v13 = vld [vmem:[%s6326_s1 + $0x378] sm:$0xff]  ;;  %1521 = vst.msk [vmem:[#allocation2 + $0x170] sm:$0xff] %vm4869_vm2, %v4495_v0  ;;  %v4498_v14 = vpack.c.bf16 %v547_v2, %v546_v60  ;;  %v552_v15 = vmax.f32 %v296_v61, 0.0 }
  0x40   : > { %1522 = vst.msk [vmem:[#allocation2 + $0x178] sm:$0xff] %vm4869_vm2, %v4496_v1  ;;  %v553_v16 = vmax.f32 %v297_v62, 0.0  ;;  %v554_v17 = vmax.f32 %v298_v63, 0.0  ;;  %v304_v18 = vld [vmem:[%s6326_s1 + $0x380] sm:$0xff]  ;;  %v305_v19 = vld [vmem:[%s6326_s1 + $0x388] sm:$0xff]  ;;  %v306_v20 = vld [vmem:[%s6326_s1 + $0x390] sm:$0xff]  ;;  %v4499_v21 = vpack.c.bf16 %v549_v8, %v548_v3 }
  0x41   : > { %1523 = vst.msk [vmem:[#allocation2 + $0x180] sm:$0xff] %vm4869_vm2, %v4497_v7  ;;  %v4500_v22 = vpack.c.bf16 %v551_v10, %v550_v9  ;;  %v555_v23 = vmax.f32 %v299_v4, 0.0  ;;  %v556_v24 = vmax.f32 %v300_v6, 0.0  ;;  %v307_v25 = vld [vmem:[%s6326_s1 + $0x398] sm:$0xff]  ;;  %v308_v26 = vld [vmem:[%s6326_s1 + $0x3a0] sm:$0xff]  ;;  %1524 = vst.msk [vmem:[#allocation2 + $0x188] sm:$0xff] %vm4869_vm2, %v4498_v14 }
  0x42   : > { %v4501_v27 = vpack.c.bf16 %v553_v16, %v552_v15  ;;  %v557_v28 = vmax.f32 %v301_v11, 0.0  ;;  %v558_v29 = vmax.f32 %v302_v12, 0.0  ;;  %v559_v30 = vmax.f32 %v303_v13, 0.0  ;;  %v309_v31 = vld [vmem:[%s6326_s1 + $0x3a8] sm:$0xff]  ;;  %v310_v32 = vld [vmem:[%s6326_s1 + $0x3b0] sm:$0xff]  ;;  %v311_v33 = vld [vmem:[%s6326_s1 + $0x3b8] sm:$0xff] }
  0x43   : > { %1525 = vst.msk [vmem:[#allocation2 + $0x190] sm:$0xff] %vm4869_vm2, %v4499_v21  ;;  %1526 = vst.msk [vmem:[#allocation2 + $0x198] sm:$0xff] %vm4869_vm2, %v4500_v22  ;;  %v4502_v34 = vpack.c.bf16 %v555_v23, %v554_v17  ;;  %v560_v35 = vmax.f32 %v304_v18, 0.0  ;;  %v561_v36 = vmax.f32 %v305_v19, 0.0  ;;  %v562_v37 = vmax.f32 %v306_v20, 0.0  ;;  %v312_v38 = vld [vmem:[%s6326_s1 + $0x3c0] sm:$0xff] }
  0x44   : > { %v313_v39 = vld [vmem:[%s6326_s1 + $0x3c8] sm:$0xff]  ;;  %v314_v40 = vld [vmem:[%s6326_s1 + $0x3d0] sm:$0xff]  ;;  %1527 = vst.msk [vmem:[#allocation2 + $0x1a0] sm:$0xff] %vm4869_vm2, %v4501_v27  ;;  %v4503_v41 = vpack.c.bf16 %v557_v28, %v556_v24  ;;  %v4504_v42 = vpack.c.bf16 %v559_v30, %v558_v29  ;;  %v563_v43 = vmax.f32 %v307_v25, 0.0  ;;  %v564_v44 = vmax.f32 %v308_v26, 0.0  ;;  %v315_v45 = vld [vmem:[%s6326_s1 + $0x3d8] sm:$0xff] }
  0x45   : > { %v316_v46 = vld [vmem:[%s6326_s1 + $0x3e0] sm:$0xff]  ;;  %1528 = vst.msk [vmem:[#allocation2 + $0x1a8] sm:$0xff] %vm4869_vm2, %v4502_v34  ;;  %v4505_v47 = vpack.c.bf16 %v561_v36, %v560_v35  ;;  %v565_v48 = vmax.f32 %v309_v31, 0.0  ;;  %v566_v49 = vmax.f32 %v310_v32, 0.0  ;;  %v567_v50 = vmax.f32 %v311_v33, 0.0  ;;  %v317_v51 = vld [vmem:[%s6326_s1 + $0x3e8] sm:$0xff] }
  0x46   : > { %v318_v52 = vld [vmem:[%s6326_s1 + $0x3f0] sm:$0xff]  ;;  %v319_v53 = vld [vmem:[%s6326_s1 + $0x3f8] sm:$0xff]  ;;  %1529 = vst.msk [vmem:[#allocation2 + $0x1b0] sm:$0xff] %vm4869_vm2, %v4503_v41  ;;  %1530 = vst.msk [vmem:[#allocation2 + $0x1b8] sm:$0xff] %vm4869_vm2, %v4504_v42  ;;  %v4506_v54 = vpack.c.bf16 %v563_v43, %v562_v37  ;;  %v568_v55 = vmax.f32 %v312_v38, 0.0  ;;  %v569_v56 = vmax.f32 %v313_v39, 0.0 }
  0x47   : > { %v570_v57 = vmax.f32 %v314_v40, 0.0  ;;  %v320_v58 = vld [vmem:[%s6326_s1 + $0x400] sm:$0xff]  ;;  %v321_v59 = vld [vmem:[%s6326_s1 + $0x408] sm:$0xff]  ;;  %v322_v60 = vld [vmem:[%s6326_s1 + $0x410] sm:$0xff]  ;;  %1531 = vst.msk [vmem:[#allocation2 + $0x1c0] sm:$0xff] %vm4869_vm2, %v4505_v47  ;;  %v4507_v61 = vpack.c.bf16 %v565_v48, %v564_v44  ;;  %v4508_v62 = vpack.c.bf16 %v567_v50, %v566_v49  ;;  %v571_v63 = vmax.f32 %v315_v45, 0.0 }
  0x48   : > { %v572_v0 = vmax.f32 %v316_v46, 0.0  ;;  %v323_v1 = vld [vmem:[%s6326_s1 + $0x418] sm:$0xff]  ;;  %v324_v2 = vld [vmem:[%s6326_s1 + $0x420] sm:$0xff]  ;;  %1532 = vst.msk [vmem:[#allocation2 + $0x1c8] sm:$0xff] %vm4869_vm2, %v4506_v54  ;;  %v4509_v3 = vpack.c.bf16 %v569_v56, %v568_v55  ;;  %v573_v4 = vmax.f32 %v317_v51, 0.0  ;;  %v574_v6 = vmax.f32 %v318_v52, 0.0 }
  0x49   : > { %v575_v7 = vmax.f32 %v319_v53, 0.0  ;;  %v325_v8 = vld [vmem:[%s6326_s1 + $0x428] sm:$0xff]  ;;  %v326_v9 = vld [vmem:[%s6326_s1 + $0x430] sm:$0xff]  ;;  %v327_v10 = vld [vmem:[%s6326_s1 + $0x438] sm:$0xff]  ;;  %1533 = vst.msk [vmem:[#allocation2 + $0x1d0] sm:$0xff] %vm4869_vm2, %v4507_v61  ;;  %v4510_v11 = vpack.c.bf16 %v571_v63, %v570_v57  ;;  %v576_v12 = vmax.f32 %v320_v58, 0.0 }
  0x4a   : > { %1534 = vst.msk [vmem:[#allocation2 + $0x1d8] sm:$0xff] %vm4869_vm2, %v4508_v62  ;;  %v577_v13 = vmax.f32 %v321_v59, 0.0  ;;  %v578_v14 = vmax.f32 %v322_v60, 0.0  ;;  %v328_v15 = vld [vmem:[%s6326_s1 + $0x440] sm:$0xff]  ;;  %v329_v16 = vld [vmem:[%s6326_s1 + $0x448] sm:$0xff]  ;;  %v330_v17 = vld [vmem:[%s6326_s1 + $0x450] sm:$0xff]  ;;  %v4511_v18 = vpack.c.bf16 %v573_v4, %v572_v0 }
  0x4b   : > { %1535 = vst.msk [vmem:[#allocation2 + $0x1e0] sm:$0xff] %vm4869_vm2, %v4509_v3  ;;  %v4512_v19 = vpack.c.bf16 %v575_v7, %v574_v6  ;;  %v579_v20 = vmax.f32 %v323_v1, 0.0  ;;  %v580_v21 = vmax.f32 %v324_v2, 0.0  ;;  %v331_v22 = vld [vmem:[%s6326_s1 + $0x458] sm:$0xff]  ;;  %v332_v23 = vld [vmem:[%s6326_s1 + $0x460] sm:$0xff]  ;;  %1536 = vst.msk [vmem:[#allocation2 + $0x1e8] sm:$0xff] %vm4869_vm2, %v4510_v11 }
  0x4c   : > { %v4513_v24 = vpack.c.bf16 %v577_v13, %v576_v12  ;;  %v581_v25 = vmax.f32 %v325_v8, 0.0  ;;  %v582_v26 = vmax.f32 %v326_v9, 0.0  ;;  %v583_v27 = vmax.f32 %v327_v10, 0.0  ;;  %v333_v28 = vld [vmem:[%s6326_s1 + $0x468] sm:$0xff]  ;;  %v334_v29 = vld [vmem:[%s6326_s1 + $0x470] sm:$0xff]  ;;  %v335_v30 = vld [vmem:[%s6326_s1 + $0x478] sm:$0xff] }
  0x4d   : > { %1537 = vst.msk [vmem:[#allocation2 + $0x1f0] sm:$0xff] %vm4869_vm2, %v4511_v18  ;;  %1538 = vst.msk [vmem:[#allocation2 + $0x1f8] sm:$0xff] %vm4869_vm2, %v4512_v19  ;;  %v4514_v31 = vpack.c.bf16 %v579_v20, %v578_v14  ;;  %v584_v32 = vmax.f32 %v328_v15, 0.0  ;;  %v585_v33 = vmax.f32 %v329_v16, 0.0  ;;  %v586_v34 = vmax.f32 %v330_v17, 0.0  ;;  %v336_v35 = vld [vmem:[%s6326_s1 + $0x480] sm:$0xff] }
  0x4e   : > { %v337_v36 = vld [vmem:[%s6326_s1 + $0x488] sm:$0xff]  ;;  %v338_v37 = vld [vmem:[%s6326_s1 + $0x490] sm:$0xff]  ;;  %1539 = vst.msk [vmem:[#allocation2 + $0x200] sm:$0xff] %vm4869_vm2, %v4513_v24  ;;  %v4515_v38 = vpack.c.bf16 %v581_v25, %v580_v21  ;;  %v4516_v39 = vpack.c.bf16 %v583_v27, %v582_v26  ;;  %v587_v40 = vmax.f32 %v331_v22, 0.0  ;;  %v588_v41 = vmax.f32 %v332_v23, 0.0  ;;  %v339_v42 = vld [vmem:[%s6326_s1 + $0x498] sm:$0xff] }
  0x4f   : > { %v340_v43 = vld [vmem:[%s6326_s1 + $0x4a0] sm:$0xff]  ;;  %1540 = vst.msk [vmem:[#allocation2 + $0x208] sm:$0xff] %vm4869_vm2, %v4514_v31  ;;  %v4517_v44 = vpack.c.bf16 %v585_v33, %v584_v32  ;;  %v589_v45 = vmax.f32 %v333_v28, 0.0  ;;  %v590_v46 = vmax.f32 %v334_v29, 0.0  ;;  %v591_v47 = vmax.f32 %v335_v30, 0.0  ;;  %v341_v48 = vld [vmem:[%s6326_s1 + $0x4a8] sm:$0xff] }
  0x50   : > { %v342_v49 = vld [vmem:[%s6326_s1 + $0x4b0] sm:$0xff]  ;;  %v343_v50 = vld [vmem:[%s6326_s1 + $0x4b8] sm:$0xff]  ;;  %1541 = vst.msk [vmem:[#allocation2 + $0x210] sm:$0xff] %vm4869_vm2, %v4515_v38  ;;  %1542 = vst.msk [vmem:[#allocation2 + $0x218] sm:$0xff] %vm4869_vm2, %v4516_v39  ;;  %v4518_v51 = vpack.c.bf16 %v587_v40, %v586_v34  ;;  %v592_v52 = vmax.f32 %v336_v35, 0.0  ;;  %v593_v53 = vmax.f32 %v337_v36, 0.0 }
  0x51   : > { %v594_v54 = vmax.f32 %v338_v37, 0.0  ;;  %v344_v55 = vld [vmem:[%s6326_s1 + $0x4c0] sm:$0xff]  ;;  %v345_v56 = vld [vmem:[%s6326_s1 + $0x4c8] sm:$0xff]  ;;  %v346_v57 = vld [vmem:[%s6326_s1 + $0x4d0] sm:$0xff]  ;;  %1543 = vst.msk [vmem:[#allocation2 + $0x220] sm:$0xff] %vm4869_vm2, %v4517_v44  ;;  %v4519_v58 = vpack.c.bf16 %v589_v45, %v588_v41  ;;  %v4520_v59 = vpack.c.bf16 %v591_v47, %v590_v46  ;;  %v595_v60 = vmax.f32 %v339_v42, 0.0 }
  0x52   : > { %v596_v61 = vmax.f32 %v340_v43, 0.0  ;;  %v347_v62 = vld [vmem:[%s6326_s1 + $0x4d8] sm:$0xff]  ;;  %v348_v63 = vld [vmem:[%s6326_s1 + $0x4e0] sm:$0xff]  ;;  %1544 = vst.msk [vmem:[#allocation2 + $0x228] sm:$0xff] %vm4869_vm2, %v4518_v51  ;;  %v4521_v0 = vpack.c.bf16 %v593_v53, %v592_v52  ;;  %v597_v1 = vmax.f32 %v341_v48, 0.0  ;;  %v598_v2 = vmax.f32 %v342_v49, 0.0 }
  0x53   : > { %v599_v3 = vmax.f32 %v343_v50, 0.0  ;;  %v349_v4 = vld [vmem:[%s6326_s1 + $0x4e8] sm:$0xff]  ;;  %v350_v6 = vld [vmem:[%s6326_s1 + $0x4f0] sm:$0xff]  ;;  %v351_v7 = vld [vmem:[%s6326_s1 + $0x4f8] sm:$0xff]  ;;  %1545 = vst.msk [vmem:[#allocation2 + $0x230] sm:$0xff] %vm4869_vm2, %v4519_v58  ;;  %v4522_v8 = vpack.c.bf16 %v595_v60, %v594_v54  ;;  %v600_v9 = vmax.f32 %v344_v55, 0.0 }
  0x54   : > { %1546 = vst.msk [vmem:[#allocation2 + $0x238] sm:$0xff] %vm4869_vm2, %v4520_v59  ;;  %v601_v10 = vmax.f32 %v345_v56, 0.0  ;;  %v602_v11 = vmax.f32 %v346_v57, 0.0  ;;  %v352_v12 = vld [vmem:[%s6326_s1 + $0x500] sm:$0xff]  ;;  %v353_v13 = vld [vmem:[%s6326_s1 + $0x508] sm:$0xff]  ;;  %v354_v14 = vld [vmem:[%s6326_s1 + $0x510] sm:$0xff]  ;;  %v4523_v15 = vpack.c.bf16 %v597_v1, %v596_v61 }
  0x55   : > { %1547 = vst.msk [vmem:[#allocation2 + $0x240] sm:$0xff] %vm4869_vm2, %v4521_v0  ;;  %v4524_v16 = vpack.c.bf16 %v599_v3, %v598_v2  ;;  %v603_v17 = vmax.f32 %v347_v62, 0.0  ;;  %v604_v18 = vmax.f32 %v348_v63, 0.0  ;;  %v355_v19 = vld [vmem:[%s6326_s1 + $0x518] sm:$0xff]  ;;  %v356_v20 = vld [vmem:[%s6326_s1 + $0x520] sm:$0xff]  ;;  %1548 = vst.msk [vmem:[#allocation2 + $0x248] sm:$0xff] %vm4869_vm2, %v4522_v8 }
  0x56   : > { %v4525_v21 = vpack.c.bf16 %v601_v10, %v600_v9  ;;  %v605_v22 = vmax.f32 %v349_v4, 0.0  ;;  %v606_v23 = vmax.f32 %v350_v6, 0.0  ;;  %v607_v24 = vmax.f32 %v351_v7, 0.0  ;;  %v357_v25 = vld [vmem:[%s6326_s1 + $0x528] sm:$0xff]  ;;  %v358_v26 = vld [vmem:[%s6326_s1 + $0x530] sm:$0xff]  ;;  %v359_v27 = vld [vmem:[%s6326_s1 + $0x538] sm:$0xff] }
  0x57   : > { %1549 = vst.msk [vmem:[#allocation2 + $0x250] sm:$0xff] %vm4869_vm2, %v4523_v15  ;;  %1550 = vst.msk [vmem:[#allocation2 + $0x258] sm:$0xff] %vm4869_vm2, %v4524_v16  ;;  %v4526_v28 = vpack.c.bf16 %v603_v17, %v602_v11  ;;  %v608_v29 = vmax.f32 %v352_v12, 0.0  ;;  %v609_v30 = vmax.f32 %v353_v13, 0.0  ;;  %v610_v31 = vmax.f32 %v354_v14, 0.0  ;;  %v360_v32 = vld [vmem:[%s6326_s1 + $0x540] sm:$0xff] }
  0x58   : > { %v361_v33 = vld [vmem:[%s6326_s1 + $0x548] sm:$0xff]  ;;  %v362_v34 = vld [vmem:[%s6326_s1 + $0x550] sm:$0xff]  ;;  %1551 = vst.msk [vmem:[#allocation2 + $0x260] sm:$0xff] %vm4869_vm2, %v4525_v21  ;;  %v4527_v35 = vpack.c.bf16 %v605_v22, %v604_v18  ;;  %v4528_v36 = vpack.c.bf16 %v607_v24, %v606_v23  ;;  %v611_v37 = vmax.f32 %v355_v19, 0.0  ;;  %v612_v38 = vmax.f32 %v356_v20, 0.0  ;;  %v363_v39 = vld [vmem:[%s6326_s1 + $0x558] sm:$0xff] }
  0x59   : > { %v364_v40 = vld [vmem:[%s6326_s1 + $0x560] sm:$0xff]  ;;  %1552 = vst.msk [vmem:[#allocation2 + $0x268] sm:$0xff] %vm4869_vm2, %v4526_v28  ;;  %v4529_v41 = vpack.c.bf16 %v609_v30, %v608_v29  ;;  %v613_v42 = vmax.f32 %v357_v25, 0.0  ;;  %v614_v43 = vmax.f32 %v358_v26, 0.0  ;;  %v615_v44 = vmax.f32 %v359_v27, 0.0  ;;  %v365_v45 = vld [vmem:[%s6326_s1 + $0x568] sm:$0xff] }
  0x5a   : > { %v366_v46 = vld [vmem:[%s6326_s1 + $0x570] sm:$0xff]  ;;  %v367_v47 = vld [vmem:[%s6326_s1 + $0x578] sm:$0xff]  ;;  %1553 = vst.msk [vmem:[#allocation2 + $0x270] sm:$0xff] %vm4869_vm2, %v4527_v35  ;;  %1554 = vst.msk [vmem:[#allocation2 + $0x278] sm:$0xff] %vm4869_vm2, %v4528_v36  ;;  %v4530_v48 = vpack.c.bf16 %v611_v37, %v610_v31  ;;  %v616_v49 = vmax.f32 %v360_v32, 0.0  ;;  %v617_v50 = vmax.f32 %v361_v33, 0.0 }
  0x5b   : > { %v618_v51 = vmax.f32 %v362_v34, 0.0  ;;  %v368_v52 = vld [vmem:[%s6326_s1 + $0x580] sm:$0xff]  ;;  %v369_v53 = vld [vmem:[%s6326_s1 + $0x588] sm:$0xff]  ;;  %v370_v54 = vld [vmem:[%s6326_s1 + $0x590] sm:$0xff]  ;;  %1555 = vst.msk [vmem:[#allocation2 + $0x280] sm:$0xff] %vm4869_vm2, %v4529_v41  ;;  %v4531_v55 = vpack.c.bf16 %v613_v42, %v612_v38  ;;  %v4532_v56 = vpack.c.bf16 %v615_v44, %v614_v43  ;;  %v619_v57 = vmax.f32 %v363_v39, 0.0 }
  0x5c   : > { %v620_v58 = vmax.f32 %v364_v40, 0.0  ;;  %v371_v59 = vld [vmem:[%s6326_s1 + $0x598] sm:$0xff]  ;;  %v372_v60 = vld [vmem:[%s6326_s1 + $0x5a0] sm:$0xff]  ;;  %1556 = vst.msk [vmem:[#allocation2 + $0x288] sm:$0xff] %vm4869_vm2, %v4530_v48  ;;  %v4533_v61 = vpack.c.bf16 %v617_v50, %v616_v49  ;;  %v621_v62 = vmax.f32 %v365_v45, 0.0  ;;  %v622_v63 = vmax.f32 %v366_v46, 0.0 }
  0x5d   : > { %v623_v0 = vmax.f32 %v367_v47, 0.0  ;;  %v373_v1 = vld [vmem:[%s6326_s1 + $0x5a8] sm:$0xff]  ;;  %v374_v2 = vld [vmem:[%s6326_s1 + $0x5b0] sm:$0xff]  ;;  %v375_v3 = vld [vmem:[%s6326_s1 + $0x5b8] sm:$0xff]  ;;  %1557 = vst.msk [vmem:[#allocation2 + $0x290] sm:$0xff] %vm4869_vm2, %v4531_v55  ;;  %v4534_v4 = vpack.c.bf16 %v619_v57, %v618_v51  ;;  %v624_v6 = vmax.f32 %v368_v52, 0.0 }
  0x5e   : > { %1558 = vst.msk [vmem:[#allocation2 + $0x298] sm:$0xff] %vm4869_vm2, %v4532_v56  ;;  %v625_v7 = vmax.f32 %v369_v53, 0.0  ;;  %v626_v8 = vmax.f32 %v370_v54, 0.0  ;;  %v376_v9 = vld [vmem:[%s6326_s1 + $0x5c0] sm:$0xff]  ;;  %v377_v10 = vld [vmem:[%s6326_s1 + $0x5c8] sm:$0xff]  ;;  %v378_v11 = vld [vmem:[%s6326_s1 + $0x5d0] sm:$0xff]  ;;  %v4535_v12 = vpack.c.bf16 %v621_v62, %v620_v58 }
  0x5f   : > { %1559 = vst.msk [vmem:[#allocation2 + $0x2a0] sm:$0xff] %vm4869_vm2, %v4533_v61  ;;  %v4536_v13 = vpack.c.bf16 %v623_v0, %v622_v63  ;;  %v627_v14 = vmax.f32 %v371_v59, 0.0  ;;  %v628_v15 = vmax.f32 %v372_v60, 0.0  ;;  %v379_v16 = vld [vmem:[%s6326_s1 + $0x5d8] sm:$0xff]  ;;  %v380_v17 = vld [vmem:[%s6326_s1 + $0x5e0] sm:$0xff]  ;;  %1560 = vst.msk [vmem:[#allocation2 + $0x2a8] sm:$0xff] %vm4869_vm2, %v4534_v4 }
  0x60   : > { %v4537_v18 = vpack.c.bf16 %v625_v7, %v624_v6  ;;  %v629_v19 = vmax.f32 %v373_v1, 0.0  ;;  %v630_v20 = vmax.f32 %v374_v2, 0.0  ;;  %v631_v21 = vmax.f32 %v375_v3, 0.0  ;;  %v381_v22 = vld [vmem:[%s6326_s1 + $0x5e8] sm:$0xff]  ;;  %v382_v23 = vld [vmem:[%s6326_s1 + $0x5f0] sm:$0xff]  ;;  %v383_v24 = vld [vmem:[%s6326_s1 + $0x5f8] sm:$0xff] }
  0x61   : > { %1561 = vst.msk [vmem:[#allocation2 + $0x2b0] sm:$0xff] %vm4869_vm2, %v4535_v12  ;;  %1562 = vst.msk [vmem:[#allocation2 + $0x2b8] sm:$0xff] %vm4869_vm2, %v4536_v13  ;;  %v4538_v25 = vpack.c.bf16 %v627_v14, %v626_v8  ;;  %v632_v26 = vmax.f32 %v376_v9, 0.0  ;;  %v633_v27 = vmax.f32 %v377_v10, 0.0  ;;  %v634_v28 = vmax.f32 %v378_v11, 0.0  ;;  %v384_v29 = vld [vmem:[%s6326_s1 + $0x600] sm:$0xff] }
  0x62   : > { %v385_v30 = vld [vmem:[%s6326_s1 + $0x608] sm:$0xff]  ;;  %v386_v31 = vld [vmem:[%s6326_s1 + $0x610] sm:$0xff]  ;;  %1563 = vst.msk [vmem:[#allocation2 + $0x2c0] sm:$0xff] %vm4869_vm2, %v4537_v18  ;;  %v4539_v32 = vpack.c.bf16 %v629_v19, %v628_v15  ;;  %v4540_v33 = vpack.c.bf16 %v631_v21, %v630_v20  ;;  %v635_v34 = vmax.f32 %v379_v16, 0.0  ;;  %v636_v35 = vmax.f32 %v380_v17, 0.0  ;;  %v387_v36 = vld [vmem:[%s6326_s1 + $0x618] sm:$0xff] }
  0x63   : > { %v388_v37 = vld [vmem:[%s6326_s1 + $0x620] sm:$0xff]  ;;  %1564 = vst.msk [vmem:[#allocation2 + $0x2c8] sm:$0xff] %vm4869_vm2, %v4538_v25  ;;  %v4541_v38 = vpack.c.bf16 %v633_v27, %v632_v26  ;;  %v637_v39 = vmax.f32 %v381_v22, 0.0  ;;  %v638_v40 = vmax.f32 %v382_v23, 0.0  ;;  %v639_v41 = vmax.f32 %v383_v24, 0.0  ;;  %v389_v42 = vld [vmem:[%s6326_s1 + $0x628] sm:$0xff] }
  0x64   : > { %v390_v43 = vld [vmem:[%s6326_s1 + $0x630] sm:$0xff]  ;;  %v391_v44 = vld [vmem:[%s6326_s1 + $0x638] sm:$0xff]  ;;  %1565 = vst.msk [vmem:[#allocation2 + $0x2d0] sm:$0xff] %vm4869_vm2, %v4539_v32  ;;  %1566 = vst.msk [vmem:[#allocation2 + $0x2d8] sm:$0xff] %vm4869_vm2, %v4540_v33  ;;  %v4542_v45 = vpack.c.bf16 %v635_v34, %v634_v28  ;;  %v640_v46 = vmax.f32 %v384_v29, 0.0  ;;  %v641_v47 = vmax.f32 %v385_v30, 0.0 }
  0x65   : > { %v642_v48 = vmax.f32 %v386_v31, 0.0  ;;  %v392_v49 = vld [vmem:[%s6326_s1 + $0x640] sm:$0xff]  ;;  %v393_v50 = vld [vmem:[%s6326_s1 + $0x648] sm:$0xff]  ;;  %v394_v51 = vld [vmem:[%s6326_s1 + $0x650] sm:$0xff]  ;;  %1567 = vst.msk [vmem:[#allocation2 + $0x2e0] sm:$0xff] %vm4869_vm2, %v4541_v38  ;;  %v4543_v52 = vpack.c.bf16 %v637_v39, %v636_v35  ;;  %v4544_v53 = vpack.c.bf16 %v639_v41, %v638_v40  ;;  %v643_v54 = vmax.f32 %v387_v36, 0.0 }
  0x66   : > { %v644_v55 = vmax.f32 %v388_v37, 0.0  ;;  %v395_v56 = vld [vmem:[%s6326_s1 + $0x658] sm:$0xff]  ;;  %v396_v57 = vld [vmem:[%s6326_s1 + $0x660] sm:$0xff]  ;;  %1568 = vst.msk [vmem:[#allocation2 + $0x2e8] sm:$0xff] %vm4869_vm2, %v4542_v45  ;;  %v4545_v58 = vpack.c.bf16 %v641_v47, %v640_v46  ;;  %v645_v59 = vmax.f32 %v389_v42, 0.0  ;;  %v646_v60 = vmax.f32 %v390_v43, 0.0 }
  0x67   : > { %v647_v61 = vmax.f32 %v391_v44, 0.0  ;;  %v397_v62 = vld [vmem:[%s6326_s1 + $0x668] sm:$0xff]  ;;  %v398_v63 = vld [vmem:[%s6326_s1 + $0x670] sm:$0xff]  ;;  %v399_v0 = vld [vmem:[%s6326_s1 + $0x678] sm:$0xff]  ;;  %1569 = vst.msk [vmem:[#allocation2 + $0x2f0] sm:$0xff] %vm4869_vm2, %v4543_v52  ;;  %v4546_v1 = vpack.c.bf16 %v643_v54, %v642_v48  ;;  %v648_v2 = vmax.f32 %v392_v49, 0.0 }
  0x68   : > { %1570 = vst.msk [vmem:[#allocation2 + $0x2f8] sm:$0xff] %vm4869_vm2, %v4544_v53  ;;  %v649_v3 = vmax.f32 %v393_v50, 0.0  ;;  %v650_v4 = vmax.f32 %v394_v51, 0.0  ;;  %v400_v6 = vld [vmem:[%s6326_s1 + $0x680] sm:$0xff]  ;;  %v401_v7 = vld [vmem:[%s6326_s1 + $0x688] sm:$0xff]  ;;  %v402_v8 = vld [vmem:[%s6326_s1 + $0x690] sm:$0xff]  ;;  %v4547_v9 = vpack.c.bf16 %v645_v59, %v644_v55 }
  0x69   : > { %1571 = vst.msk [vmem:[#allocation2 + $0x300] sm:$0xff] %vm4869_vm2, %v4545_v58  ;;  %v4548_v10 = vpack.c.bf16 %v647_v61, %v646_v60  ;;  %v651_v11 = vmax.f32 %v395_v56, 0.0  ;;  %v652_v12 = vmax.f32 %v396_v57, 0.0  ;;  %v403_v13 = vld [vmem:[%s6326_s1 + $0x698] sm:$0xff]  ;;  %v404_v14 = vld [vmem:[%s6326_s1 + $0x6a0] sm:$0xff]  ;;  %1572 = vst.msk [vmem:[#allocation2 + $0x308] sm:$0xff] %vm4869_vm2, %v4546_v1 }
  0x6a   : > { %v4549_v15 = vpack.c.bf16 %v649_v3, %v648_v2  ;;  %v653_v16 = vmax.f32 %v397_v62, 0.0  ;;  %v654_v17 = vmax.f32 %v398_v63, 0.0  ;;  %v655_v18 = vmax.f32 %v399_v0, 0.0  ;;  %v405_v19 = vld [vmem:[%s6326_s1 + $0x6a8] sm:$0xff]  ;;  %v406_v20 = vld [vmem:[%s6326_s1 + $0x6b0] sm:$0xff]  ;;  %v407_v21 = vld [vmem:[%s6326_s1 + $0x6b8] sm:$0xff] }
  0x6b   : > { %1573 = vst.msk [vmem:[#allocation2 + $0x310] sm:$0xff] %vm4869_vm2, %v4547_v9  ;;  %1574 = vst.msk [vmem:[#allocation2 + $0x318] sm:$0xff] %vm4869_vm2, %v4548_v10  ;;  %v4550_v22 = vpack.c.bf16 %v651_v11, %v650_v4  ;;  %v656_v23 = vmax.f32 %v400_v6, 0.0  ;;  %v657_v24 = vmax.f32 %v401_v7, 0.0  ;;  %v658_v25 = vmax.f32 %v402_v8, 0.0  ;;  %v408_v26 = vld [vmem:[%s6326_s1 + $0x6c0] sm:$0xff] }
  0x6c   : > { %v409_v27 = vld [vmem:[%s6326_s1 + $0x6c8] sm:$0xff]  ;;  %v410_v28 = vld [vmem:[%s6326_s1 + $0x6d0] sm:$0xff]  ;;  %1575 = vst.msk [vmem:[#allocation2 + $0x320] sm:$0xff] %vm4869_vm2, %v4549_v15  ;;  %v4551_v29 = vpack.c.bf16 %v653_v16, %v652_v12  ;;  %v4552_v30 = vpack.c.bf16 %v655_v18, %v654_v17  ;;  %v659_v31 = vmax.f32 %v403_v13, 0.0  ;;  %v660_v32 = vmax.f32 %v404_v14, 0.0  ;;  %v411_v33 = vld [vmem:[%s6326_s1 + $0x6d8] sm:$0xff] }
  0x6d   : > { %v412_v34 = vld [vmem:[%s6326_s1 + $0x6e0] sm:$0xff]  ;;  %1576 = vst.msk [vmem:[#allocation2 + $0x328] sm:$0xff] %vm4869_vm2, %v4550_v22  ;;  %v4553_v35 = vpack.c.bf16 %v657_v24, %v656_v23  ;;  %v661_v36 = vmax.f32 %v405_v19, 0.0  ;;  %v662_v37 = vmax.f32 %v406_v20, 0.0  ;;  %v663_v38 = vmax.f32 %v407_v21, 0.0  ;;  %v413_v39 = vld [vmem:[%s6326_s1 + $0x6e8] sm:$0xff] }
  0x6e   : > { %v414_v40 = vld [vmem:[%s6326_s1 + $0x6f0] sm:$0xff]  ;;  %v415_v41 = vld [vmem:[%s6326_s1 + $0x6f8] sm:$0xff]  ;;  %1577 = vst.msk [vmem:[#allocation2 + $0x330] sm:$0xff] %vm4869_vm2, %v4551_v29  ;;  %1578 = vst.msk [vmem:[#allocation2 + $0x338] sm:$0xff] %vm4869_vm2, %v4552_v30  ;;  %v4554_v42 = vpack.c.bf16 %v659_v31, %v658_v25  ;;  %v664_v43 = vmax.f32 %v408_v26, 0.0  ;;  %v665_v44 = vmax.f32 %v409_v27, 0.0 }
  0x6f   : > { %v666_v45 = vmax.f32 %v410_v28, 0.0  ;;  %v416_v46 = vld [vmem:[%s6326_s1 + $0x700] sm:$0xff]  ;;  %v417_v47 = vld [vmem:[%s6326_s1 + $0x708] sm:$0xff]  ;;  %v418_v48 = vld [vmem:[%s6326_s1 + $0x710] sm:$0xff]  ;;  %1579 = vst.msk [vmem:[#allocation2 + $0x340] sm:$0xff] %vm4869_vm2, %v4553_v35  ;;  %v4555_v49 = vpack.c.bf16 %v661_v36, %v660_v32  ;;  %v4556_v50 = vpack.c.bf16 %v663_v38, %v662_v37  ;;  %v667_v51 = vmax.f32 %v411_v33, 0.0 }
  0x70   : > { %v668_v52 = vmax.f32 %v412_v34, 0.0  ;;  %v419_v53 = vld [vmem:[%s6326_s1 + $0x718] sm:$0xff]  ;;  %v420_v54 = vld [vmem:[%s6326_s1 + $0x720] sm:$0xff]  ;;  %1580 = vst.msk [vmem:[#allocation2 + $0x348] sm:$0xff] %vm4869_vm2, %v4554_v42  ;;  %v4557_v55 = vpack.c.bf16 %v665_v44, %v664_v43  ;;  %v669_v56 = vmax.f32 %v413_v39, 0.0  ;;  %v670_v57 = vmax.f32 %v414_v40, 0.0 }
  0x71   : > { %v671_v58 = vmax.f32 %v415_v41, 0.0  ;;  %v421_v59 = vld [vmem:[%s6326_s1 + $0x728] sm:$0xff]  ;;  %v422_v60 = vld [vmem:[%s6326_s1 + $0x730] sm:$0xff]  ;;  %v423_v61 = vld [vmem:[%s6326_s1 + $0x738] sm:$0xff]  ;;  %1581 = vst.msk [vmem:[#allocation2 + $0x350] sm:$0xff] %vm4869_vm2, %v4555_v49  ;;  %v4558_v62 = vpack.c.bf16 %v667_v51, %v666_v45  ;;  %v672_v63 = vmax.f32 %v416_v46, 0.0 }
  0x72   : > { %1582 = vst.msk [vmem:[#allocation2 + $0x358] sm:$0xff] %vm4869_vm2, %v4556_v50  ;;  %v673_v0 = vmax.f32 %v417_v47, 0.0  ;;  %v674_v1 = vmax.f32 %v418_v48, 0.0  ;;  %v424_v2 = vld [vmem:[%s6326_s1 + $0x740] sm:$0xff]  ;;  %v425_v3 = vld [vmem:[%s6326_s1 + $0x748] sm:$0xff]  ;;  %v426_v4 = vld [vmem:[%s6326_s1 + $0x750] sm:$0xff]  ;;  %v4559_v6 = vpack.c.bf16 %v669_v56, %v668_v52 }
  0x73   : > { %1583 = vst.msk [vmem:[#allocation2 + $0x360] sm:$0xff] %vm4869_vm2, %v4557_v55  ;;  %v4560_v7 = vpack.c.bf16 %v671_v58, %v670_v57  ;;  %v675_v8 = vmax.f32 %v419_v53, 0.0  ;;  %v676_v9 = vmax.f32 %v420_v54, 0.0  ;;  %v427_v10 = vld [vmem:[%s6326_s1 + $0x758] sm:$0xff]  ;;  %v428_v11 = vld [vmem:[%s6326_s1 + $0x760] sm:$0xff]  ;;  %1584 = vst.msk [vmem:[#allocation2 + $0x368] sm:$0xff] %vm4869_vm2, %v4558_v62 }
  0x74   : > { %v4561_v12 = vpack.c.bf16 %v673_v0, %v672_v63  ;;  %v677_v13 = vmax.f32 %v421_v59, 0.0  ;;  %v678_v14 = vmax.f32 %v422_v60, 0.0  ;;  %v679_v15 = vmax.f32 %v423_v61, 0.0  ;;  %v429_v16 = vld [vmem:[%s6326_s1 + $0x768] sm:$0xff]  ;;  %v430_v17 = vld [vmem:[%s6326_s1 + $0x770] sm:$0xff]  ;;  %v431_v18 = vld [vmem:[%s6326_s1 + $0x778] sm:$0xff] }
  0x75   : > { %1585 = vst.msk [vmem:[#allocation2 + $0x370] sm:$0xff] %vm4869_vm2, %v4559_v6  ;;  %1586 = vst.msk [vmem:[#allocation2 + $0x378] sm:$0xff] %vm4869_vm2, %v4560_v7  ;;  %v4562_v19 = vpack.c.bf16 %v675_v8, %v674_v1  ;;  %v680_v20 = vmax.f32 %v424_v2, 0.0  ;;  %v681_v21 = vmax.f32 %v425_v3, 0.0  ;;  %v682_v22 = vmax.f32 %v426_v4, 0.0  ;;  %v432_v23 = vld [vmem:[%s6326_s1 + $0x780] sm:$0xff] }
  0x76   : > { %v433_v24 = vld [vmem:[%s6326_s1 + $0x788] sm:$0xff]  ;;  %v434_v25 = vld [vmem:[%s6326_s1 + $0x790] sm:$0xff]  ;;  %1587 = vst.msk [vmem:[#allocation2 + $0x380] sm:$0xff] %vm4869_vm2, %v4561_v12  ;;  %v4563_v26 = vpack.c.bf16 %v677_v13, %v676_v9  ;;  %v4564_v27 = vpack.c.bf16 %v679_v15, %v678_v14  ;;  %v683_v28 = vmax.f32 %v427_v10, 0.0  ;;  %v684_v29 = vmax.f32 %v428_v11, 0.0  ;;  %v435_v30 = vld [vmem:[%s6326_s1 + $0x798] sm:$0xff] }
  0x77   : > { %v436_v31 = vld [vmem:[%s6326_s1 + $0x7a0] sm:$0xff]  ;;  %1588 = vst.msk [vmem:[#allocation2 + $0x388] sm:$0xff] %vm4869_vm2, %v4562_v19  ;;  %v4565_v32 = vpack.c.bf16 %v681_v21, %v680_v20  ;;  %v685_v33 = vmax.f32 %v429_v16, 0.0  ;;  %v686_v34 = vmax.f32 %v430_v17, 0.0  ;;  %v687_v35 = vmax.f32 %v431_v18, 0.0  ;;  %v437_v36 = vld [vmem:[%s6326_s1 + $0x7a8] sm:$0xff] }
  0x78   : > { %v438_v37 = vld [vmem:[%s6326_s1 + $0x7b0] sm:$0xff]  ;;  %v439_v38 = vld [vmem:[%s6326_s1 + $0x7b8] sm:$0xff]  ;;  %1589 = vst.msk [vmem:[#allocation2 + $0x390] sm:$0xff] %vm4869_vm2, %v4563_v26  ;;  %1590 = vst.msk [vmem:[#allocation2 + $0x398] sm:$0xff] %vm4869_vm2, %v4564_v27  ;;  %v4566_v39 = vpack.c.bf16 %v683_v28, %v682_v22  ;;  %v688_v40 = vmax.f32 %v432_v23, 0.0  ;;  %v689_v41 = vmax.f32 %v433_v24, 0.0 }
  0x79   : > { %v690_v42 = vmax.f32 %v434_v25, 0.0  ;;  %v440_v43 = vld [vmem:[%s6326_s1 + $0x7c0] sm:$0xff]  ;;  %v441_v44 = vld [vmem:[%s6326_s1 + $0x7c8] sm:$0xff]  ;;  %v442_v45 = vld [vmem:[%s6326_s1 + $0x7d0] sm:$0xff]  ;;  %1591 = vst.msk [vmem:[#allocation2 + $0x3a0] sm:$0xff] %vm4869_vm2, %v4565_v32  ;;  %v4567_v46 = vpack.c.bf16 %v685_v33, %v684_v29  ;;  %v4568_v47 = vpack.c.bf16 %v687_v35, %v686_v34  ;;  %v691_v48 = vmax.f32 %v435_v30, 0.0 }
  0x7a   : > { %v692_v49 = vmax.f32 %v436_v31, 0.0  ;;  %v443_v50 = vld [vmem:[%s6326_s1 + $0x7d8] sm:$0xff]  ;;  %v444_v51 = vld [vmem:[%s6326_s1 + $0x7e0] sm:$0xff]  ;;  %1592 = vst.msk [vmem:[#allocation2 + $0x3a8] sm:$0xff] %vm4869_vm2, %v4566_v39  ;;  %v4569_v52 = vpack.c.bf16 %v689_v41, %v688_v40  ;;  %v693_v53 = vmax.f32 %v437_v36, 0.0  ;;  %v694_v54 = vmax.f32 %v438_v37, 0.0 }
  0x7b   : > { %v695_v55 = vmax.f32 %v439_v38, 0.0  ;;  %v445_v56 = vld [vmem:[%s6326_s1 + $0x7e8] sm:$0xff]  ;;  %v446_v57 = vld [vmem:[%s6326_s1 + $0x7f0] sm:$0xff]  ;;  %v447_v58 = vld [vmem:[%s6326_s1 + $0x7f8] sm:$0xff]  ;;  %1593 = vst.msk [vmem:[#allocation2 + $0x3b0] sm:$0xff] %vm4869_vm2, %v4567_v46  ;;  %v4570_v59 = vpack.c.bf16 %v691_v48, %v690_v42  ;;  %v696_v60 = vmax.f32 %v440_v43, 0.0 }
  0x7c   : > { %1594 = vst.msk [vmem:[#allocation2 + $0x3b8] sm:$0xff] %vm4869_vm2, %v4568_v47  ;;  %v697_v61 = vmax.f32 %v441_v44, 0.0  ;;  %v698_v62 = vmax.f32 %v442_v45, 0.0  ;;  %1595 = vst.msk [vmem:[#allocation2 + $0x3c0] sm:$0xff] %vm4869_vm2, %v4569_v52  ;;  %v4571_v63 = vpack.c.bf16 %v693_v53, %v692_v49  ;;  %v699_v1 = vmax.f32 %v443_v50, 0.0 }
  0x7d   : > { %v4572_v0 = vpack.c.bf16 %v695_v55, %v694_v54  ;;  %v700_v2 = vmax.f32 %v444_v51, 0.0  ;;  %1596 = vst.msk [vmem:[#allocation2 + $0x3c8] sm:$0xff] %vm4869_vm2, %v4570_v59  ;;  %v701_v4 = vmax.f32 %v445_v56, 0.0  ;;  %v702_v6 = vmax.f32 %v446_v57, 0.0 }
  0x7e   : > { %v4573_v3 = vpack.c.bf16 %v697_v61, %v696_v60  ;;  %v703_v7 = vmax.f32 %v447_v58, 0.0  ;;  %1597 = vst.msk [vmem:[#allocation2 + $0x3d0] sm:$0xff] %vm4869_vm2, %v4571_v63  ;;  %v4574_v8 = vpack.c.bf16 %v699_v1, %v698_v62 }
  0x7f   : > { %1598 = vst.msk [vmem:[#allocation2 + $0x3d8] sm:$0xff] %vm4869_vm2, %v4572_v0  ;;  %v4575_v9 = vpack.c.bf16 %v701_v4, %v700_v2 }
  0x80   : > { %1599 = vst.msk [vmem:[#allocation2 + $0x3e0] sm:$0xff] %vm4869_vm2, %v4573_v3  ;;  %v4576_v10 = vpack.c.bf16 %v703_v7, %v702_v6  ;;  %1600 = vst.msk [vmem:[#allocation2 + $0x3e8] sm:$0xff] %vm4869_vm2, %v4574_v8 }
  0x81   : > { %1601 = vst.msk [vmem:[#allocation2 + $0x3f0] sm:$0xff] %vm4869_vm2, %v4575_v9 }
  0x82   : > { %1602 = vst.msk [vmem:[#allocation2 + $0x3f8] sm:$0xff] %vm4869_vm2, %v4576_v10 }
  0x83 PF: > { %v4601_v11 = vld [vmem:[#allocation2 + $0x74] ss:$8 sps:$4 sm:$0xff]   ;;  %v4605_v13 = vld [vmem:[#allocation2 + $0x70] ss:$8 sps:$4 sm:$0xff]   ;;  %v4607_v15 = vld [vmem:[#allocation2 + $0x64] ss:$8 sps:$4 sm:$0xff]  }
  0x84   : > { %v4603_v12 = vld [vmem:[#allocation2 + $0x174] ss:$8 sps:$4 sm:$0xff]   ;;  %3139 = vmatprep.subr.bf16.mxu0 %v4601_v11  ;;  %v4606_v14 = vld [vmem:[#allocation2 + $0x170] ss:$8 sps:$4 sm:$0xff]   ;;  %v4609_v16 = vld [vmem:[#allocation2 + $0x164] ss:$8 sps:$4 sm:$0xff]  }
  0x85   : > { %3332 = vmatprep.subr.bf16.mxu1 %v4603_v12  ;;  %3140 = vmatpush1.bf16.msra.mxu0 %v4605_v13  ;;  %v4611_v17 = vld [vmem:[#allocation2 + $0x60] ss:$8 sps:$4 sm:$0xff]   ;;  %v4613_v19 = vld [vmem:[#allocation2 + $0x54] ss:$8 sps:$4 sm:$0xff]   ;;  %v4617_v21 = vld [vmem:[#allocation2 + $0x50] ss:$8 sps:$4 sm:$0xff]  }
  0x86   : > { %3333 = vmatpush1.bf16.msra.mxu1 %v4606_v14  ;;  %3141 = vmatprep.subr.bf16.mxu0 %v4607_v15  ;;  %v4612_v18 = vld [vmem:[#allocation2 + $0x160] ss:$8 sps:$4 sm:$0xff]   ;;  %v4615_v20 = vld [vmem:[#allocation2 + $0x154] ss:$8 sps:$4 sm:$0xff]   ;;  %v4618_v5 = vld [vmem:[#allocation2 + $0x150] ss:$8 sps:$4 sm:$0xff]  }
  0x87   : > { %3334 = vmatprep.subr.bf16.mxu1 %v4609_v16  ;;  %v4619_v22 = vld [vmem:[#allocation2 + $0x44] ss:$8 sps:$4 sm:$0xff]   ;;  %v4623_v24 = vld [vmem:[#allocation2 + $0x40] ss:$8 sps:$4 sm:$0xff]   ;;  %v4625_v26 = vld [vmem:[#allocation2 + $0x34] ss:$8 sps:$4 sm:$0xff]  }
  0x88   : > { %v4621_v23 = vld [vmem:[#allocation2 + $0x144] ss:$8 sps:$4 sm:$0xff]   ;;  %v4624_v25 = vld [vmem:[#allocation2 + $0x140] ss:$8 sps:$4 sm:$0xff]   ;;  %v4627_v27 = vld [vmem:[#allocation2 + $0x134] ss:$8 sps:$4 sm:$0xff]  }
  0x89   : > { %3142 = vmatpush1.bf16.msra.mxu0 %v4611_v17  ;;  %v4629_v28 = vld [vmem:[#allocation2 + $0x30] ss:$8 sps:$4 sm:$0xff]   ;;  %v4631_v30 = vld [vmem:[#allocation2 + $0x24] ss:$8 sps:$4 sm:$0xff]   ;;  %v4635_v32 = vld [vmem:[#allocation2 + $0x20] ss:$8 sps:$4 sm:$0xff]  }
  0x8a   : > { %3335 = vmatpush1.bf16.msra.mxu1 %v4612_v18  ;;  %3143 = vmatprep.subr.bf16.mxu0 %v4613_v19  ;;  %v4630_v29 = vld [vmem:[#allocation2 + $0x130] ss:$8 sps:$4 sm:$0xff]   ;;  %v4633_v31 = vld [vmem:[#allocation2 + $0x124] ss:$8 sps:$4 sm:$0xff]   ;;  %v4636_v33 = vld [vmem:[#allocation2 + $0x120] ss:$8 sps:$4 sm:$0xff]  }
  0x8b   : > { %3336 = vmatprep.subr.bf16.mxu1 %v4615_v20  ;;  %v4637_v34 = vld [vmem:[#allocation2 + $0x14] ss:$8 sps:$4 sm:$0xff]   ;;  %v4641_v36 = vld [vmem:[#allocation2 + $0x10] ss:$8 sps:$4 sm:$0xff]   ;;  %v4643_v38 = vld [vmem:[#allocation2 + $0x4] ss:$8 sps:$4 sm:$0xff]  }
  0x8c   : > { %v4639_v35 = vld [vmem:[#allocation2 + $0x114] ss:$8 sps:$4 sm:$0xff]   ;;  %v4642_v37 = vld [vmem:[#allocation2 + $0x110] ss:$8 sps:$4 sm:$0xff]   ;;  %v4645_v39 = vld [vmem:[#allocation2 + $0x104] ss:$8 sps:$4 sm:$0xff]  }
  0x8d   : > { %3144 = vmatpush1.bf16.msra.mxu0 %v4617_v21  ;;  %v4647_v40 = vld [vmem:[#allocation2] ss:$8 sps:$4 sm:$0xff]   ;;  %v4649_v42 = vld [vmem:[#allocation2 + $0xf4] ss:$8 sps:$4 sm:$0xff]   ;;  %v4653_v44 = vld [vmem:[#allocation2 + $0xf0] ss:$8 sps:$4 sm:$0xff]  }
  0x8e   : > { %3337 = vmatpush1.bf16.msra.mxu1 %v4618_v5  ;;  %3145 = vmatprep.subr.bf16.mxu0 %v4619_v22  ;;  %v4648_v41 = vld [vmem:[#allocation2 + $0x100] ss:$8 sps:$4 sm:$0xff]   ;;  %v4651_v43 = vld [vmem:[#allocation2 + $0x1f4] ss:$8 sps:$4 sm:$0xff]   ;;  %v4654_v45 = vld [vmem:[#allocation2 + $0x1f0] ss:$8 sps:$4 sm:$0xff]  }
  0x8f   : > { %3338 = vmatprep.subr.bf16.mxu1 %v4621_v23  ;;  %v4655_v46 = vld [vmem:[#allocation2 + $0xe4] ss:$8 sps:$4 sm:$0xff]   ;;  %v4659_v48 = vld [vmem:[#allocation2 + $0xe0] ss:$8 sps:$4 sm:$0xff]   ;;  %v4661_v50 = vld [vmem:[#allocation2 + $0xd4] ss:$8 sps:$4 sm:$0xff]  }
  0x90   : > { %v4657_v47 = vld [vmem:[#allocation2 + $0x1e4] ss:$8 sps:$4 sm:$0xff]   ;;  %v4660_v49 = vld [vmem:[#allocation2 + $0x1e0] ss:$8 sps:$4 sm:$0xff]   ;;  %v4663_v51 = vld [vmem:[#allocation2 + $0x1d4] ss:$8 sps:$4 sm:$0xff]  }
  0x91   : > { %3146 = vmatpush1.bf16.msra.mxu0 %v4623_v24  ;;  %v4665_v52 = vld [vmem:[#allocation2 + $0xd0] ss:$8 sps:$4 sm:$0xff]   ;;  %v4667_v54 = vld [vmem:[#allocation2 + $0xc4] ss:$8 sps:$4 sm:$0xff]   ;;  %v4671_v56 = vld [vmem:[#allocation2 + $0xc0] ss:$8 sps:$4 sm:$0xff]  }
  0x92   : > { %3339 = vmatpush1.bf16.msra.mxu1 %v4624_v25  ;;  %3147 = vmatprep.subr.bf16.mxu0 %v4625_v26  ;;  %v4666_v53 = vld [vmem:[#allocation2 + $0x1d0] ss:$8 sps:$4 sm:$0xff]   ;;  %v4669_v55 = vld [vmem:[#allocation2 + $0x1c4] ss:$8 sps:$4 sm:$0xff]   ;;  %v4672_v57 = vld [vmem:[#allocation2 + $0x1c0] ss:$8 sps:$4 sm:$0xff]  }
  0x93   : > { %3340 = vmatprep.subr.bf16.mxu1 %v4627_v27  ;;  %v5889_v58 = vld [vmem:[%s4853_s18] sm:$0xff]  ;;  %v5895_v60 = vld [vmem:[%s4853_s18 + $0x8] sm:$0xff]  ;;  %v4673_v62 = vld [vmem:[#allocation2 + $0xb4] ss:$8 sps:$4 sm:$0xff]   ;;  %vm3912_vm3 = vcmask 556032  }
  0x94   : > { %v5892_v59 = vld [vmem:[%s4853_s18 + $0x20] sm:$0xff]  ;;  %v1608_v61 = vld [vmem:[%s4853_s18 + $0x28] sm:$0xff]  ;;  %v4675_v0 = vld [vmem:[#allocation2 + $0x1b4] ss:$8 sps:$4 sm:$0xff]  }
  0x95   : > { %3148 = vmatpush1.bf16.msra.mxu0 %v4629_v28  ;;  %v4190_v63 = vcombine.high %v5889_v58, %v5892_v59  ;;  %v4192_v1 = vcombine.high %v5895_v60, %v1608_v61  ;;  %v4677_v2 = vld [vmem:[#allocation2 + $0xb0] ss:$8 sps:$4 sm:$0xff]   ;;  %v4679_v4 = vld [vmem:[#allocation2 + $0xa4] ss:$8 sps:$4 sm:$0xff]   ;;  %v4683_v7 = vld [vmem:[#allocation2 + $0xa0] ss:$8 sps:$4 sm:$0xff]   ;;  %v4189_v22 = vcombine.low %v5889_v58, %v5892_v59  ;;  %v4191_v23 = vcombine.low %v5895_v60, %v1608_v61 }
  0x96   : > { %3341 = vmatpush1.bf16.msra.mxu1 %v4630_v29  ;;  %3149 = vmatprep.subr.bf16.mxu0 %v4631_v30  ;;  %v4678_v3 = vld [vmem:[#allocation2 + $0x1b0] ss:$8 sps:$4 sm:$0xff]   ;;  %v4681_v6 = vld [vmem:[#allocation2 + $0x1a4] ss:$8 sps:$4 sm:$0xff]   ;;  %v4684_v8 = vld [vmem:[#allocation2 + $0x1a0] ss:$8 sps:$4 sm:$0xff]  }
  0x97   : > { %3342 = vmatprep.subr.bf16.mxu1 %v4633_v31  ;;  %3171 = vmatprep.mubr.bf16.mxu0 %v4190_v63  ;;  %v4685_v9 = vld [vmem:[#allocation2 + $0x94] ss:$8 sps:$4 sm:$0xff]   ;;  %v4689_v11 = vld [vmem:[#allocation2 + $0x90] ss:$8 sps:$4 sm:$0xff]   ;;  %v4691_v13 = vld [vmem:[#allocation2 + $0x84] ss:$8 sps:$4 sm:$0xff]  }
  0x98   : > { %3364 = vmatprep.mubr.bf16.mxu1 %v4192_v1  ;;  %v4687_v10 = vld [vmem:[#allocation2 + $0x194] ss:$8 sps:$4 sm:$0xff]   ;;  %v4690_v12 = vld [vmem:[#allocation2 + $0x190] ss:$8 sps:$4 sm:$0xff]   ;;  %v4693_v14 = vld [vmem:[#allocation2 + $0x184] ss:$8 sps:$4 sm:$0xff]  }
  0x99   : > { %3150 = vmatpush1.bf16.msra.mxu0 %v4635_v32  ;;  %v4695_v15 = vld [vmem:[#allocation2 + $0x80] ss:$8 sps:$4 sm:$0xff]   ;;  %v4699_v17 = vld [vmem:[#allocation2 + $0x274] ss:$8 sps:$4 sm:$0xff]   ;;  %v4697_v24 = vld [vmem:[#allocation2 + $0x270] ss:$8 sps:$4 sm:$0xff]  }
  0x9a   : > { %3343 = vmatpush1.bf16.msra.mxu1 %v4636_v33  ;;  %3151 = vmatprep.subr.bf16.mxu0 %v4637_v34  ;;  %v4696_v16 = vld [vmem:[#allocation2 + $0x180] ss:$8 sps:$4 sm:$0xff]   ;;  %v4702_v18 = vld [vmem:[#allocation2 + $0x374] ss:$8 sps:$4 sm:$0xff]   ;;  %v4700_v25 = vld [vmem:[#allocation2 + $0x370] ss:$8 sps:$4 sm:$0xff]  }
  0x9b   : > { %3344 = vmatprep.subr.bf16.mxu1 %v4639_v35  ;;  %v1611_v19 = vld [vmem:[%s4853_s18 + $0x40] sm:$0xff]  ;;  %v1612_v21 = vld [vmem:[%s4853_s18 + $0x48] sm:$0xff]  ;;  %v4721_v58 = vld [vmem:[#allocation2 + $0x230] ss:$8 sps:$4 sm:$0xff]  }
  0x9c   : > { %v1615_v20 = vld [vmem:[%s4853_s18 + $0x60] sm:$0xff]  ;;  %v1616_v5 = vld [vmem:[%s4853_s18 + $0x68] sm:$0xff]  ;;  %v4724_v59 = vld [vmem:[#allocation2 + $0x330] ss:$8 sps:$4 sm:$0xff]  }
  0x9d   : > { %3152 = vmatpush1.bf16.msra.mxu0 %v4641_v36  ;;  %v4198_v26 = vcombine.high %v1611_v19, %v1615_v20  ;;  %v4200_v27 = vcombine.high %v1612_v21, %v1616_v5  ;;  %v4703_v28 = vld [vmem:[#allocation2 + $0x260] ss:$8 sps:$4 sm:$0xff]   ;;  %v4705_v29 = vld [vmem:[#allocation2 + $0x264] ss:$8 sps:$4 sm:$0xff]   ;;  %v4711_v36 = vld [vmem:[#allocation2 + $0x254] ss:$8 sps:$4 sm:$0xff]  }
  0x9e   : > { %3345 = vmatpush1.bf16.msra.mxu1 %v4642_v37  ;;  %3153 = vmatprep.subr.bf16.mxu0 %v4643_v38  ;;  %v4706_v30 = vld [vmem:[#allocation2 + $0x360] ss:$8 sps:$4 sm:$0xff]   ;;  %v4708_v31 = vld [vmem:[#allocation2 + $0x364] ss:$8 sps:$4 sm:$0xff]   ;;  %v4714_v37 = vld [vmem:[#allocation2 + $0x354] ss:$8 sps:$4 sm:$0xff]   ;;  %v4197_v38 = vcombine.low %v1611_v19, %v1615_v20 }
  0x9f   : > { %3346 = vmatprep.subr.bf16.mxu1 %v4645_v39  ;;  %v1619_v32 = vld [vmem:[%s4853_s18 + $0x80] sm:$0xff]  ;;  %v1620_v34 = vld [vmem:[%s4853_s18 + $0x88] sm:$0xff]  ;;  %v4199_v39 = vcombine.low %v1612_v21, %v1616_v5  ;;  %v4747_v21 = vld [vmem:[#allocation2 + $0x2f4] ss:$8 sps:$4 sm:$0xff]  }
  0xa0   : > { %v1623_v33 = vld [vmem:[%s4853_s18 + $0xa0] sm:$0xff]  ;;  %v1624_v35 = vld [vmem:[%s4853_s18 + $0xa8] sm:$0xff]  ;;  %v4750_v5 = vld [vmem:[#allocation2 + $0x3f4] ss:$8 sps:$4 sm:$0xff]  }
  0xa1   : > { %3154 = vmatpush1.bf16.msra.mxu0 %v4647_v40  ;;  %v4206_v40 = vcombine.high %v1619_v32, %v1623_v33  ;;  %v4729_v60 = vld [vmem:[#allocation2 + $0x224] ss:$8 sps:$4 sm:$0xff]   ;;  %v4739_v19 = vld [vmem:[#allocation2 + $0x200] ss:$8 sps:$4 sm:$0xff]  }
  0xa2   : > { %3347 = vmatpush1.bf16.msra.mxu1 %v4648_v41  ;;  %3155 = vmatprep.subr.bf16.mxu0 %v4649_v42  ;;  %v4208_v41 = vcombine.high %v1620_v34, %v1624_v35  ;;  %v4709_v42 = vld [vmem:[#allocation2 + $0x250] ss:$8 sps:$4 sm:$0xff]   ;;  %v4732_v61 = vld [vmem:[#allocation2 + $0x324] ss:$8 sps:$4 sm:$0xff]   ;;  %v4742_v20 = vld [vmem:[#allocation2 + $0x300] ss:$8 sps:$4 sm:$0xff]  }
  0xa3   : > { %3348 = vmatprep.subr.bf16.mxu1 %v4651_v43  ;;  %v4712_v43 = vld [vmem:[#allocation2 + $0x350] ss:$8 sps:$4 sm:$0xff]   ;;  %v1639_v63 = vld [vmem:[%s4853_s18 + $0x120] sm:$0xff]  ;;  %v1640_v1 = vld [vmem:[%s4853_s18 + $0x128] sm:$0xff] }
  0xa5   : > { %3156 = vmatpush2.bf16.msra.mxu0 %v4653_v44  ;;  %v4717_v44 = vld [vmem:[#allocation2 + $0x244] ss:$8 sps:$4 sm:$0xff]  }
  0xa6   : > { %3349 = vmatpush2.bf16.msra.mxu1 %v4654_v45  ;;  %3157 = vmatprep.subr.bf16.mxu0 %v4655_v46  ;;  %v4720_v45 = vld [vmem:[#allocation2 + $0x344] ss:$8 sps:$4 sm:$0xff]  }
  0xa7   : > { %3350 = vmatprep.subr.bf16.mxu1 %v4657_v47  ;;  %v1627_v46 = vld [vmem:[%s4853_s18 + $0xc0] sm:$0xff] }
  0xa8   : > { %v1631_v47 = vld [vmem:[%s4853_s18 + $0xe0] sm:$0xff] }
  0xa9   : > { %3158 = vmatpush2.bf16.msra.mxu0 %v4659_v48  ;;  %v1628_v48 = vld [vmem:[%s4853_s18 + $0xc8] sm:$0xff] }
  0xaa   : > { %3351 = vmatpush2.bf16.msra.mxu1 %v4660_v49  ;;  %3159 = vmatprep.subr.bf16.mxu0 %v4661_v50  ;;  %v1632_v49 = vld [vmem:[%s4853_s18 + $0xe8] sm:$0xff] }
  0xab   : > { %3352 = vmatprep.subr.bf16.mxu1 %v4663_v51  ;;  %v4715_v50 = vld [vmem:[#allocation2 + $0x240] ss:$8 sps:$4 sm:$0xff]  }
  0xac   : > { %v4718_v51 = vld [vmem:[#allocation2 + $0x340] ss:$8 sps:$4 sm:$0xff]  }
  0xad   : > { %3160 = vmatpush2.bf16.msra.mxu0 %v4665_v52  ;;  %v4723_v52 = vld [vmem:[#allocation2 + $0x234] ss:$8 sps:$4 sm:$0xff]  }
  0xae   : > { %3353 = vmatpush2.bf16.msra.mxu1 %v4666_v53  ;;  %3161 = vmatprep.subr.bf16.mxu0 %v4667_v54  ;;  %v4726_v53 = vld [vmem:[#allocation2 + $0x334] ss:$8 sps:$4 sm:$0xff]   ;;  %v4205_v54 = vcombine.low %v1619_v32, %v1623_v33  ;;  %v1652_v32 = vld [vmem:[%s4853_s18 + $0x188] sm:$0xff] }
  0xaf   : > { %3354 = vmatprep.subr.bf16.mxu1 %v4669_v55  ;;  %v4207_v55 = vcombine.low %v1620_v34, %v1624_v35  ;;  %v1656_v33 = vld [vmem:[%s4853_s18 + $0x1a8] sm:$0xff] }
  0xb0   : > { %v4751_v34 = vld [vmem:[#allocation2 + $0x2e0] ss:$8 sps:$4 sm:$0xff]  }
  0xb1   : > { %3162 = vmatpush2.bf16.msra.mxu0 %v4671_v56  ;;  %v4214_v56 = vcombine.high %v1627_v46, %v1631_v47  ;;  %v4754_v35 = vld [vmem:[#allocation2 + $0x3e0] ss:$8 sps:$4 sm:$0xff]  }
  0xb2   : > { %3355 = vmatpush2.bf16.msra.mxu1 %v4672_v57  ;;  %3163 = vmatprep.subr.bf16.mxu0 %v4673_v62  ;;  %v4216_v57 = vcombine.high %v1628_v48, %v1632_v49  ;;  %v1635_v62 = vld [vmem:[%s4853_s18 + $0x100] sm:$0xff] }
  0xb3   : > { %3356 = vmatprep.subr.bf16.mxu1 %v4675_v0  ;;  %v1636_v0 = vld [vmem:[%s4853_s18 + $0x108] sm:$0xff] }
  0xb5   : > { %3164 = vmatpush2.bf16.msra.mxu0 %v4677_v2  ;;  %v4727_v2 = vld [vmem:[#allocation2 + $0x220] ss:$8 sps:$4 sm:$0xff]  }
  0xb6   : > { %3357 = vmatpush2.bf16.msra.mxu1 %v4678_v3  ;;  %3165 = vmatprep.subr.bf16.mxu0 %v4679_v4  ;;  %v4730_v3 = vld [vmem:[#allocation2 + $0x320] ss:$8 sps:$4 sm:$0xff]   ;;  %v4735_v4 = vld [vmem:[#allocation2 + $0x214] ss:$8 sps:$4 sm:$0xff]  }
  0xb7   : > { %3358 = vmatprep.subr.bf16.mxu1 %v4681_v6  ;;  %v4738_v6 = vld [vmem:[#allocation2 + $0x314] ss:$8 sps:$4 sm:$0xff]  }
  0xb9   : > { %3166 = vmatpush2.bf16.msra.mxu0 %v4683_v7  ;;  %v4213_v7 = vcombine.low %v1627_v46, %v1631_v47  ;;  %v1659_v46 = vld [vmem:[%s4853_s18 + $0x1c0] sm:$0xff] }
  0xba   : > { %3359 = vmatpush2.bf16.msra.mxu1 %v4684_v8  ;;  %3167 = vmatprep.subr.bf16.mxu0 %v4685_v9  ;;  %v4215_v8 = vcombine.low %v1628_v48, %v1632_v49  ;;  %v4222_v9 = vcombine.high %v1635_v62, %v1639_v63  ;;  %v1663_v47 = vld [vmem:[%s4853_s18 + $0x1e0] sm:$0xff]  ;;  %v1660_v48 = vld [vmem:[%s4853_s18 + $0x1c8] sm:$0xff] }
  0xbb   : > { %3360 = vmatprep.subr.bf16.mxu1 %v4687_v10  ;;  %v4224_v10 = vcombine.high %v1636_v0, %v1640_v1  ;;  %v1664_v49 = vld [vmem:[%s4853_s18 + $0x1e8] sm:$0xff] }
  0xbd   : > { %3168 = vmatpush2.bf16.msra.mxu0 %v4689_v11  ;;  %v4733_v11 = vld [vmem:[#allocation2 + $0x210] ss:$8 sps:$4 sm:$0xff]  }
  0xbe   : > { %3361 = vmatpush2.bf16.msra.mxu1 %v4690_v12  ;;  %3169 = vmatprep.subr.bf16.mxu0 %v4691_v13  ;;  %v4736_v12 = vld [vmem:[#allocation2 + $0x310] ss:$8 sps:$4 sm:$0xff]   ;;  %v4741_v13 = vld [vmem:[#allocation2 + $0x204] ss:$8 sps:$4 sm:$0xff]  }
  0xbf   : > { %3362 = vmatprep.subr.bf16.mxu1 %v4693_v14  ;;  %v4744_v14 = vld [vmem:[#allocation2 + $0x304] ss:$8 sps:$4 sm:$0xff]  }
  0xc1   : > { %3170 = vmatpush2.bf16.msra.mxu0 %v4695_v15  ;;  %v1643_v15 = vld [vmem:[%s4853_s18 + $0x140] sm:$0xff] }
  0xc2   : > { %3363 = vmatpush2.bf16.msra.mxu1 %v4696_v16  ;;  %3525 = vmatprep.subr.bf16.mxu0 %v4699_v17  ;;  %v1647_v16 = vld [vmem:[%s4853_s18 + $0x160] sm:$0xff]  ;;  %v1644_v17 = vld [vmem:[%s4853_s18 + $0x148] sm:$0xff] }
  0xc3   : > { %3718 = vmatprep.subr.bf16.mxu1 %v4702_v18  ;;  %v1648_v18 = vld [vmem:[%s4853_s18 + $0x168] sm:$0xff] }
  0xc4   : > { %3172 = vmatmul.mubr.bf16.vlgmr.msra.gmra.mxu0 %v4189_v22  ;;  %v4221_v22 = vcombine.low %v1635_v62, %v1639_v63  ;;  %v1667_v62 = vld [vmem:[%s4853_s18 + $0x200] sm:$0xff] }
  0xc5   : > { %3365 = vmatmul.mubr.bf16.vlgmr.msra.gmra.mxu1 %v4191_v23  ;;  %3526 = vmatpush1.bf16.msra.mxu0 %v4697_v24  ;;  %v4223_v23 = vcombine.low %v1636_v0, %v1640_v1  ;;  %v4230_v24 = vcombine.high %v1643_v15, %v1647_v16  ;;  %v1671_v63 = vld [vmem:[%s4853_s18 + $0x220] sm:$0xff]  ;;  %v1668_v0 = vld [vmem:[%s4853_s18 + $0x208] sm:$0xff] }
  0xc6   : > { %3719 = vmatpush1.bf16.msra.mxu1 %v4700_v25  ;;  %3181 = vmatprep.mubr.bf16.mxu0 %v4198_v26  ;;  %v4232_v25 = vcombine.high %v1644_v17, %v1648_v18  ;;  %v4745_v26 = vld [vmem:[#allocation2 + $0x2f0] ss:$8 sps:$4 sm:$0xff]   ;;  %v1672_v1 = vld [vmem:[%s4853_s18 + $0x228] sm:$0xff] }
  0xc7   : > { %3374 = vmatprep.mubr.bf16.mxu1 %v4200_v27  ;;  %3527 = vmatprep.subr.bf16.mxu0 %v4705_v29  ;;  %v4748_v27 = vld [vmem:[#allocation2 + $0x3f0] ss:$8 sps:$4 sm:$0xff]   ;;  %v4756_v29 = vld [vmem:[#allocation2 + $0x3e4] ss:$8 sps:$4 sm:$0xff]  }
  0xc8   : > { %3720 = vmatprep.subr.bf16.mxu1 %v4708_v31  ;;  %v1655_v31 = vld [vmem:[%s4853_s18 + $0x1a0] sm:$0xff] }
  0xc9   : > { %3528 = vmatpush1.bf16.msra.mxu0 %v4703_v28  ;;  %v4753_v28 = vld [vmem:[#allocation2 + $0x2e4] ss:$8 sps:$4 sm:$0xff]  }
  0xca   : > { %3721 = vmatpush1.bf16.msra.mxu1 %v4706_v30  ;;  %3529 = vmatprep.subr.bf16.mxu0 %v4711_v36  ;;  %v1651_v30 = vld [vmem:[%s4853_s18 + $0x180] sm:$0xff]  ;;  %v4759_v36 = vld [vmem:[#allocation2 + $0x2d4] ss:$8 sps:$4 sm:$0xff]  }
  0xcb   : > { %3722 = vmatprep.subr.bf16.mxu1 %v4714_v37  ;;  %v4762_v37 = vld [vmem:[#allocation2 + $0x3d4] ss:$8 sps:$4 sm:$0xff]  }
  0xcc   : > { %3182 = vmatmul.mubr.bf16.gmra.mxu0 %v4197_v38  ;;  %v4229_v38 = vcombine.low %v1643_v15, %v1647_v16  ;;  %v1675_v15 = vld [vmem:[%s4853_s18 + $0x240] sm:$0xff] }
  0xcd   : > { %3375 = vmatmul.mubr.bf16.gmra.mxu1 %v4199_v39  ;;  %3191 = vmatprep.mubr.bf16.mxu0 %v4206_v40  ;;  %v4231_v39 = vcombine.low %v1644_v17, %v1648_v18  ;;  %v4238_v40 = vcombine.high %v1651_v30, %v1655_v31  ;;  %v1679_v16 = vld [vmem:[%s4853_s18 + $0x260] sm:$0xff]  ;;  %v1676_v17 = vld [vmem:[%s4853_s18 + $0x248] sm:$0xff] }
  0xce   : > { %3384 = vmatprep.mubr.bf16.mxu1 %v4208_v41  ;;  %3530 = vmatpush1.bf16.msra.mxu0 %v4709_v42  ;;  %v4240_v41 = vcombine.high %v1652_v32, %v1656_v33  ;;  %v4757_v42 = vld [vmem:[#allocation2 + $0x2d0] ss:$8 sps:$4 sm:$0xff]   ;;  %v1680_v18 = vld [vmem:[%s4853_s18 + $0x268] sm:$0xff] }
  0xcf   : > { %3723 = vmatpush1.bf16.msra.mxu1 %v4712_v43  ;;  %3531 = vmatprep.subr.bf16.mxu0 %v4717_v44  ;;  %v4760_v43 = vld [vmem:[#allocation2 + $0x3d0] ss:$8 sps:$4 sm:$0xff]   ;;  %v4765_v44 = vld [vmem:[#allocation2 + $0x2c4] ss:$8 sps:$4 sm:$0xff]  }
  0xd0   : > { %3724 = vmatprep.subr.bf16.mxu1 %v4720_v45  ;;  %v4768_v45 = vld [vmem:[#allocation2 + $0x3c4] ss:$8 sps:$4 sm:$0xff]  }
  0xd2   : > { %3532 = vmatpush1.bf16.msra.mxu0 %v4715_v50  ;;  %v4763_v50 = vld [vmem:[#allocation2 + $0x2c0] ss:$8 sps:$4 sm:$0xff]  }
  0xd3   : > { %3725 = vmatpush1.bf16.msra.mxu1 %v4718_v51  ;;  %3533 = vmatprep.subr.bf16.mxu0 %v4723_v52  ;;  %v4766_v51 = vld [vmem:[#allocation2 + $0x3c0] ss:$8 sps:$4 sm:$0xff]   ;;  %v4771_v52 = vld [vmem:[#allocation2 + $0x2b4] ss:$8 sps:$4 sm:$0xff]  }
  0xd4   : > { %3726 = vmatprep.subr.bf16.mxu1 %v4726_v53  ;;  %3192 = vmatmul.mubr.bf16.gmra.mxu0 %v4205_v54  ;;  %v4774_v53 = vld [vmem:[#allocation2 + $0x3b4] ss:$8 sps:$4 sm:$0xff]   ;;  %v4237_v54 = vcombine.low %v1651_v30, %v1655_v31 }
  0xd5   : > { %3385 = vmatmul.mubr.bf16.gmra.mxu1 %v4207_v55  ;;  %3201 = vmatprep.mubr.bf16.mxu0 %v4214_v56  ;;  %v4239_v55 = vcombine.low %v1652_v32, %v1656_v33  ;;  %v4246_v56 = vcombine.high %v1659_v46, %v1663_v47  ;;  %v1691_v32 = vld [vmem:[%s4853_s18 + $0x2c0] sm:$0xff] }
  0xd6   : > { %3394 = vmatprep.mubr.bf16.mxu1 %v4216_v57  ;;  %3534 = vmatpush1.bf16.msra.mxu0 %v4721_v58  ;;  %v4248_v57 = vcombine.high %v1660_v48, %v1664_v49  ;;  %v4769_v58 = vld [vmem:[#allocation2 + $0x2b0] ss:$8 sps:$4 sm:$0xff]   ;;  %v1695_v33 = vld [vmem:[%s4853_s18 + $0x2e0] sm:$0xff] }
  0xd7   : > { %3727 = vmatpush1.bf16.msra.mxu1 %v4724_v59  ;;  %3535 = vmatprep.subr.bf16.mxu0 %v4729_v60  ;;  %v4772_v59 = vld [vmem:[#allocation2 + $0x3b0] ss:$8 sps:$4 sm:$0xff]   ;;  %v4777_v60 = vld [vmem:[#allocation2 + $0x2a4] ss:$8 sps:$4 sm:$0xff]  }
  0xd8   : > { %3728 = vmatprep.subr.bf16.mxu1 %v4732_v61  ;;  %v4780_v61 = vld [vmem:[#allocation2 + $0x3a4] ss:$8 sps:$4 sm:$0xff]  }
  0xda   : > { %3536 = vmatpush1.bf16.msra.mxu0 %v4727_v2  ;;  %v4775_v2 = vld [vmem:[#allocation2 + $0x2a0] ss:$8 sps:$4 sm:$0xff]  }
  0xdb   : > { %3729 = vmatpush1.bf16.msra.mxu1 %v4730_v3  ;;  %3537 = vmatprep.subr.bf16.mxu0 %v4735_v4  ;;  %v4778_v3 = vld [vmem:[#allocation2 + $0x3a0] ss:$8 sps:$4 sm:$0xff]   ;;  %v4783_v4 = vld [vmem:[#allocation2 + $0x294] ss:$8 sps:$4 sm:$0xff]  }
  0xdc   : > { %3730 = vmatprep.subr.bf16.mxu1 %v4738_v6  ;;  %3202 = vmatmul.mubr.bf16.gmra.mxu0 %v4213_v7  ;;  %v4786_v6 = vld [vmem:[#allocation2 + $0x394] ss:$8 sps:$4 sm:$0xff]   ;;  %v4245_v7 = vcombine.low %v1659_v46, %v1663_v47 }
  0xdd   : > { %3395 = vmatmul.mubr.bf16.gmra.mxu1 %v4215_v8  ;;  %3211 = vmatprep.mubr.bf16.mxu0 %v4222_v9  ;;  %v4247_v8 = vcombine.low %v1660_v48, %v1664_v49  ;;  %v4254_v9 = vcombine.high %v1667_v62, %v1671_v63  ;;  %v1707_v48 = vld [vmem:[%s4853_s18 + $0x340] sm:$0xff] }
  0xde   : > { %3404 = vmatprep.mubr.bf16.mxu1 %v4224_v10  ;;  %3538 = vmatpush1.bf16.msra.mxu0 %v4733_v11  ;;  %v4256_v10 = vcombine.high %v1668_v0, %v1672_v1  ;;  %v4781_v11 = vld [vmem:[#allocation2 + $0x290] ss:$8 sps:$4 sm:$0xff]   ;;  %v1711_v49 = vld [vmem:[%s4853_s18 + $0x360] sm:$0xff] }
  0xdf   : > { %3731 = vmatpush1.bf16.msra.mxu1 %v4736_v12  ;;  %3539 = vmatprep.subr.bf16.mxu0 %v4741_v13  ;;  %v4784_v12 = vld [vmem:[#allocation2 + $0x390] ss:$8 sps:$4 sm:$0xff]   ;;  %v4789_v13 = vld [vmem:[#allocation2 + $0x284] ss:$8 sps:$4 sm:$0xff]  }
  0xe0   : > { %3732 = vmatprep.subr.bf16.mxu1 %v4744_v14  ;;  %v4792_v14 = vld [vmem:[#allocation2 + $0x384] ss:$8 sps:$4 sm:$0xff]  }
  0xe2   : > { %3540 = vmatpush1.bf16.msra.mxu0 %v4739_v19  ;;  %v4787_v19 = vld [vmem:[#allocation2 + $0x280] ss:$8 sps:$4 sm:$0xff]  }
  0xe3   : > { %3733 = vmatpush1.bf16.msra.mxu1 %v4742_v20  ;;  %3541 = vmatprep.subr.bf16.mxu0 %v4747_v21  ;;  %v4790_v20 = vld [vmem:[#allocation2 + $0x380] ss:$8 sps:$4 sm:$0xff]   ;;  %v4253_v21 = vcombine.low %v1667_v62, %v1671_v63 }
  0xe4   : > { %3734 = vmatprep.subr.bf16.mxu1 %v4750_v5  ;;  %3212 = vmatmul.mubr.bf16.gmra.mxu0 %v4221_v22  ;;  %v4255_v5 = vcombine.low %v1668_v0, %v1672_v1  ;;  %v4262_v22 = vcombine.high %v1675_v15, %v1679_v16  ;;  %v1723_v0 = vld [vmem:[%s4853_s18 + $0x3c0] sm:$0xff] }
  0xe5   : > { %3405 = vmatmul.mubr.bf16.gmra.mxu1 %v4223_v23  ;;  %3221 = vmatprep.mubr.bf16.mxu0 %v4230_v24  ;;  %v4264_v23 = vcombine.high %v1676_v17, %v1680_v18  ;;  %v1683_v24 = vld [vmem:[%s4853_s18 + $0x280] sm:$0xff] }
  0xe6   : > { %3414 = vmatprep.mubr.bf16.mxu1 %v4232_v25  ;;  %3542 = vmatpush2.bf16.msra.mxu0 %v4745_v26  ;;  %v1687_v25 = vld [vmem:[%s4853_s18 + $0x2a0] sm:$0xff]  ;;  %v1684_v26 = vld [vmem:[%s4853_s18 + $0x288] sm:$0xff] }
  0xe7   : > { %3735 = vmatpush2.bf16.msra.mxu1 %v4748_v27  ;;  %3543 = vmatprep.subr.bf16.mxu0 %v4753_v28  ;;  %v1688_v27 = vld [vmem:[%s4853_s18 + $0x2a8] sm:$0xff]  ;;  %v4261_v28 = vcombine.low %v1675_v15, %v1679_v16  ;;  %v4270_v30 = vcombine.high %v1683_v24, %v1687_v25  ;;  %v1727_v1 = vld [vmem:[%s4853_s18 + $0x3e0] sm:$0xff] }
  0xe8   : > { %3736 = vmatprep.subr.bf16.mxu1 %v4756_v29  ;;  %v4263_v29 = vcombine.low %v1676_v17, %v1680_v18  ;;  %v4272_v31 = vcombine.high %v1684_v26, %v1688_v27  ;;  %v1613_v17 = vld [vmem:[%s4853_s18 + $0x50] sm:$0xff] }
  0xe9   : > { %v1617_v18 = vld [vmem:[%s4853_s18 + $0x70] sm:$0xff] }
  0xea   : > { %3544 = vmatpush2.bf16.msra.mxu0 %v4751_v34  ;;  %v1692_v34 = vld [vmem:[%s4853_s18 + $0x2c8] sm:$0xff] }
  0xeb   : > { %3737 = vmatpush2.bf16.msra.mxu1 %v4754_v35  ;;  %3545 = vmatprep.subr.bf16.mxu0 %v4759_v36  ;;  %v1696_v35 = vld [vmem:[%s4853_s18 + $0x2e8] sm:$0xff]  ;;  %v4269_v36 = vcombine.low %v1683_v24, %v1687_v25  ;;  %v1621_v24 = vld [vmem:[%s4853_s18 + $0x90] sm:$0xff] }
  0xec   : > { %3738 = vmatprep.subr.bf16.mxu1 %v4762_v37  ;;  %3222 = vmatmul.mubr.bf16.gmra.mxu0 %v4229_v38  ;;  %v4271_v37 = vcombine.low %v1684_v26, %v1688_v27  ;;  %v4278_v38 = vcombine.high %v1691_v32, %v1695_v33  ;;  %v1625_v25 = vld [vmem:[%s4853_s18 + $0xb0] sm:$0xff]  ;;  %v1622_v26 = vld [vmem:[%s4853_s18 + $0x98] sm:$0xff] }
  0xed   : > { %3415 = vmatmul.mubr.bf16.gmra.mxu1 %v4231_v39  ;;  %3231 = vmatprep.mubr.bf16.mxu0 %v4238_v40  ;;  %v4280_v39 = vcombine.high %v1692_v34, %v1696_v35  ;;  %v1699_v40 = vld [vmem:[%s4853_s18 + $0x300] sm:$0xff]  ;;  %v1626_v27 = vld [vmem:[%s4853_s18 + $0xb8] sm:$0xff] }
  0xee   : > { %3424 = vmatprep.mubr.bf16.mxu1 %v4240_v41  ;;  %3546 = vmatpush2.bf16.msra.mxu0 %v4757_v42  ;;  %v1703_v41 = vld [vmem:[%s4853_s18 + $0x320] sm:$0xff]  ;;  %v1700_v42 = vld [vmem:[%s4853_s18 + $0x308] sm:$0xff] }
  0xef   : > { %3739 = vmatpush2.bf16.msra.mxu1 %v4760_v43  ;;  %3547 = vmatprep.subr.bf16.mxu0 %v4765_v44  ;;  %v1704_v43 = vld [vmem:[%s4853_s18 + $0x328] sm:$0xff]  ;;  %v4277_v44 = vcombine.low %v1691_v32, %v1695_v33  ;;  %v4286_v46 = vcombine.high %v1699_v40, %v1703_v41  ;;  %v1629_v32 = vld [vmem:[%s4853_s18 + $0xd0] sm:$0xff] }
  0xf0   : > { %3740 = vmatprep.subr.bf16.mxu1 %v4768_v45  ;;  %v4279_v45 = vcombine.low %v1692_v34, %v1696_v35  ;;  %v4288_v47 = vcombine.high %v1700_v42, %v1704_v43  ;;  %v1633_v33 = vld [vmem:[%s4853_s18 + $0xf0] sm:$0xff]  ;;  %v1630_v34 = vld [vmem:[%s4853_s18 + $0xd8] sm:$0xff] }
  0xf1   : > { %v1634_v35 = vld [vmem:[%s4853_s18 + $0xf8] sm:$0xff] }
  0xf2   : > { %3548 = vmatpush2.bf16.msra.mxu0 %v4763_v50  ;;  %v1708_v50 = vld [vmem:[%s4853_s18 + $0x348] sm:$0xff] }
  0xf3   : > { %3741 = vmatpush2.bf16.msra.mxu1 %v4766_v51  ;;  %3549 = vmatprep.subr.bf16.mxu0 %v4771_v52  ;;  %v1712_v51 = vld [vmem:[%s4853_s18 + $0x368] sm:$0xff]  ;;  %v4285_v52 = vcombine.low %v1699_v40, %v1703_v41  ;;  %v1637_v40 = vld [vmem:[%s4853_s18 + $0x110] sm:$0xff] }
  0xf4   : > { %3742 = vmatprep.subr.bf16.mxu1 %v4774_v53  ;;  %3232 = vmatmul.mubr.bf16.gmra.mxu0 %v4237_v54  ;;  %v4287_v53 = vcombine.low %v1700_v42, %v1704_v43  ;;  %v4294_v54 = vcombine.high %v1707_v48, %v1711_v49  ;;  %v1641_v41 = vld [vmem:[%s4853_s18 + $0x130] sm:$0xff]  ;;  %v1638_v42 = vld [vmem:[%s4853_s18 + $0x118] sm:$0xff] }
  0xf5   : > { %3425 = vmatmul.mubr.bf16.gmra.mxu1 %v4239_v55  ;;  %3241 = vmatprep.mubr.bf16.mxu0 %v4246_v56  ;;  %v4296_v55 = vcombine.high %v1708_v50, %v1712_v51  ;;  %v1715_v56 = vld [vmem:[%s4853_s18 + $0x380] sm:$0xff]  ;;  %v1642_v43 = vld [vmem:[%s4853_s18 + $0x138] sm:$0xff] }
  0xf6   : > { %3434 = vmatprep.mubr.bf16.mxu1 %v4248_v57  ;;  %3550 = vmatpush2.bf16.msra.mxu0 %v4769_v58  ;;  %v1719_v57 = vld [vmem:[%s4853_s18 + $0x3a0] sm:$0xff]  ;;  %v1716_v58 = vld [vmem:[%s4853_s18 + $0x388] sm:$0xff] }
  0xf7   : > { %3743 = vmatpush2.bf16.msra.mxu1 %v4772_v59  ;;  %3551 = vmatprep.subr.bf16.mxu0 %v4777_v60  ;;  %v1720_v59 = vld [vmem:[%s4853_s18 + $0x3a8] sm:$0xff]  ;;  %v4293_v60 = vcombine.low %v1707_v48, %v1711_v49  ;;  %v4302_v62 = vcombine.high %v1715_v56, %v1719_v57  ;;  %v1645_v48 = vld [vmem:[%s4853_s18 + $0x150] sm:$0xff] }
  0xf8   : > { %3744 = vmatprep.subr.bf16.mxu1 %v4780_v61  ;;  %v4295_v61 = vcombine.low %v1708_v50, %v1712_v51  ;;  %v4304_v63 = vcombine.high %v1716_v58, %v1720_v59  ;;  %v1649_v49 = vld [vmem:[%s4853_s18 + $0x170] sm:$0xff]  ;;  %v1646_v50 = vld [vmem:[%s4853_s18 + $0x158] sm:$0xff] }
  0xf9   : > { %v1650_v51 = vld [vmem:[%s4853_s18 + $0x178] sm:$0xff] }
  0xfa   : > { %3552 = vmatpush2.bf16.msra.mxu0 %v4775_v2  ;;  %v1724_v2 = vld [vmem:[%s4853_s18 + $0x3c8] sm:$0xff] }
  0xfb   : > { %3745 = vmatpush2.bf16.msra.mxu1 %v4778_v3  ;;  %3553 = vmatprep.subr.bf16.mxu0 %v4783_v4  ;;  %v1728_v3 = vld [vmem:[%s4853_s18 + $0x3e8] sm:$0xff]  ;;  %v4301_v4 = vcombine.low %v1715_v56, %v1719_v57  ;;  %v1653_v56 = vld [vmem:[%s4853_s18 + $0x190] sm:$0xff] }
  0xfc   : > { %3746 = vmatprep.subr.bf16.mxu1 %v4786_v6  ;;  %3242 = vmatmul.mubr.bf16.gmra.mxu0 %v4245_v7  ;;  %v4303_v6 = vcombine.low %v1716_v58, %v1720_v59  ;;  %v4310_v7 = vcombine.high %v1723_v0, %v1727_v1  ;;  %v1657_v57 = vld [vmem:[%s4853_s18 + $0x1b0] sm:$0xff]  ;;  %v1654_v58 = vld [vmem:[%s4853_s18 + $0x198] sm:$0xff] }
  0xfd   : > { %3435 = vmatmul.mubr.bf16.gmra.mxu1 %v4247_v8  ;;  %3251 = vmatprep.mubr.bf16.mxu0 %v4254_v9  ;;  %v4312_v8 = vcombine.high %v1724_v2, %v1728_v3  ;;  %v1605_v9 = vld [vmem:[%s4853_s18 + $0x10] sm:$0xff]  ;;  %v1658_v59 = vld [vmem:[%s4853_s18 + $0x1b8] sm:$0xff] }
  0xfe   : > { %3444 = vmatprep.mubr.bf16.mxu1 %v4256_v10  ;;  %3554 = vmatpush2.bf16.msra.mxu0 %v4781_v11  ;;  %v1609_v10 = vld [vmem:[%s4853_s18 + $0x30] sm:$0xff]  ;;  %v1606_v11 = vld [vmem:[%s4853_s18 + $0x18] sm:$0xff] }
  0xff   : > { %3747 = vmatpush2.bf16.msra.mxu1 %v4784_v12  ;;  %3555 = vmatprep.subr.bf16.mxu0 %v4789_v13  ;;  %v1610_v12 = vld [vmem:[%s4853_s18 + $0x38] sm:$0xff]  ;;  %v4309_v13 = vcombine.low %v1723_v0, %v1727_v1  ;;  %v4194_v15 = vcombine.high %v1605_v9, %v1609_v10  ;;  %v1661_v0 = vld [vmem:[%s4853_s18 + $0x1d0] sm:$0xff] }
 0x100   : > { %3748 = vmatprep.subr.bf16.mxu1 %v4792_v14  ;;  %v4311_v14 = vcombine.low %v1724_v2, %v1728_v3  ;;  %v4196_v16 = vcombine.high %v1606_v11, %v1610_v12  ;;  %v1665_v1 = vld [vmem:[%s4853_s18 + $0x1f0] sm:$0xff]  ;;  %v1662_v2 = vld [vmem:[%s4853_s18 + $0x1d8] sm:$0xff] }
 0x101   : > { %v1666_v3 = vld [vmem:[%s4853_s18 + $0x1f8] sm:$0xff] }
 0x102   : > { %3556 = vmatpush2.bf16.msra.mxu0 %v4787_v19  ;;  %v1614_v19 = vld [vmem:[%s4853_s18 + $0x58] sm:$0xff] }
 0x103   : > { %3749 = vmatpush2.bf16.msra.mxu1 %v4790_v20  ;;  %v1618_v20 = vld [vmem:[%s4853_s18 + $0x78] sm:$0xff] }
 0x104   : > { %3252 = vmatmul.mubr.bf16.gmra.mxu0 %v4253_v21  ;;  %v4193_v21 = vcombine.low %v1605_v9, %v1609_v10  ;;  %v1669_v9 = vld [vmem:[%s4853_s18 + $0x210] sm:$0xff] }
 0x105   : > { %3445 = vmatmul.mubr.bf16.gmra.mxu1 %v4255_v5  ;;  %3261 = vmatprep.mubr.bf16.mxu0 %v4262_v22  ;;  %v4195_v5 = vcombine.low %v1606_v11, %v1610_v12  ;;  %v4202_v22 = vcombine.high %v1613_v17, %v1617_v18  ;;  %v1673_v10 = vld [vmem:[%s4853_s18 + $0x230] sm:$0xff]  ;;  %v1670_v11 = vld [vmem:[%s4853_s18 + $0x218] sm:$0xff] }
 0x106   : > { %3454 = vmatprep.mubr.bf16.mxu1 %v4264_v23  ;;  %v4204_v23 = vcombine.high %v1614_v19, %v1618_v20  ;;  %v1674_v12 = vld [vmem:[%s4853_s18 + $0x238] sm:$0xff] }
 0x10c   : > { %3262 = vmatmul.mubr.bf16.gmra.mxu0 %v4261_v28  ;;  %v4201_v28 = vcombine.low %v1613_v17, %v1617_v18  ;;  %v1677_v17 = vld [vmem:[%s4853_s18 + $0x250] sm:$0xff] }
 0x10d   : > { %3455 = vmatmul.mubr.bf16.gmra.mxu1 %v4263_v29  ;;  %3271 = vmatprep.mubr.bf16.mxu0 %v4270_v30  ;;  %v4203_v29 = vcombine.low %v1614_v19, %v1618_v20  ;;  %v4210_v30 = vcombine.high %v1621_v24, %v1625_v25  ;;  %v1681_v18 = vld [vmem:[%s4853_s18 + $0x270] sm:$0xff]  ;;  %v1678_v19 = vld [vmem:[%s4853_s18 + $0x258] sm:$0xff] }
 0x10e   : > { %3464 = vmatprep.mubr.bf16.mxu1 %v4272_v31  ;;  %v4212_v31 = vcombine.high %v1622_v26, %v1626_v27  ;;  %v1682_v20 = vld [vmem:[%s4853_s18 + $0x278] sm:$0xff] }
 0x114   : > { %3272 = vmatmul.mubr.bf16.gmra.mxu0 %v4269_v36  ;;  %v4209_v36 = vcombine.low %v1621_v24, %v1625_v25 }
 0x115   : > { %3465 = vmatmul.mubr.bf16.gmra.mxu1 %v4271_v37  ;;  %3281 = vmatprep.mubr.bf16.mxu0 %v4278_v38  ;;  %v4211_v37 = vcombine.low %v1622_v26, %v1626_v27  ;;  %v4218_v38 = vcombine.high %v1629_v32, %v1633_v33  ;;  %v1685_v27 = vld [vmem:[%s4853_s18 + $0x290] sm:$0xff] }
 0x116   : > { %3474 = vmatprep.mubr.bf16.mxu1 %v4280_v39  ;;  %v4220_v39 = vcombine.high %v1630_v34, %v1634_v35 }
 0x11c   : > { %3282 = vmatmul.mubr.bf16.gmra.mxu0 %v4277_v44  ;;  %v4217_v44 = vcombine.low %v1629_v32, %v1633_v33  ;;  %v1690_v32 = vld [vmem:[%s4853_s18 + $0x2b8] sm:$0xff] }
 0x11d   : > { %3475 = vmatmul.mubr.bf16.gmra.mxu1 %v4279_v45  ;;  %3291 = vmatprep.mubr.bf16.mxu0 %v4286_v46  ;;  %v4219_v45 = vcombine.low %v1630_v34, %v1634_v35  ;;  %v4226_v46 = vcombine.high %v1637_v40, %v1641_v41 }
 0x11e   : > { %3484 = vmatprep.mubr.bf16.mxu1 %v4288_v47  ;;  %v4228_v47 = vcombine.high %v1638_v42, %v1642_v43 }
 0x124   : > { %3292 = vmatmul.mubr.bf16.gmra.mxu0 %v4285_v52  ;;  %v4225_v52 = vcombine.low %v1637_v40, %v1641_v41 }
 0x125   : > { %3485 = vmatmul.mubr.bf16.gmra.mxu1 %v4287_v53  ;;  %3301 = vmatprep.mubr.bf16.mxu0 %v4294_v54  ;;  %v4227_v53 = vcombine.low %v1638_v42, %v1642_v43  ;;  %v4234_v54 = vcombine.high %v1645_v48, %v1649_v49 }
 0x126   : > { %3494 = vmatprep.mubr.bf16.mxu1 %v4296_v55  ;;  %v4236_v55 = vcombine.high %v1646_v50, %v1650_v51 }
 0x12c   : > { %3302 = vmatmul.mubr.bf16.gmra.mxu0 %v4293_v60  ;;  %v4233_v60 = vcombine.low %v1645_v48, %v1649_v49 }
 0x12d   : > { %3495 = vmatmul.mubr.bf16.gmra.mxu1 %v4295_v61  ;;  %3311 = vmatprep.mubr.bf16.mxu0 %v4302_v62  ;;  %v4235_v61 = vcombine.low %v1646_v50, %v1650_v51  ;;  %v4242_v62 = vcombine.high %v1653_v56, %v1657_v57  ;;  %v1697_v50 = vld [vmem:[%s4853_s18 + $0x2f0] sm:$0xff]  ;;  %v1694_v51 = vld [vmem:[%s4853_s18 + $0x2d8] sm:$0xff] }
 0x12e   : > { %3504 = vmatprep.mubr.bf16.mxu1 %v4304_v63  ;;  %v4244_v63 = vcombine.high %v1654_v58, %v1658_v59 }
 0x134   : > { %3312 = vmatmul.mubr.bf16.gmra.mxu0 %v4301_v4  ;;  %v4241_v4 = vcombine.low %v1653_v56, %v1657_v57 }
 0x135   : > { %3505 = vmatmul.mubr.bf16.gmra.mxu1 %v4303_v6  ;;  %3321 = vmatprep.mubr.bf16.mxu0 %v4310_v7  ;;  %v4243_v6 = vcombine.low %v1654_v58, %v1658_v59  ;;  %v4250_v7 = vcombine.high %v1661_v0, %v1665_v1 }
 0x136   : > { %3514 = vmatprep.mubr.bf16.mxu1 %v4312_v8  ;;  %v4252_v8 = vcombine.high %v1662_v2, %v1666_v3 }
 0x13c   : > { %3322 = vmatmul.mubr.bf16.gmra.mxu0 %v4309_v13  ;;  %v4249_v13 = vcombine.low %v1661_v0, %v1665_v1 }
 0x13d   : > { %3515 = vmatmul.mubr.bf16.gmra.mxu1 %v4311_v14  ;;  %3557 = vmatprep.mubr.bf16.mxu0 %v4194_v15  ;;  %v4251_v14 = vcombine.low %v1662_v2, %v1666_v3  ;;  %v4258_v15 = vcombine.high %v1669_v9, %v1673_v10  ;;  %v1701_v3 = vld [vmem:[%s4853_s18 + $0x310] sm:$0xff] }
 0x13e   : > { %3750 = vmatprep.mubr.bf16.mxu1 %v4196_v16  ;;  %v4260_v16 = vcombine.high %v1670_v11, %v1674_v12 }
 0x144   : > { %3558 = vmatmul.mubr.bf16.vlgmr.msra.gmra.mxu0 %v4193_v21  ;;  %v4257_v21 = vcombine.low %v1669_v9, %v1673_v10  ;;  %v1706_v9 = vld [vmem:[%s4853_s18 + $0x338] sm:$0xff] }
 0x145   : > { %3751 = vmatmul.mubr.bf16.vlgmr.msra.gmra.mxu1 %v4195_v5  ;;  %3567 = vmatprep.mubr.bf16.mxu0 %v4202_v22  ;;  %v4259_v5 = vcombine.low %v1670_v11, %v1674_v12  ;;  %v4266_v22 = vcombine.high %v1677_v17, %v1681_v18 }
 0x146   : > { %3760 = vmatprep.mubr.bf16.mxu1 %v4204_v23  ;;  %v4268_v23 = vcombine.high %v1678_v19, %v1682_v20 }
 0x14c   : > { %3568 = vmatmul.mubr.bf16.gmra.mxu0 %v4201_v28 }
 0x14d   : > { %3761 = vmatmul.mubr.bf16.gmra.mxu1 %v4203_v29  ;;  %3577 = vmatprep.mubr.bf16.mxu0 %v4210_v30  ;;  %v1689_v30 = vld [vmem:[%s4853_s18 + $0x2b0] sm:$0xff] }
 0x14e   : > { %3770 = vmatprep.mubr.bf16.mxu1 %v4212_v31  ;;  %v1686_v31 = vld [vmem:[%s4853_s18 + $0x298] sm:$0xff]  ;;  %v4273_v56 = vcombine.low %v1685_v27, %v1689_v30 }
 0x14f   : > { %v4276_v40 = vcombine.high %v1686_v31, %v1690_v32  ;;  %v4275_v57 = vcombine.low %v1686_v31, %v1690_v32 }
 0x154   : > { %3578 = vmatmul.mubr.bf16.gmra.mxu0 %v4209_v36  ;;  %v4265_v36 = vcombine.low %v1677_v17, %v1681_v18 }
 0x155   : > { %3771 = vmatmul.mubr.bf16.gmra.mxu1 %v4211_v37  ;;  %3587 = vmatprep.mubr.bf16.mxu0 %v4218_v38  ;;  %v4267_v37 = vcombine.low %v1678_v19, %v1682_v20 }
 0x156   : > { %3780 = vmatprep.mubr.bf16.mxu1 %v4220_v39  ;;  %v4274_v39 = vcombine.high %v1685_v27, %v1689_v30  ;;  %v1713_v27 = vld [vmem:[%s4853_s18 + $0x370] sm:$0xff] }
 0x15c   : > { %3588 = vmatmul.mubr.bf16.gmra.mxu0 %v4217_v44 }
 0x15d   : > { %3781 = vmatmul.mubr.bf16.gmra.mxu1 %v4219_v45  ;;  %3597 = vmatprep.mubr.bf16.mxu0 %v4226_v46 }
 0x15e   : > { %3790 = vmatprep.mubr.bf16.mxu1 %v4228_v47  ;;  %v1693_v47 = vld [vmem:[%s4853_s18 + $0x2d0] sm:$0xff] }
 0x15f   : > { %v4282_v59 = vcombine.high %v1693_v47, %v1697_v50 }
 0x164   : > { %3598 = vmatmul.mubr.bf16.gmra.mxu0 %v4225_v52  ;;  %v1698_v52 = vld [vmem:[%s4853_s18 + $0x2f8] sm:$0xff] }
 0x165   : > { %3791 = vmatmul.mubr.bf16.gmra.mxu1 %v4227_v53  ;;  %3607 = vmatprep.mubr.bf16.mxu0 %v4234_v54 }
 0x166   : > { %3800 = vmatprep.mubr.bf16.mxu1 %v4236_v55 }
 0x16c   : > { %3608 = vmatmul.mubr.bf16.gmra.mxu0 %v4233_v60  ;;  %v4284_v60 = vcombine.high %v1694_v51, %v1698_v52 }
 0x16d   : > { %3801 = vmatmul.mubr.bf16.gmra.mxu1 %v4235_v61  ;;  %3617 = vmatprep.mubr.bf16.mxu0 %v4242_v62 }
 0x16e   : > { %3810 = vmatprep.mubr.bf16.mxu1 %v4244_v63 }
 0x174   : > { %3618 = vmatmul.mubr.bf16.gmra.mxu0 %v4241_v4 }
 0x175   : > { %3811 = vmatmul.mubr.bf16.gmra.mxu1 %v4243_v6  ;;  %3627 = vmatprep.mubr.bf16.mxu0 %v4250_v7  ;;  %v1705_v7 = vld [vmem:[%s4853_s18 + $0x330] sm:$0xff] }
 0x176   : > { %3820 = vmatprep.mubr.bf16.mxu1 %v4252_v8  ;;  %v1702_v8 = vld [vmem:[%s4853_s18 + $0x318] sm:$0xff] }
 0x177   : > { %v4292_v17 = vcombine.high %v1702_v8, %v1706_v9 }
 0x17c   : > { %3628 = vmatmul.mubr.bf16.gmra.mxu0 %v4249_v13  ;;  %v4281_v13 = vcombine.low %v1693_v47, %v1697_v50 }
 0x17d   : > { %3821 = vmatmul.mubr.bf16.gmra.mxu1 %v4251_v14  ;;  %3637 = vmatprep.mubr.bf16.mxu0 %v4258_v15  ;;  %v4283_v14 = vcombine.low %v1694_v51, %v1698_v52  ;;  %v1721_v51 = vld [vmem:[%s4853_s18 + $0x3b0] sm:$0xff]  ;;  %v1718_v52 = vld [vmem:[%s4853_s18 + $0x398] sm:$0xff] }
 0x17e   : > { %3830 = vmatprep.mubr.bf16.mxu1 %v4260_v16  ;;  %v4290_v16 = vcombine.high %v1701_v3, %v1705_v7 }
 0x184   : > { %v3173_v24 = vpop.f32.mrf.mxu0  ;;  %3638 = vmatmul.mubr.bf16.gmra.mxu0 %v4257_v21 }
 0x185   : > { %v3366_v25 = vpop.f32.mrf.mxu1  ;;  %3831 = vmatmul.mubr.bf16.gmra.mxu1 %v4259_v5  ;;  %3647 = vmatprep.mubr.bf16.mxu0 %v4266_v22 }
 0x186   : > { %v6004_v26 = vadd.f32 %v3366_v25, %v3173_v24  ;;  %3840 = vmatprep.mubr.bf16.mxu1 %v4268_v23  ;;  %v3175_v28 = vpop.f32.mrf.mxu0  ;;  %v1709_v23 = vld [vmem:[%s4853_s18 + $0x350] sm:$0xff] }
 0x187   : > { %v3368_v29 = vpop.f32.mrf.mxu1 }
 0x188   : > { %v6010_v33 = vadd.f32 %v3368_v29, %v3175_v28  ;;  %v3177_v34 = vpop.f32.mrf.mxu0  ;;  %v1710_v28 = vld [vmem:[%s4853_s18 + $0x358] sm:$0xff] }
 0x189   : > { %v3370_v35 = vpop.f32.mrf.mxu1  ;;  %v1714_v29 = vld [vmem:[%s4853_s18 + $0x378] sm:$0xff] }
 0x18a   : > { %v6012_v38 = vadd.f32 %v3370_v35, %v3177_v34  ;;  %v3179_v41 = vpop.f32.mrf.mxu0  ;;  %v4289_v34 = vcombine.low %v1701_v3, %v1705_v7  ;;  %v4291_v35 = vcombine.low %v1702_v8, %v1706_v9  ;;  %v1725_v9 = vld [vmem:[%s4853_s18 + $0x3d0] sm:$0xff] }
 0x18b   : > { %v3372_v42 = vpop.f32.mrf.mxu1 }
 0x18c   : > { %v6014_v43 = vadd.f32 %v3372_v42, %v3179_v41  ;;  %v3183_v44 = vpop.f32.mrf.mxu0  ;;  %3648 = vmatmul.mubr.bf16.gmra.mxu0 %v4265_v36 }
 0x18d   : > { %v3376_v45 = vpop.f32.mrf.mxu1  ;;  %3841 = vmatmul.mubr.bf16.gmra.mxu1 %v4267_v37  ;;  %3657 = vmatprep.mubr.bf16.mxu0 %v4274_v39  ;;  %v4298_v37 = vcombine.high %v1709_v23, %v1713_v27  ;;  %v4300_v39 = vcombine.high %v1710_v28, %v1714_v29 }
 0x18e   : > { %v6016_v46 = vadd.f32 %v3376_v45, %v3183_v44  ;;  %3850 = vmatprep.mubr.bf16.mxu1 %v4276_v40  ;;  %v3185_v48 = vpop.f32.mrf.mxu0 }
 0x18f   : > { %v3378_v49 = vpop.f32.mrf.mxu1 }
 0x190   : > { %v6022_v53 = vadd.f32 %v3378_v49, %v3185_v48  ;;  %v3187_v54 = vpop.f32.mrf.mxu0  ;;  %v1717_v48 = vld [vmem:[%s4853_s18 + $0x390] sm:$0xff] }
 0x191   : > { %v3380_v55 = vpop.f32.mrf.mxu1 }
 0x192   : > { %v6024_v58 = vadd.f32 %v3380_v55, %v3187_v54  ;;  %v3189_v61 = vpop.f32.mrf.mxu0  ;;  %v1722_v54 = vld [vmem:[%s4853_s18 + $0x3b8] sm:$0xff] }
 0x193   : > { %v3382_v62 = vpop.f32.mrf.mxu1 }
 0x194   : > { %v6026_v63 = vadd.f32 %v3382_v62, %v3189_v61  ;;  %v3193_v0 = vpop.f32.mrf.mxu0  ;;  %3658 = vmatmul.mubr.bf16.gmra.mxu0 %v4273_v56  ;;  %v4306_v62 = vcombine.high %v1717_v48, %v1721_v51 }
 0x195   : > { %v3386_v1 = vpop.f32.mrf.mxu1  ;;  %3851 = vmatmul.mubr.bf16.gmra.mxu1 %v4275_v57  ;;  %3667 = vmatprep.mubr.bf16.mxu0 %v4282_v59  ;;  %v4297_v59 = vcombine.low %v1709_v23, %v1713_v27 }
 0x196   : > { %v6028_v2 = vadd.f32 %v3386_v1, %v3193_v0  ;;  %3860 = vmatprep.mubr.bf16.mxu1 %v4284_v60  ;;  %v3195_v4 = vpop.f32.mrf.mxu0  ;;  %v4299_v60 = vcombine.low %v1710_v28, %v1714_v29  ;;  %v4308_v0 = vcombine.high %v1718_v52, %v1722_v54 }
 0x197   : > { %v3388_v6 = vpop.f32.mrf.mxu1 }
 0x198   : > { %v6034_v10 = vadd.f32 %v3388_v6, %v3195_v4  ;;  %v3197_v11 = vpop.f32.mrf.mxu0 }
 0x199   : > { %v3390_v12 = vpop.f32.mrf.mxu1 }
 0x19a   : > { %v6036_v15 = vadd.f32 %v3390_v12, %v3197_v11  ;;  %v3199_v18 = vpop.f32.mrf.mxu0 }
 0x19b   : > { %v3392_v19 = vpop.f32.mrf.mxu1 }
 0x19c   : > { %v6038_v20 = vadd.f32 %v3392_v19, %v3199_v18  ;;  %v3203_v21 = vpop.f32.mrf.mxu0  ;;  %3668 = vmatmul.mubr.bf16.gmra.mxu0 %v4281_v13  ;;  %v1729_v13 = vld [vmem:[%s4853_s18 + $0x3f0] sm:$0xff] }
 0x19d   : > { %v3396_v5 = vpop.f32.mrf.mxu1  ;;  %3861 = vmatmul.mubr.bf16.gmra.mxu1 %v4283_v14  ;;  %3677 = vmatprep.mubr.bf16.mxu0 %v4290_v16  ;;  %v1726_v14 = vld [vmem:[%s4853_s18 + $0x3d8] sm:$0xff] }
 0x19e   : > { %v6040_v22 = vadd.f32 %v3396_v5, %v3203_v21  ;;  %3870 = vmatprep.mubr.bf16.mxu1 %v4292_v17  ;;  %v3205_v24 = vpop.f32.mrf.mxu0  ;;  %v1730_v16 = vld [vmem:[%s4853_s18 + $0x3f8] sm:$0xff]  ;;  %v4305_v21 = vcombine.low %v1717_v48, %v1721_v51  ;;  %v4307_v5 = vcombine.low %v1718_v52, %v1722_v54 }
 0x19f   : > { %v3398_v25 = vpop.f32.mrf.mxu1 }
 0x1a0   : > { %v6046_v30 = vadd.f32 %v3398_v25, %v3205_v24  ;;  %v3207_v31 = vpop.f32.mrf.mxu0  ;;  %v4314_v24 = vcombine.high %v1725_v9, %v1729_v13  ;;  %v4316_v25 = vcombine.high %v1726_v14, %v1730_v16 }
 0x1a1   : > { %v3400_v32 = vpop.f32.mrf.mxu1 }
 0x1a2   : > { %v6048_v36 = vadd.f32 %v3400_v32, %v3207_v31  ;;  %v3209_v40 = vpop.f32.mrf.mxu0 }
 0x1a3   : > { %v3402_v41 = vpop.f32.mrf.mxu1 }
 0x1a4   : > { %v6050_v42 = vadd.f32 %v3402_v41, %v3209_v40  ;;  %v3213_v44 = vpop.f32.mrf.mxu0  ;;  %3678 = vmatmul.mubr.bf16.gmra.mxu0 %v4289_v34 }
 0x1a5   : > { %v3406_v45 = vpop.f32.mrf.mxu1  ;;  %3871 = vmatmul.mubr.bf16.gmra.mxu1 %v4291_v35  ;;  %3687 = vmatprep.mubr.bf16.mxu0 %v4298_v37 }
 0x1a6   : > { %v6052_v47 = vadd.f32 %v3406_v45, %v3213_v44  ;;  %3880 = vmatprep.mubr.bf16.mxu1 %v4300_v39  ;;  %v3215_v49 = vpop.f32.mrf.mxu0  ;;  %v4313_v44 = vcombine.low %v1725_v9, %v1729_v13  ;;  %v4315_v45 = vcombine.low %v1726_v14, %v1730_v16 }
 0x1a7   : > { %v3408_v50 = vpop.f32.mrf.mxu1 }
 0x1a8   : > { %v6058_v55 = vadd.f32 %v3408_v50, %v3215_v49  ;;  %v3217_v56 = vpop.f32.mrf.mxu0 }
 0x1a9   : > { %v3410_v57 = vpop.f32.mrf.mxu1 }
 0x1aa   : > { %v6060_v61 = vadd.f32 %v3410_v57, %v3217_v56  ;;  %v3219_v1 = vpop.f32.mrf.mxu0 }
 0x1ab   : > { %v3412_v3 = vpop.f32.mrf.mxu1 }
 0x1ac   : > { %v6062_v4 = vadd.f32 %v3412_v3, %v3219_v1  ;;  %v3223_v6 = vpop.f32.mrf.mxu0  ;;  %3688 = vmatmul.mubr.bf16.gmra.mxu0 %v4297_v59 }
 0x1ad   : > { %v3416_v7 = vpop.f32.mrf.mxu1  ;;  %3881 = vmatmul.mubr.bf16.gmra.mxu1 %v4299_v60  ;;  %3697 = vmatprep.mubr.bf16.mxu0 %v4306_v62 }
 0x1ae   : > { %v6064_v8 = vadd.f32 %v3416_v7, %v3223_v6  ;;  %3890 = vmatprep.mubr.bf16.mxu1 %v4308_v0  ;;  %v3225_v11 = vpop.f32.mrf.mxu0 }
 0x1af   : > { %v3418_v12 = vpop.f32.mrf.mxu1 }
 0x1b0   : > { %v6070_v17 = vadd.f32 %v3418_v12, %v3225_v11  ;;  %v3227_v18 = vpop.f32.mrf.mxu0 }
 0x1b1   : > { %v3420_v19 = vpop.f32.mrf.mxu1 }
 0x1b2   : > { %v6072_v23 = vadd.f32 %v3420_v19, %v3227_v18  ;;  %v3229_v27 = vpop.f32.mrf.mxu0 }
 0x1b3   : > { %v3422_v28 = vpop.f32.mrf.mxu1 }
 0x1b4   : > { %v6074_v29 = vadd.f32 %v3422_v28, %v3229_v27  ;;  %v3233_v31 = vpop.f32.mrf.mxu0  ;;  %3698 = vmatmul.mubr.bf16.gmra.mxu0 %v4305_v21 }
 0x1b5   : > { %v3426_v32 = vpop.f32.mrf.mxu1  ;;  %3891 = vmatmul.mubr.bf16.gmra.mxu1 %v4307_v5  ;;  %3707 = vmatprep.mubr.bf16.mxu0 %v4314_v24 }
 0x1b6   : > { %v6076_v34 = vadd.f32 %v3426_v32, %v3233_v31  ;;  %3900 = vmatprep.mubr.bf16.mxu1 %v4316_v25  ;;  %v3235_v35 = vpop.f32.mrf.mxu0 }
 0x1b7   : > { %v3428_v37 = vpop.f32.mrf.mxu1 }
 0x1b8   : > { %v6078_v39 = vadd.f32 %v3428_v37, %v3235_v35  ;;  %v3237_v40 = vpop.f32.mrf.mxu0 }
 0x1b9   : > { %v3430_v41 = vpop.f32.mrf.mxu1 }
 0x1ba   : > { %v6080_v48 = vadd.f32 %v3430_v41, %v3237_v40  ;;  %v3239_v49 = vpop.f32.mrf.mxu0 }
 0x1bb   : > { %v3432_v50 = vpop.f32.mrf.mxu1 }
 0x1bc   : > { %v6082_v51 = vadd.f32 %v3432_v50, %v3239_v49  ;;  %v3243_v52 = vpop.f32.mrf.mxu0  ;;  %3708 = vmatmul.mubr.bf16.gmra.mxu0 %v4313_v44 }
 0x1bd   : > { %v3436_v54 = vpop.f32.mrf.mxu1  ;;  %3901 = vmatmul.mubr.bf16.gmra.mxu1 %v4315_v45 }
 0x1be   : > { %v6084_v56 = vadd.f32 %v3436_v54, %v3243_v52  ;;  %v3245_v57 = vpop.f32.mrf.mxu0 }
 0x1bf   : > { %v3438_v59 = vpop.f32.mrf.mxu1 }
 0x1c0   : > { %v6086_v60 = vadd.f32 %v3438_v59, %v3245_v57  ;;  %v3247_v62 = vpop.f32.mrf.mxu0 }
 0x1c1   : > { %v3440_v0 = vpop.f32.mrf.mxu1 }
 0x1c2   : > { %v6088_v1 = vadd.f32 %v3440_v0, %v3247_v62  ;;  %v3249_v3 = vpop.f32.mrf.mxu0 }
 0x1c3   : > { %v3442_v6 = vpop.f32.mrf.mxu1 }
 0x1c4   : > { %v6090_v7 = vadd.f32 %v3442_v6, %v3249_v3  ;;  %v3253_v9 = vpop.f32.mrf.mxu0 }
 0x1c5   : > { %v3446_v11 = vpop.f32.mrf.mxu1 }
 0x1c6   : > { %v6092_v12 = vadd.f32 %v3446_v11, %v3253_v9  ;;  %v3255_v13 = vpop.f32.mrf.mxu0 }
 0x1c7   : > { %v3448_v14 = vpop.f32.mrf.mxu1 }
 0x1c8   : > { %v6094_v16 = vadd.f32 %v3448_v14, %v3255_v13  ;;  %v3257_v18 = vpop.f32.mrf.mxu0 }
 0x1c9   : > { %v3450_v19 = vpop.f32.mrf.mxu1 }
 0x1ca   : > { %v6096_v21 = vadd.f32 %v3450_v19, %v3257_v18  ;;  %v3259_v5 = vpop.f32.mrf.mxu0 }
 0x1cb   : > { %v3452_v24 = vpop.f32.mrf.mxu1 }
 0x1cc   : > { %v6098_v25 = vadd.f32 %v3452_v24, %v3259_v5  ;;  %v3263_v27 = vpop.f32.mrf.mxu0 }
 0x1cd   : > { %v3456_v28 = vpop.f32.mrf.mxu1 }
 0x1ce   : > { %v6100_v31 = vadd.f32 %v3456_v28, %v3263_v27  ;;  %v3265_v32 = vpop.f32.mrf.mxu0 }
 0x1cf   : > { %v3458_v35 = vpop.f32.mrf.mxu1 }
 0x1d0   : > { %v6102_v37 = vadd.f32 %v3458_v35, %v3265_v32  ;;  %v3267_v40 = vpop.f32.mrf.mxu0 }
 0x1d1   : > { %v3460_v41 = vpop.f32.mrf.mxu1 }
 0x1d2   : > { %v6104_v44 = vadd.f32 %v3460_v41, %v3267_v40  ;;  %v3269_v45 = vpop.f32.mrf.mxu0 }
 0x1d3   : > { %v3462_v49 = vpop.f32.mrf.mxu1 }
 0x1d4   : > { %v6106_v50 = vadd.f32 %v3462_v49, %v3269_v45  ;;  %v3273_v52 = vpop.f32.mrf.mxu0 }
 0x1d5   : > { %v3466_v54 = vpop.f32.mrf.mxu1 }
 0x1d6   : > { %v6108_v57 = vadd.f32 %v3466_v54, %v3273_v52  ;;  %v3275_v59 = vpop.f32.mrf.mxu0 }
 0x1d7   : > { %v3468_v62 = vpop.f32.mrf.mxu1 }
 0x1d8   : > { %v6110_v0 = vadd.f32 %v3468_v62, %v3275_v59  ;;  %v3277_v3 = vpop.f32.mrf.mxu0 }
 0x1d9   : > { %v3470_v6 = vpop.f32.mrf.mxu1 }
 0x1da   : > { %v6112_v9 = vadd.f32 %v3470_v6, %v3277_v3  ;;  %v3279_v11 = vpop.f32.mrf.mxu0 }
 0x1db   : > { %v3472_v13 = vpop.f32.mrf.mxu1 }
 0x1dc   : > { %v6114_v14 = vadd.f32 %v3472_v13, %v3279_v11  ;;  %v3283_v18 = vpop.f32.mrf.mxu0 }
 0x1dd   : > { %v3476_v19 = vpop.f32.mrf.mxu1 }
 0x1de   : > { %v6116_v5 = vadd.f32 %v3476_v19, %v3283_v18  ;;  %v3285_v24 = vpop.f32.mrf.mxu0 }
 0x1df   : > { %v3478_v27 = vpop.f32.mrf.mxu1 }
 0x1e0   : > { %v6118_v28 = vadd.f32 %v3478_v27, %v3285_v24  ;;  %v3287_v32 = vpop.f32.mrf.mxu0 }
 0x1e1   : > { %v3480_v35 = vpop.f32.mrf.mxu1 }
 0x1e2   : > { %v6120_v40 = vadd.f32 %v3480_v35, %v3287_v32  ;;  %v3289_v41 = vpop.f32.mrf.mxu0 }
 0x1e3   : > { %v3482_v45 = vpop.f32.mrf.mxu1 }
 0x1e4   : > { %v6122_v49 = vadd.f32 %v3482_v45, %v3289_v41  ;;  %v3293_v52 = vpop.f32.mrf.mxu0 }
 0x1e5   : > { %v3486_v54 = vpop.f32.mrf.mxu1 }
 0x1e6   : > { %6330 = vst [vmem:[#allocation3_spill] sm:$0xff] %v6122_v49  ;;  %v6124_v59 = vadd.f32 %v3486_v54, %v3293_v52  ;;  %v3295_v62 = vpop.f32.mrf.mxu0 }
 0x1e7   : > { %v3488_v3 = vpop.f32.mrf.mxu1 }
 0x1e8   : > { %6331 = vst [vmem:[#allocation4_spill] sm:$0xff] %v6124_v59  ;;  %v6126_v6 = vadd.f32 %v3488_v3, %v3295_v62  ;;  %v3297_v11 = vpop.f32.mrf.mxu0 }
 0x1e9   : > { %v3490_v13 = vpop.f32.mrf.mxu1 }
 0x1ea   : > { %6332 = vst [vmem:[#allocation5_spill] sm:$0xff] %v6126_v6  ;;  %v6128_v18 = vadd.f32 %v3490_v13, %v3297_v11  ;;  %v3299_v19 = vpop.f32.mrf.mxu0 }
 0x1eb   : > { %v3492_v24 = vpop.f32.mrf.mxu1 }
 0x1ec   : > { %6333 = vst [vmem:[#allocation6_spill] sm:$0xff] %v6128_v18  ;;  %v6130_v27 = vadd.f32 %v3492_v24, %v3299_v19  ;;  %v3303_v32 = vpop.f32.mrf.mxu0 }
 0x1ed   : > { %v3496_v35 = vpop.f32.mrf.mxu1 }
 0x1ee   : > { %6334 = vst [vmem:[#allocation7_spill] sm:$0xff] %v6130_v27  ;;  %v6132_v41 = vadd.f32 %v3496_v35, %v3303_v32  ;;  %v3305_v45 = vpop.f32.mrf.mxu0 }
 0x1ef   : > { %v3498_v49 = vpop.f32.mrf.mxu1 }
 0x1f0   : > { %6335 = vst [vmem:[#allocation8_spill] sm:$0xff] %v6132_v41  ;;  %v6134_v52 = vadd.f32 %v3498_v49, %v3305_v45  ;;  %v3307_v54 = vpop.f32.mrf.mxu0 }
 0x1f1   : > { %v3500_v59 = vpop.f32.mrf.mxu1 }
 0x1f2   : > { %6336 = vst [vmem:[#allocation9_spill] sm:$0xff] %v6134_v52  ;;  %v6136_v62 = vadd.f32 %v3500_v59, %v3307_v54  ;;  %v3309_v3 = vpop.f32.mrf.mxu0 }
 0x1f3   : > { %v3502_v6 = vpop.f32.mrf.mxu1 }
 0x1f4   : > { %6337 = vst [vmem:[#allocation10_spill] sm:$0xff] %v6136_v62  ;;  %v6138_v11 = vadd.f32 %v3502_v6, %v3309_v3  ;;  %v3313_v13 = vpop.f32.mrf.mxu0 }
 0x1f5   : > { %v3506_v18 = vpop.f32.mrf.mxu1 }
 0x1f6   : > { %6338 = vst [vmem:[#allocation11_spill] sm:$0xff] %v6138_v11  ;;  %v6140_v19 = vadd.f32 %v3506_v18, %v3313_v13  ;;  %v3315_v24 = vpop.f32.mrf.mxu0 }
 0x1f7   : > { %v3508_v27 = vpop.f32.mrf.mxu1 }
 0x1f8   : > { %v6142_v32 = vadd.f32 %v3508_v27, %v3315_v24  ;;  %v3317_v35 = vpop.f32.mrf.mxu0 }
 0x1f9   : > { %v3510_v41 = vpop.f32.mrf.mxu1 }
 0x1fa   : > { %6339 = vst [vmem:[#allocation12_spill] sm:$0xff] %v6142_v32  ;;  %v6144_v49 = vadd.f32 %v3510_v41, %v3317_v35  ;;  %v3319_v45 = vpop.f32.mrf.mxu0 }
 0x1fb   : > { %v3512_v52 = vpop.f32.mrf.mxu1 }
 0x1fc   : > { %v6146_v59 = vadd.f32 %v3512_v52, %v3319_v45  ;;  %v3323_v54 = vpop.f32.mrf.mxu0 }
 0x1fd   : > { %v3516_v62 = vpop.f32.mrf.mxu1 }
 0x1fe   : > { %6340 = vst [vmem:[#allocation13_spill] sm:$0xff] %v6146_v59  ;;  %v6148_v6 = vadd.f32 %v3516_v62, %v3323_v54  ;;  %v3325_v3 = vpop.f32.mrf.mxu0 }
 0x1ff   : > { %v3518_v11 = vpop.f32.mrf.mxu1 }
 0x200   : > { %6341 = vst [vmem:[#allocation14_spill] sm:$0xff] %v6148_v6  ;;  %v6150_v18 = vadd.f32 %v3518_v11, %v3325_v3  ;;  %v3327_v13 = vpop.f32.mrf.mxu0 }
 0x201   : > { %v3520_v27 = vpop.f32.mrf.mxu1 }
 0x202   : > { %6342 = vst [vmem:[#allocation15_spill] sm:$0xff] %v6150_v18  ;;  %v6152_v24 = vadd.f32 %v3520_v27, %v3327_v13  ;;  %v3329_v32 = vpop.f32.mrf.mxu0 }
 0x203   : > { %v3522_v41 = vpop.f32.mrf.mxu1 }
 0x204   : > { %v6154_v35 = vadd.f32 %v3522_v41, %v3329_v32  ;;  %v3559_v52 = vpop.f32.mrf.mxu0 }
 0x205   : > { %v3752_v45 = vpop.f32.mrf.mxu1  ;;  %v3560_v59 = vadd.f32 %v3559_v52, %v6004_v26 }
 0x206   : > { %6343 = vst [vmem:[#allocation16_spill] sm:$0xff] %v6154_v35  ;;  %v3561_v62 = vpop.f32.mrf.mxu0 }
 0x207   : > { %v3754_v54 = vpop.f32.mrf.mxu1  ;;  %v3753_v6 = vadd.f32 %v3752_v45, %v3560_v59  ;;  %v3562_v11 = vadd.f32 %v3561_v62, %v6010_v33 }
 0x208   : > { %v3563_v3 = vpop.f32.mrf.mxu0 }
 0x209   : > { %v3756_v18 = vpop.f32.mrf.mxu1  ;;  %3911 = vst [vmem:[%s4858_s21] sm:$0xff] %v3753_v6  ;;  %v3755_v13 = vadd.f32 %v3754_v54, %v3562_v11  ;;  %v3564_v32 = vadd.f32 %v3563_v3, %v6012_v38 }
 0x20a   : > { %v3565_v27 = vpop.f32.mrf.mxu0 }
 0x20b   : > { %v3758_v41 = vpop.f32.mrf.mxu1  ;;  %3913 = vst.msk [vmem:[%s4858_s21 + $0x8] sm:$0xff] %vm3912_vm3, %v3755_v13  ;;  %v3757_v26 = vadd.f32 %v3756_v18, %v3564_v32  ;;  %v3566_v52 = vadd.f32 %v3565_v27, %v6014_v43 }
 0x20c   : > { %v3569_v35 = vpop.f32.mrf.mxu0 }
 0x20d   : > { %v3762_v59 = vpop.f32.mrf.mxu1  ;;  %3914 = vst [vmem:[%s4858_s21 + $0x10] sm:$0xff] %v3757_v26  ;;  %v3759_v33 = vadd.f32 %v3758_v41, %v3566_v52  ;;  %v3570_v45 = vadd.f32 %v3569_v35, %v6016_v46 }
 0x20e   : > { %v3571_v62 = vpop.f32.mrf.mxu0 }
 0x20f   : > { %v3764_v6 = vpop.f32.mrf.mxu1  ;;  %3915 = vst.msk [vmem:[%s4858_s21 + $0x18] sm:$0xff] %vm3912_vm3, %v3759_v33  ;;  %v3763_v38 = vadd.f32 %v3762_v59, %v3570_v45  ;;  %v3572_v54 = vadd.f32 %v3571_v62, %v6022_v53 }
 0x210   : > { %v3573_v11 = vpop.f32.mrf.mxu0 }
 0x211   : > { %v3766_v3 = vpop.f32.mrf.mxu1  ;;  %3916 = vst [vmem:[%s4858_s21 + $0x20] sm:$0xff] %v3763_v38  ;;  %v3765_v43 = vadd.f32 %v3764_v6, %v3572_v54  ;;  %v3574_v18 = vadd.f32 %v3573_v11, %v6024_v58 }
 0x212   : > { %v3575_v13 = vpop.f32.mrf.mxu0 }
 0x213   : > { %v3768_v32 = vpop.f32.mrf.mxu1  ;;  %3917 = vst.msk [vmem:[%s4858_s21 + $0x28] sm:$0xff] %vm3912_vm3, %v3765_v43  ;;  %v3767_v46 = vadd.f32 %v3766_v3, %v3574_v18  ;;  %v3576_v35 = vadd.f32 %v3575_v13, %v6026_v63 }
 0x214   : > { %v3579_v27 = vpop.f32.mrf.mxu0 }
 0x215   : > { %v3772_v41 = vpop.f32.mrf.mxu1  ;;  %3918 = vst [vmem:[%s4858_s21 + $0x30] sm:$0xff] %v3767_v46  ;;  %v3769_v53 = vadd.f32 %v3768_v32, %v3576_v35  ;;  %v3580_v26 = vadd.f32 %v3579_v27, %v6028_v2 }
 0x216   : > { %v3581_v52 = vpop.f32.mrf.mxu0 }
 0x217   : > { %v3774_v59 = vpop.f32.mrf.mxu1  ;;  %3919 = vst.msk [vmem:[%s4858_s21 + $0x38] sm:$0xff] %vm3912_vm3, %v3769_v53  ;;  %v3773_v58 = vadd.f32 %v3772_v41, %v3580_v26  ;;  %v3582_v33 = vadd.f32 %v3581_v52, %v6034_v10 }
 0x218   : > { %v3583_v45 = vpop.f32.mrf.mxu0 }
 0x219   : > { %v3776_v62 = vpop.f32.mrf.mxu1  ;;  %3920 = vst [vmem:[%s4858_s21 + $0x40] sm:$0xff] %v3773_v58  ;;  %v3775_v63 = vadd.f32 %v3774_v59, %v3582_v33  ;;  %v3584_v6 = vadd.f32 %v3583_v45, %v6036_v15 }
 0x21a   : > { %v3585_v38 = vpop.f32.mrf.mxu0 }
 0x21b   : > { %v3778_v54 = vpop.f32.mrf.mxu1  ;;  %3921 = vst.msk [vmem:[%s4858_s21 + $0x48] sm:$0xff] %vm3912_vm3, %v3775_v63  ;;  %v3777_v2 = vadd.f32 %v3776_v62, %v3584_v6  ;;  %v3586_v11 = vadd.f32 %v3585_v38, %v6038_v20 }
 0x21c   : > { %v3589_v3 = vpop.f32.mrf.mxu0 }
 0x21d   : > { %v3782_v43 = vpop.f32.mrf.mxu1  ;;  %3922 = vst [vmem:[%s4858_s21 + $0x50] sm:$0xff] %v3777_v2  ;;  %v3779_v10 = vadd.f32 %v3778_v54, %v3586_v11  ;;  %v3590_v18 = vadd.f32 %v3589_v3, %v6040_v22 }
 0x21e   : > { %v3591_v13 = vpop.f32.mrf.mxu0 }
 0x21f   : > { %v3784_v32 = vpop.f32.mrf.mxu1  ;;  %3923 = vst.msk [vmem:[%s4858_s21 + $0x58] sm:$0xff] %vm3912_vm3, %v3779_v10  ;;  %v3783_v15 = vadd.f32 %v3782_v43, %v3590_v18  ;;  %v3592_v46 = vadd.f32 %v3591_v13, %v6046_v30 }
 0x220   : > { %v3593_v35 = vpop.f32.mrf.mxu0 }
 0x221   : > { %v3786_v27 = vpop.f32.mrf.mxu1  ;;  %3924 = vst [vmem:[%s4858_s21 + $0x60] sm:$0xff] %v3783_v15  ;;  %v3785_v20 = vadd.f32 %v3784_v32, %v3592_v46  ;;  %v3594_v41 = vadd.f32 %v3593_v35, %v6048_v36 }
 0x222   : > { %v3595_v53 = vpop.f32.mrf.mxu0 }
 0x223   : > { %v3788_v26 = vpop.f32.mrf.mxu1  ;;  %3925 = vst.msk [vmem:[%s4858_s21 + $0x68] sm:$0xff] %vm3912_vm3, %v3785_v20  ;;  %v3787_v22 = vadd.f32 %v3786_v27, %v3594_v41  ;;  %v3596_v52 = vadd.f32 %v3595_v53, %v6050_v42 }
 0x224   : > { %v3599_v59 = vpop.f32.mrf.mxu0 }
 0x225   : > { %v3792_v58 = vpop.f32.mrf.mxu1  ;;  %3926 = vst [vmem:[%s4858_s21 + $0x70] sm:$0xff] %v3787_v22  ;;  %v3789_v30 = vadd.f32 %v3788_v26, %v3596_v52  ;;  %v3600_v33 = vadd.f32 %v3599_v59, %v6052_v47 }
 0x226   : > { %v3601_v45 = vpop.f32.mrf.mxu0 }
 0x227   : > { %v3794_v62 = vpop.f32.mrf.mxu1  ;;  %3927 = vst.msk [vmem:[%s4858_s21 + $0x78] sm:$0xff] %vm3912_vm3, %v3789_v30  ;;  %v3793_v36 = vadd.f32 %v3792_v58, %v3600_v33  ;;  %v3602_v63 = vadd.f32 %v3601_v45, %v6058_v55 }
 0x228   : > { %v3603_v6 = vpop.f32.mrf.mxu0 }
 0x229   : > { %v3796_v38 = vpop.f32.mrf.mxu1  ;;  %3928 = vst [vmem:[%s4858_s21 + $0x80] sm:$0xff] %v3793_v36  ;;  %v3795_v42 = vadd.f32 %v3794_v62, %v3602_v63  ;;  %v3604_v54 = vadd.f32 %v3603_v6, %v6060_v61 }
 0x22a   : > { %v3605_v2 = vpop.f32.mrf.mxu0 }
 0x22b   : > { %v3798_v11 = vpop.f32.mrf.mxu1  ;;  %3929 = vst.msk [vmem:[%s4858_s21 + $0x88] sm:$0xff] %vm3912_vm3, %v3795_v42  ;;  %v3797_v47 = vadd.f32 %v3796_v38, %v3604_v54  ;;  %v3606_v3 = vadd.f32 %v3605_v2, %v6062_v4 }
 0x22c   : > { %v3609_v43 = vpop.f32.mrf.mxu0 }
 0x22d   : > { %v3802_v10 = vpop.f32.mrf.mxu1  ;;  %3930 = vst [vmem:[%s4858_s21 + $0x90] sm:$0xff] %v3797_v47  ;;  %v3799_v55 = vadd.f32 %v3798_v11, %v3606_v3  ;;  %v3610_v18 = vadd.f32 %v3609_v43, %v6064_v8 }
 0x22e   : > { %v3611_v13 = vpop.f32.mrf.mxu0 }
 0x22f   : > { %v3804_v32 = vpop.f32.mrf.mxu1  ;;  %3931 = vst.msk [vmem:[%s4858_s21 + $0x98] sm:$0xff] %vm3912_vm3, %v3799_v55  ;;  %v3803_v61 = vadd.f32 %v3802_v10, %v3610_v18  ;;  %v3612_v15 = vadd.f32 %v3611_v13, %v6070_v17 }
 0x230   : > { %v3613_v46 = vpop.f32.mrf.mxu0 }
 0x231   : > { %v3806_v35 = vpop.f32.mrf.mxu1  ;;  %3932 = vst [vmem:[%s4858_s21 + $0xa0] sm:$0xff] %v3803_v61  ;;  %v3805_v4 = vadd.f32 %v3804_v32, %v3612_v15  ;;  %v3614_v27 = vadd.f32 %v3613_v46, %v6072_v23 }
 0x232   : > { %v3615_v20 = vpop.f32.mrf.mxu0 }
 0x233   : > { %v3808_v41 = vpop.f32.mrf.mxu1  ;;  %3933 = vst.msk [vmem:[%s4858_s21 + $0xa8] sm:$0xff] %vm3912_vm3, %v3805_v4  ;;  %v3807_v8 = vadd.f32 %v3806_v35, %v3614_v27  ;;  %v3616_v53 = vadd.f32 %v3615_v20, %v6074_v29 }
 0x234   : > { %v3619_v26 = vpop.f32.mrf.mxu0 }
 0x235   : > { %v3812_v22 = vpop.f32.mrf.mxu1  ;;  %3934 = vst [vmem:[%s4858_s21 + $0xb0] sm:$0xff] %v3807_v8  ;;  %v3809_v17 = vadd.f32 %v3808_v41, %v3616_v53  ;;  %v3620_v52 = vadd.f32 %v3619_v26, %v6076_v34 }
 0x236   : > { %v3621_v59 = vpop.f32.mrf.mxu0 }
 0x237   : > { %v3814_v58 = vpop.f32.mrf.mxu1  ;;  %3935 = vst.msk [vmem:[%s4858_s21 + $0xb8] sm:$0xff] %vm3912_vm3, %v3809_v17  ;;  %v3813_v23 = vadd.f32 %v3812_v22, %v3620_v52  ;;  %v3622_v30 = vadd.f32 %v3621_v59, %v6078_v39 }
 0x238   : > { %v3623_v33 = vpop.f32.mrf.mxu0 }
 0x239   : > { %v3816_v45 = vpop.f32.mrf.mxu1  ;;  %3936 = vst [vmem:[%s4858_s21 + $0xc0] sm:$0xff] %v3813_v23  ;;  %v3815_v29 = vadd.f32 %v3814_v58, %v3622_v30  ;;  %v3624_v62 = vadd.f32 %v3623_v33, %v6080_v48 }
 0x23a   : > { %v3625_v36 = vpop.f32.mrf.mxu0 }
 0x23b   : > { %v3818_v63 = vpop.f32.mrf.mxu1  ;;  %3937 = vst.msk [vmem:[%s4858_s21 + $0xc8] sm:$0xff] %vm3912_vm3, %v3815_v29  ;;  %v3817_v34 = vadd.f32 %v3816_v45, %v3624_v62  ;;  %v3626_v6 = vadd.f32 %v3625_v36, %v6082_v51 }
 0x23c   : > { %v3629_v38 = vpop.f32.mrf.mxu0 }
 0x23d   : > { %v3822_v42 = vpop.f32.mrf.mxu1  ;;  %3938 = vst [vmem:[%s4858_s21 + $0xd0] sm:$0xff] %v3817_v34  ;;  %v3819_v39 = vadd.f32 %v3818_v63, %v3626_v6  ;;  %v3630_v54 = vadd.f32 %v3629_v38, %v6084_v56 }
 0x23e   : > { %v3631_v2 = vpop.f32.mrf.mxu0 }
 0x23f   : > { %v3824_v11 = vpop.f32.mrf.mxu1  ;;  %3939 = vst.msk [vmem:[%s4858_s21 + $0xd8] sm:$0xff] %vm3912_vm3, %v3819_v39  ;;  %v3823_v48 = vadd.f32 %v3822_v42, %v3630_v54  ;;  %v3632_v47 = vadd.f32 %v3631_v2, %v6086_v60 }
 0x240   : > { %v3633_v3 = vpop.f32.mrf.mxu0 }
 0x241   : > { %v3826_v43 = vpop.f32.mrf.mxu1  ;;  %3940 = vst [vmem:[%s4858_s21 + $0xe0] sm:$0xff] %v3823_v48  ;;  %v3825_v51 = vadd.f32 %v3824_v11, %v3632_v47  ;;  %v3634_v10 = vadd.f32 %v3633_v3, %v6088_v1 }
 0x242   : > { %v3635_v55 = vpop.f32.mrf.mxu0 }
 0x243   : > { %v3828_v18 = vpop.f32.mrf.mxu1  ;;  %3941 = vst.msk [vmem:[%s4858_s21 + $0xe8] sm:$0xff] %vm3912_vm3, %v3825_v51  ;;  %v3827_v56 = vadd.f32 %v3826_v43, %v3634_v10  ;;  %v3636_v13 = vadd.f32 %v3635_v55, %v6090_v7 }
 0x244   : > { %v3639_v32 = vpop.f32.mrf.mxu0 }
 0x245   : > { %v3832_v61 = vpop.f32.mrf.mxu1  ;;  %3942 = vst [vmem:[%s4858_s21 + $0xf0] sm:$0xff] %v3827_v56  ;;  %v3829_v60 = vadd.f32 %v3828_v18, %v3636_v13  ;;  %v3640_v15 = vadd.f32 %v3639_v32, %v6092_v12 }
 0x246   : > { %v3641_v46 = vpop.f32.mrf.mxu0 }
 0x247   : > { %v3834_v35 = vpop.f32.mrf.mxu1  ;;  %3943 = vst.msk [vmem:[%s4858_s21 + $0xf8] sm:$0xff] %vm3912_vm3, %v3829_v60  ;;  %v3833_v1 = vadd.f32 %v3832_v61, %v3640_v15  ;;  %v3642_v4 = vadd.f32 %v3641_v46, %v6094_v16  ;;  %v6344_v46 = vld [vmem:[#allocation3_spill] sm:$0xff] }
 0x248   : > { %v3643_v27 = vpop.f32.mrf.mxu0 }
 0x249   : > { %v3836_v20 = vpop.f32.mrf.mxu1  ;;  %3944 = vst [vmem:[%s4858_s21 + $0x100] sm:$0xff] %v3833_v1  ;;  %v3835_v7 = vadd.f32 %v3834_v35, %v3642_v4  ;;  %v3644_v41 = vadd.f32 %v3643_v27, %v6096_v21  ;;  %v6345_v27 = vld [vmem:[#allocation4_spill] sm:$0xff] }
 0x24a   : > { %v3645_v8 = vpop.f32.mrf.mxu0 }
 0x24b   : > { %v3838_v53 = vpop.f32.mrf.mxu1  ;;  %3945 = vst.msk [vmem:[%s4858_s21 + $0x108] sm:$0xff] %vm3912_vm3, %v3835_v7  ;;  %v3837_v12 = vadd.f32 %v3836_v20, %v3644_v41  ;;  %v3646_v26 = vadd.f32 %v3645_v8, %v6098_v25  ;;  %v6346_v8 = vld [vmem:[#allocation5_spill] sm:$0xff] }
 0x24c   : > { %v3649_v22 = vpop.f32.mrf.mxu0 }
 0x24d   : > { %v3842_v17 = vpop.f32.mrf.mxu1  ;;  %3946 = vst [vmem:[%s4858_s21 + $0x110] sm:$0xff] %v3837_v12  ;;  %v3839_v16 = vadd.f32 %v3838_v53, %v3646_v26  ;;  %v3650_v52 = vadd.f32 %v3649_v22, %v6100_v31 }
 0x24e   : > { %v3651_v59 = vpop.f32.mrf.mxu0 }
 0x24f   : > { %v3844_v58 = vpop.f32.mrf.mxu1  ;;  %3947 = vst.msk [vmem:[%s4858_s21 + $0x118] sm:$0xff] %vm3912_vm3, %v3839_v16  ;;  %v3843_v21 = vadd.f32 %v3842_v17, %v3650_v52  ;;  %v3652_v23 = vadd.f32 %v3651_v59, %v6102_v37  ;;  %v6347_v17 = vld [vmem:[#allocation6_spill] sm:$0xff] }
 0x250   : > { %v3653_v30 = vpop.f32.mrf.mxu0 }
 0x251   : > { %v3846_v33 = vpop.f32.mrf.mxu1  ;;  %3948 = vst [vmem:[%s4858_s21 + $0x120] sm:$0xff] %v3843_v21  ;;  %v3845_v25 = vadd.f32 %v3844_v58, %v3652_v23  ;;  %v3654_v45 = vadd.f32 %v3653_v30, %v6104_v44  ;;  %v6348_v21 = vld [vmem:[#allocation7_spill] sm:$0xff] }
 0x252   : > { %v3655_v29 = vpop.f32.mrf.mxu0 }
 0x253   : > { %v3848_v62 = vpop.f32.mrf.mxu1  ;;  %3949 = vst.msk [vmem:[%s4858_s21 + $0x128] sm:$0xff] %vm3912_vm3, %v3845_v25  ;;  %v3847_v31 = vadd.f32 %v3846_v33, %v3654_v45  ;;  %v3656_v36 = vadd.f32 %v3655_v29, %v6106_v50  ;;  %v6349_v45 = vld [vmem:[#allocation8_spill] sm:$0xff] }
 0x254   : > { %v3659_v63 = vpop.f32.mrf.mxu0 }
 0x255   : > { %v3852_v34 = vpop.f32.mrf.mxu1  ;;  %3950 = vst [vmem:[%s4858_s21 + $0x130] sm:$0xff] %v3847_v31  ;;  %v3849_v37 = vadd.f32 %v3848_v62, %v3656_v36  ;;  %v3660_v6 = vadd.f32 %v3659_v63, %v6108_v57  ;;  %v6350_v63 = vld [vmem:[#allocation9_spill] sm:$0xff] }
 0x256   : > { %v3661_v38 = vpop.f32.mrf.mxu0 }
 0x257   : > { %v3854_v42 = vpop.f32.mrf.mxu1  ;;  %3951 = vst.msk [vmem:[%s4858_s21 + $0x138] sm:$0xff] %vm3912_vm3, %v3849_v37  ;;  %v3853_v44 = vadd.f32 %v3852_v34, %v3660_v6  ;;  %v3662_v39 = vadd.f32 %v3661_v38, %v6110_v0 }
 0x258   : > { %v3663_v54 = vpop.f32.mrf.mxu0 }
 0x259   : > { %v3856_v2 = vpop.f32.mrf.mxu1  ;;  %3952 = vst [vmem:[%s4858_s21 + $0x140] sm:$0xff] %v3853_v44  ;;  %v3855_v50 = vadd.f32 %v3854_v42, %v3662_v39  ;;  %v3664_v11 = vadd.f32 %v3663_v54, %v6112_v9  ;;  %v6351_v42 = vld [vmem:[#allocation10_spill] sm:$0xff] }
 0x25a   : > { %v3665_v48 = vpop.f32.mrf.mxu0 }
 0x25b   : > { %v3858_v47 = vpop.f32.mrf.mxu1  ;;  %3953 = vst.msk [vmem:[%s4858_s21 + $0x148] sm:$0xff] %vm3912_vm3, %v3855_v50  ;;  %v3857_v57 = vadd.f32 %v3856_v2, %v3664_v11  ;;  %v3666_v3 = vadd.f32 %v3665_v48, %v6114_v14  ;;  %v6352_v50 = vld [vmem:[#allocation11_spill] sm:$0xff] }
 0x25c   : > { %v3669_v43 = vpop.f32.mrf.mxu0 }
 0x25d   : > { %v3862_v51 = vpop.f32.mrf.mxu1  ;;  %3954 = vst [vmem:[%s4858_s21 + $0x150] sm:$0xff] %v3857_v57  ;;  %v3859_v0 = vadd.f32 %v3858_v47, %v3666_v3  ;;  %v3670_v10 = vadd.f32 %v3669_v43, %v6116_v5 }
 0x25e   : > { %v3671_v55 = vpop.f32.mrf.mxu0 }
 0x25f   : > { %v3864_v18 = vpop.f32.mrf.mxu1  ;;  %3955 = vst.msk [vmem:[%s4858_s21 + $0x158] sm:$0xff] %vm3912_vm3, %v3859_v0  ;;  %v3863_v9 = vadd.f32 %v3862_v51, %v3670_v10  ;;  %v3672_v56 = vadd.f32 %v3671_v55, %v6118_v28  ;;  %v6353_v10 = vld [vmem:[#allocation12_spill] sm:$0xff] }
 0x260   : > { %v3673_v13 = vpop.f32.mrf.mxu0 }
 0x261   : > { %v3866_v32 = vpop.f32.mrf.mxu1  ;;  %3956 = vst [vmem:[%s4858_s21 + $0x160] sm:$0xff] %v3863_v9  ;;  %v3865_v14 = vadd.f32 %v3864_v18, %v3672_v56  ;;  %v3674_v61 = vadd.f32 %v3673_v13, %v6120_v40 }
 0x262   : > { %v3675_v60 = vpop.f32.mrf.mxu0 }
 0x263   : > { %v3868_v15 = vpop.f32.mrf.mxu1  ;;  %3957 = vst.msk [vmem:[%s4858_s21 + $0x168] sm:$0xff] %vm3912_vm3, %v3865_v14  ;;  %v3867_v5 = vadd.f32 %v3866_v32, %v3674_v61  ;;  %v3676_v35 = vadd.f32 %v3675_v60, %v6344_v46  ;;  %v6354_v61 = vld [vmem:[#allocation13_spill] sm:$0xff] }
 0x264   : > { %v3679_v1 = vpop.f32.mrf.mxu0 }
 0x265   : > { %v3872_v4 = vpop.f32.mrf.mxu1  ;;  %3958 = vst [vmem:[%s4858_s21 + $0x170] sm:$0xff] %v3867_v5  ;;  %v3869_v28 = vadd.f32 %v3868_v15, %v3676_v35  ;;  %v3680_v20 = vadd.f32 %v3679_v1, %v6345_v27  ;;  %v6355_v35 = vld [vmem:[#allocation14_spill] sm:$0xff]  ;;  %v6356_v27 = vld [vmem:[#allocation15_spill] sm:$0xff] }
 0x266   : > { %v3681_v7 = vpop.f32.mrf.mxu0 }
 0x267   : > { %v3874_v41 = vpop.f32.mrf.mxu1  ;;  %3959 = vst.msk [vmem:[%s4858_s21 + $0x178] sm:$0xff] %vm3912_vm3, %v3869_v28  ;;  %v3873_v40 = vadd.f32 %v3872_v4, %v3680_v20  ;;  %v3682_v53 = vadd.f32 %v3681_v7, %v6346_v8 }
 0x268   : > { %v3683_v12 = vpop.f32.mrf.mxu0 }
 0x269   : > { %v3876_v26 = vpop.f32.mrf.mxu1  ;;  %3960 = vst [vmem:[%s4858_s21 + $0x180] sm:$0xff] %v3873_v40  ;;  %v3875_v22 = vadd.f32 %v3874_v41, %v3682_v53  ;;  %v3684_v16 = vadd.f32 %v3683_v12, %v6347_v17 }
 0x26a   : > { %v3685_v52 = vpop.f32.mrf.mxu0 }
 0x26b   : > { %v3878_v59 = vpop.f32.mrf.mxu1  ;;  %3961 = vst.msk [vmem:[%s4858_s21 + $0x188] sm:$0xff] %vm3912_vm3, %v3875_v22  ;;  %v3877_v58 = vadd.f32 %v3876_v26, %v3684_v16  ;;  %v3686_v23 = vadd.f32 %v3685_v52, %v6348_v21  ;;  %v6357_v26 = vld [vmem:[#allocation16_spill] sm:$0xff] }
 0x26c   : > { %v3689_v30 = vpop.f32.mrf.mxu0 }
 0x26d   : > { %v3882_v33 = vpop.f32.mrf.mxu1  ;;  %3962 = vst [vmem:[%s4858_s21 + $0x190] sm:$0xff] %v3877_v58  ;;  %v3879_v25 = vadd.f32 %v3878_v59, %v3686_v23  ;;  %v3690_v29 = vadd.f32 %v3689_v30, %v6349_v45 }
 0x26e   : > { %v3691_v62 = vpop.f32.mrf.mxu0 }
 0x26f   : > { %v3884_v31 = vpop.f32.mrf.mxu1  ;;  %3963 = vst.msk [vmem:[%s4858_s21 + $0x198] sm:$0xff] %vm3912_vm3, %v3879_v25  ;;  %v3883_v36 = vadd.f32 %v3882_v33, %v3690_v29  ;;  %v3692_v34 = vadd.f32 %v3691_v62, %v6350_v63 }
 0x270   : > { %v3693_v37 = vpop.f32.mrf.mxu0 }
 0x271   : > { %v3886_v6 = vpop.f32.mrf.mxu1  ;;  %3964 = vst [vmem:[%s4858_s21 + $0x1a0] sm:$0xff] %v3883_v36  ;;  %v3885_v38 = vadd.f32 %v3884_v31, %v3692_v34  ;;  %v3694_v44 = vadd.f32 %v3693_v37, %v6351_v42 }
 0x272   : > { %v3695_v39 = vpop.f32.mrf.mxu0 }
 0x273   : > { %v3888_v54 = vpop.f32.mrf.mxu1  ;;  %3965 = vst.msk [vmem:[%s4858_s21 + $0x1a8] sm:$0xff] %vm3912_vm3, %v3885_v38  ;;  %v3887_v2 = vadd.f32 %v3886_v6, %v3694_v44  ;;  %v3696_v11 = vadd.f32 %v3695_v39, %v6352_v50 }
 0x274   : > { %v3699_v48 = vpop.f32.mrf.mxu0 }
 0x275   : > { %v3892_v47 = vpop.f32.mrf.mxu1  ;;  %3966 = vst [vmem:[%s4858_s21 + $0x1b0] sm:$0xff] %v3887_v2  ;;  %v3889_v57 = vadd.f32 %v3888_v54, %v3696_v11  ;;  %v3700_v3 = vadd.f32 %v3699_v48, %v6140_v19 }
 0x276   : > { %v3701_v43 = vpop.f32.mrf.mxu0 }
 0x277   : > { %v3894_v51 = vpop.f32.mrf.mxu1  ;;  %3967 = vst.msk [vmem:[%s4858_s21 + $0x1b8] sm:$0xff] %vm3912_vm3, %v3889_v57  ;;  %v3893_v0 = vadd.f32 %v3892_v47, %v3700_v3  ;;  %v3702_v55 = vadd.f32 %v3701_v43, %v6353_v10 }
 0x278   : > { %v3703_v18 = vpop.f32.mrf.mxu0 }
 0x279   : > { %v3896_v9 = vpop.f32.mrf.mxu1  ;;  %3968 = vst [vmem:[%s4858_s21 + $0x1c0] sm:$0xff] %v3893_v0  ;;  %v3895_v56 = vadd.f32 %v3894_v51, %v3702_v55  ;;  %v3704_v13 = vadd.f32 %v3703_v18, %v6144_v49 }
 0x27a   : > { %v3705_v32 = vpop.f32.mrf.mxu0 }
 0x27b   : > { %v3898_v14 = vpop.f32.mrf.mxu1  ;;  %3969 = vst.msk [vmem:[%s4858_s21 + $0x1c8] sm:$0xff] %vm3912_vm3, %v3895_v56  ;;  %v3897_v19 = vadd.f32 %v3896_v9, %v3704_v13  ;;  %v3706_v60 = vadd.f32 %v3705_v32, %v6354_v61 }
 0x27c   : > { %v3709_v15 = vpop.f32.mrf.mxu0 }
 0x27d   : > { %v3902_v5 = vpop.f32.mrf.mxu1  ;;  %3970 = vst [vmem:[%s4858_s21 + $0x1d0] sm:$0xff] %v3897_v19  ;;  %v3899_v46 = vadd.f32 %v3898_v14, %v3706_v60  ;;  %v3710_v1 = vadd.f32 %v3709_v15, %v6355_v35 }
 0x27e   : > { %v3711_v4 = vpop.f32.mrf.mxu0 }
 0x27f   : > { %v3904_v28 = vpop.f32.mrf.mxu1  ;;  %3971 = vst.msk [vmem:[%s4858_s21 + $0x1d8] sm:$0xff] %vm3912_vm3, %v3899_v46  ;;  %v3903_v49 = vadd.f32 %v3902_v5, %v3710_v1  ;;  %v3712_v20 = vadd.f32 %v3711_v4, %v6356_v27 }
 0x280   : > { %v3713_v7 = vpop.f32.mrf.mxu0 }
 0x281   : > { %v3906_v41 = vpop.f32.mrf.mxu1  ;;  %3972 = vst [vmem:[%s4858_s21 + $0x1e0] sm:$0xff] %v3903_v49  ;;  %v3905_v40 = vadd.f32 %v3904_v28, %v3712_v20  ;;  %v3714_v8 = vadd.f32 %v3713_v7, %v6152_v24 }
 0x282   : > { %v3715_v53 = vpop.f32.mrf.mxu0 }
 0x283   : > { %3973 = vst.msk [vmem:[%s4858_s21 + $0x1e8] sm:$0xff] %vm3912_vm3, %v3905_v40  ;;  %v3907_v12 = vadd.f32 %v3906_v41, %v3714_v8  ;;  %v3716_v22 = vadd.f32 %v3715_v53, %v6357_v26  ;;  %v3908_v17 = vpop.f32.mrf.mxu1 }
 0x285   : > { %3974 = vst [vmem:[%s4858_s21 + $0x1f0] sm:$0xff] %v3907_v12  ;;  %v3909_v16 = vadd.f32 %v3908_v17, %v3716_v22 }
 0x287   : > { %3975 = vst.msk [vmem:[%s4858_s21 + $0x1f8] sm:$0xff] %vm3912_vm3, %v3909_v16 }
 0x288 PF: > { %s12_s11 = sadd.s32 1, %s4815_s11   ;;  %s6358_s9 = smov %s4811_s10 }
 0x289   : > { %p9_p6 = scmp.ge.s32.totalorder %s12_s11, 6   ;;  %s6359_s10 = smov %s6361_s12 }
 0x28b   :  { %11 = sbr.rel (!%p9_p6) target bundleno = 2 (0x2), region = 62 }

</bundles_post_ra>
